<compile_context>
chip_gen: v6e
topology: v6e:2x2x1
jax: 0.10.0
libtpu: 0.0.40
codegen_flags: <defaults>
</compile_context>

<pallas_src>
import math
import numpy as np
import jax
import jax.numpy as jnp
from jax.experimental import pallas as pl
from jax.experimental.pallas import tpu as pltpu

EPS = 1e-6

# ---------------- model hyper-parameters (small, consistent with module) -----
B, L, D_MODEL = 2, 8, 32          # batch, sequence length, d_model (= d_word_vec)
N_HEAD, D_K, D_V = 4, 8, 8
D_INNER = 64
N_LAYERS = 2
N_POSITION = 200

_PARAMS_PER_LAYER = 12            # wq, wk, wv, wfc, ln1_g, ln1_b, w1, b1, w2, b2, ln2_g, ln2_b


# ---------------------------- in-kernel helpers ------------------------------
def _layernorm(x, g, b):
    mu = jnp.mean(x, axis=-1, keepdims=True)
    var = jnp.mean((x - mu) ** 2, axis=-1, keepdims=True)
    return (x - mu) * jax.lax.rsqrt(var + EPS) * g + b


# --------------------------- fused Pallas kernel ------------------------------
def _make_encoder_kernel(n_layers, n_head, d_k, d_v, batch, seqlen):
    inv_temp = 1.0 / (d_k ** 0.5)

    def kernel(*refs):
        # refs = [x, mask, pos, enc_ln_g, enc_ln_b, <12 per layer>..., out, attn_buf]
        x_ref, mask_ref, pos_ref, encg_ref, encb_ref = refs[:5]
        layer_refs = refs[5:5 + _PARAMS_PER_LAYER * n_layers]
        o_ref = refs[5 + _PARAMS_PER_LAYER * n_layers]
        attn_buf = refs[5 + _PARAMS_PER_LAYER * n_layers + 1]   # VMEM scratch (B*L, H*d_v)

        # ----- prologue: x = LayerNorm(dropout(x + pos_table)) -----------------
        # TODO(synk): dropout layers are identity in eval mode; not implemented.
        y = _layernorm(x_ref[...] + pos_ref[...], encg_ref[...], encb_ref[...])  # (B*L, D)

        # Additive key-padding mask bias, computed once for the whole call.
        # (Equivalent to masked_fill(-1e9): masked logits underflow to exactly 0
        #  after the max-stabilized exp either way.)
        bias = jnp.where(mask_ref[...] == 0,
                         jnp.float32(-1e9), jnp.float32(0.0))                    # (B, L)

        for li in range(n_layers):
            (wq, wk, wv, wfc, g1, b1, w1, fb1, w2, fb2, g2, b2) = \
                layer_refs[_PARAMS_PER_LAYER * li:_PARAMS_PER_LAYER * (li + 1)]

            # ----- multi-head self-attention (whole (B*L, D) slab projections) -
            q = jnp.dot(y, wq[...], preferred_element_type=jnp.float32) * inv_temp
            k = jnp.dot(y, wk[...], preferred_element_type=jnp.float32)
            v = jnp.dot(y, wv[...], preferred_element_type=jnp.float32)

            for bi in range(batch):                       # static, tiny
                r0 = bi * seqlen
                qb = q[r0:r0 + seqlen, :]
                kb = k[r0:r0 + seqlen, :]
                vb = v[r0:r0 + seqlen, :]
                bias_b = bias[bi:bi + 1, :]               # (1, L) -> broadcast (L, L)
                for h in range(n_head):                   # static, tiny
                    qh = qb[:, h * d_k:(h + 1) * d_k]
                    kh = kb[:, h * d_k:(h + 1) * d_k]
                    vh = vb[:, h * d_v:(h + 1) * d_v]
                    s = jnp.dot(qh, kh.T, preferred_element_type=jnp.float32) + bias_b
                    s = s - jnp.max(s, axis=-1, keepdims=True)
                    p = jnp.exp(s)
                    p = p * pl.reciprocal(jnp.sum(p, axis=-1, keepdims=True), approx=True)
                    # write head output into the scratch slab at a static lane
                    # offset instead of a lane-axis concatenate.
                    attn_buf[r0:r0 + seqlen, h * d_v:(h + 1) * d_v] = \
                        jnp.dot(p, vh, preferred_element_type=jnp.float32)

            attn = jnp.dot(attn_buf[...], wfc[...], preferred_element_type=jnp.float32)
            y = _layernorm(attn + y, g1[...], b1[...])

            # ----- position-wise feed-forward ----------------------------------
            h1 = jnp.maximum(
                jnp.dot(y, w1[...], preferred_element_type=jnp.float32) + fb1[...], 0.0)
            h2 = jnp.dot(h1, w2[...], preferred_element_type=jnp.float32) + fb2[...]
            y = _layernorm(h2 + y, g2[...], b2[...])

        o_ref[...] = y

    return kernel


# ------------------------------- wrapper --------------------------------------
def encoder_forward(x, mask, pos, params):
    Bn, Ln, Dn = x.shape
    n_layers = len(params["layers"])

    # Collapse (B, L, D) -> (B*L, D) so every linear op runs on one dense slab.
    x2 = x.reshape(Bn * Ln, Dn)
    mask2 = mask.reshape(Bn, Ln)
    pos2 = jnp.tile(pos, (Bn, 1))                         # (B*L, D)

    flat_weights = []
    for lp in params["layers"]:
        flat_weights += [lp["wq_t"], lp["wk_t"], lp["wv_t"], lp["wfc_t"],
                         lp["ln1_g"], lp["ln1_b"],
                         lp["w1_t"], lp["b1"], lp["w2_t"], lp["b2"],
                         lp["ln2_g"], lp["ln2_b"]]

    n_inputs = 5 + len(flat_weights)
    vspec = pl.BlockSpec(memory_space=pltpu.MemorySpace.VMEM)   # whole array in VMEM

    kernel = _make_encoder_kernel(n_layers, N_HEAD, D_K, D_V, Bn, Ln)
    out2 = pl.pallas_call(
        kernel,
        out_shape=jax.ShapeDtypeStruct((Bn * Ln, Dn), jnp.float32),
        in_specs=[vspec] * n_inputs,
        out_specs=vspec,
        scratch_shapes=[pltpu.VMEM((Bn * Ln, N_HEAD * D_V), jnp.float32)],
    )(x2, mask2, pos2, params["enc_ln_g"], params["enc_ln_b"], *flat_weights)

    return out2.reshape(Bn, Ln, Dn)


# --------------------------- plain-JAX reference -------------------------------
def reference_forward(x, mask, pos, params):
    def ln(v, g, b):
        mu = v.mean(-1, keepdims=True)
        var = ((v - mu) ** 2).mean(-1, keepdims=True)
        return (v - mu) / jnp.sqrt(var + EPS) * g + b

    y = ln(x + pos[None], params["enc_ln_g"], params["enc_ln_b"])
    for lp in params["layers"]:
        Bn, Ln, _ = y.shape
        q = (y @ lp["wq_t"]).reshape(Bn, Ln, N_HEAD, D_K).transpose(0, 2, 1, 3)
        k = (y @ lp["wk_t"]).reshape(Bn, Ln, N_HEAD, D_K).transpose(0, 2, 1, 3)
        v = (y @ lp["wv_t"]).reshape(Bn, Ln, N_HEAD, D_V).transpose(0, 2, 1, 3)
        s = jnp.einsum("bhld,bhmd->bhlm", q / math.sqrt(D_K), k)
        s = jnp.where(mask[:, None] == 0, -1e9, s)
        p = jax.nn.softmax(s, axis=-1)
        o = jnp.einsum("bhlm,bhmd->bhld", p, v).transpose(0, 2, 1, 3).reshape(Bn, Ln, -1)
        y = ln(o @ lp["wfc_t"] + y, lp["ln1_g"], lp["ln1_b"])
        h1 = jax.nn.relu(y @ lp["w1_t"] + lp["b1"])
        y = ln(h1 @ lp["w2_t"] + lp["b2"] + y, lp["ln2_g"], lp["ln2_b"])
    return y


# ------------------------------ parameter init ---------------------------------
def sinusoid_table(n_position, d_hid):
    pos = np.arange(n_position)[:, None].astype(np.float64)
    j = np.arange(d_hid)[None, :]
    table = pos / np.power(10000, 2 * (j // 2) / d_hid)
    table[:, 0::2] = np.sin(table[:, 0::2])
    table[:, 1::2] = np.cos(table[:, 1::2])
    return jnp.asarray(table, dtype=jnp.float32)


def init_params(key):
    layers = []
    for _ in range(N_LAYERS):
        keys = jax.random.split(key, 8)
        key = keys[-1]
        lp = {
            "wq_t": jax.random.normal(keys[0], (D_MODEL, N_HEAD * D_K), jnp.float32) * 0.1,
            "wk_t": jax.random.normal(keys[1], (D_MODEL, N_HEAD * D_K), jnp.float32) * 0.1,
            "wv_t": jax.random.normal(keys[2], (D_MODEL, N_HEAD * D_V), jnp.float32) * 0.1,
            "wfc_t": jax.random.normal(keys[3], (N_HEAD * D_V, D_MODEL), jnp.float32) * 0.1,
            "ln1_g": jnp.ones((1, D_MODEL), jnp.float32),
            "ln1_b": jnp.zeros((1, D_MODEL), jnp.float32),
            "w1_t": jax.random.normal(keys[4], (D_MODEL, D_INNER), jnp.float32) * 0.1,
            "b1": jax.random.normal(keys[5], (1, D_INNER), jnp.float32) * 0.05,
            "w2_t": jax.random.normal(keys[6], (D_INNER, D_MODEL), jnp.float32) * 0.1,
            "b2": jnp.zeros((1, D_MODEL), jnp.float32),
            "ln2_g": jnp.ones((1, D_MODEL), jnp.float32),
            "ln2_b": jnp.zeros((1, D_MODEL), jnp.float32),
        }
        layers.append(lp)
    params = {
        "enc_ln_g": jnp.ones((1, D_MODEL), jnp.float32),
        "enc_ln_b": jnp.zeros((1, D_MODEL), jnp.float32),
        "layers": layers,
    }
    return params


# ------------------------------------ main --------------------------------------
if __name__ == "__main__":
    key = jax.random.PRNGKey(0)
    kx, kp = jax.random.split(key)

    x = jax.random.normal(kx, (B, L, D_MODEL), jnp.float32)
    # key-padding mask (B, 1, L): 1 = keep, 0 = pad (last two keys of batch 1 padded)
    mask = jnp.ones((B, 1, L), jnp.int32)
    mask = mask.at[1, 0, L - 2:].set(0)

    pos = sinusoid_table(N_POSITION, D_MODEL)[:L]      # (L, D)
    params = init_params(kp)

    out = encoder_forward(x, mask, pos, params)
    out = jax.block_until_ready(out)

    ref = reference_forward(x, mask, pos, params)
    # tolerance covers the EUP approx-reciprocal used for the softmax denominator
    np.testing.assert_allclose(np.asarray(out), np.asarray(ref), atol=2e-3, rtol=2e-3)

    print("KERNEL_OK")
</pallas_src>

<mosaic_0001>
module attributes {stable_mosaic.version = 11 : i64} {
  func.func @kernel(%arg0: memref<16x32xf32, #tpu.memory_space<vmem>>, %arg1: memref<2x8xi32, #tpu.memory_space<vmem>>, %arg2: memref<16x32xf32, #tpu.memory_space<vmem>>, %arg3: memref<1x32xf32, #tpu.memory_space<vmem>>, %arg4: memref<1x32xf32, #tpu.memory_space<vmem>>, %arg5: memref<32x32xf32, #tpu.memory_space<vmem>>, %arg6: memref<32x32xf32, #tpu.memory_space<vmem>>, %arg7: memref<32x32xf32, #tpu.memory_space<vmem>>, %arg8: memref<32x32xf32, #tpu.memory_space<vmem>>, %arg9: memref<1x32xf32, #tpu.memory_space<vmem>>, %arg10: memref<1x32xf32, #tpu.memory_space<vmem>>, %arg11: memref<32x64xf32, #tpu.memory_space<vmem>>, %arg12: memref<1x64xf32, #tpu.memory_space<vmem>>, %arg13: memref<64x32xf32, #tpu.memory_space<vmem>>, %arg14: memref<1x32xf32, #tpu.memory_space<vmem>>, %arg15: memref<1x32xf32, #tpu.memory_space<vmem>>, %arg16: memref<1x32xf32, #tpu.memory_space<vmem>>, %arg17: memref<32x32xf32, #tpu.memory_space<vmem>>, %arg18: memref<32x32xf32, #tpu.memory_space<vmem>>, %arg19: memref<32x32xf32, #tpu.memory_space<vmem>>, %arg20: memref<32x32xf32, #tpu.memory_space<vmem>>, %arg21: memref<1x32xf32, #tpu.memory_space<vmem>>, %arg22: memref<1x32xf32, #tpu.memory_space<vmem>>, %arg23: memref<32x64xf32, #tpu.memory_space<vmem>>, %arg24: memref<1x64xf32, #tpu.memory_space<vmem>>, %arg25: memref<64x32xf32, #tpu.memory_space<vmem>>, %arg26: memref<1x32xf32, #tpu.memory_space<vmem>>, %arg27: memref<1x32xf32, #tpu.memory_space<vmem>>, %arg28: memref<1x32xf32, #tpu.memory_space<vmem>>, %arg29: memref<16x32xf32, #tpu.memory_space<vmem>>, %arg30: memref<16x32xf32, #tpu.memory_space<vmem>>) attributes {dimension_semantics = [], scalar_prefetch = 0 : i64, scratch_operands = 1 : i64, tpu.core_type = #tpu.core_type<tc>} {
    %c0 = arith.constant 0 : index
    %c0_0 = arith.constant 0 : index
    %0 = vector.load %arg0[%c0, %c0_0] : memref<16x32xf32, #tpu.memory_space<vmem>>, vector<16x32xf32>
    %c0_1 = arith.constant 0 : index
    %c0_2 = arith.constant 0 : index
    %1 = vector.load %arg2[%c0_1, %c0_2] : memref<16x32xf32, #tpu.memory_space<vmem>>, vector<16x32xf32>
    %2 = arith.addf %0, %1 : vector<16x32xf32>
    %c0_3 = arith.constant 0 : index
    %c0_4 = arith.constant 0 : index
    %3 = vector.load %arg3[%c0_3, %c0_4] : memref<1x32xf32, #tpu.memory_space<vmem>>, vector<1x32xf32>
    %c0_5 = arith.constant 0 : index
    %c0_6 = arith.constant 0 : index
    %4 = vector.load %arg4[%c0_5, %c0_6] : memref<1x32xf32, #tpu.memory_space<vmem>>, vector<1x32xf32>
    %cst = arith.constant dense<0.000000e+00> : vector<16xf32>
    %5 = vector.multi_reduction <add>, %2, %cst [1] : vector<16x32xf32> to vector<16xf32>
    %6 = vector.shape_cast %5 : vector<16xf32> to vector<16x1xf32>
    %cst_7 = arith.constant 3.200000e+01 : f32
    %7 = vector.broadcast %cst_7 : f32 to vector<16x1xf32>
    %8 = arith.divf %6, %7 : vector<16x1xf32>
    %9 = vector.broadcast %8 : vector<16x1xf32> to vector<16x32xf32>
    %10 = arith.subf %2, %9 : vector<16x32xf32>
    %11 = arith.mulf %10, %10 : vector<16x32xf32>
    %cst_8 = arith.constant dense<0.000000e+00> : vector<16xf32>
    %12 = vector.multi_reduction <add>, %11, %cst_8 [1] : vector<16x32xf32> to vector<16xf32>
    %13 = vector.shape_cast %12 : vector<16xf32> to vector<16x1xf32>
    %cst_9 = arith.constant 3.200000e+01 : f32
    %14 = vector.broadcast %cst_9 : f32 to vector<16x1xf32>
    %15 = arith.divf %13, %14 : vector<16x1xf32>
    %16 = vector.broadcast %8 : vector<16x1xf32> to vector<16x32xf32>
    %17 = arith.subf %2, %16 : vector<16x32xf32>
    %cst_10 = arith.constant 9.99999997E-7 : f32
    %18 = vector.broadcast %cst_10 : f32 to vector<16x1xf32>
    %19 = arith.addf %15, %18 : vector<16x1xf32>
    %20 = math.rsqrt %19 : vector<16x1xf32>
    %21 = vector.broadcast %20 : vector<16x1xf32> to vector<16x32xf32>
    %22 = arith.mulf %17, %21 : vector<16x32xf32>
    %23 = vector.broadcast %3 : vector<1x32xf32> to vector<16x32xf32>
    %24 = arith.mulf %22, %23 : vector<16x32xf32>
    %25 = vector.broadcast %4 : vector<1x32xf32> to vector<16x32xf32>
    %26 = arith.addf %24, %25 : vector<16x32xf32>
    %c0_11 = arith.constant 0 : index
    %c0_12 = arith.constant 0 : index
    %27 = vector.load %arg1[%c0_11, %c0_12] : memref<2x8xi32, #tpu.memory_space<vmem>>, vector<2x8xi32>
    %c0_i32 = arith.constant 0 : i32
    %28 = vector.broadcast %c0_i32 : i32 to vector<2x8xi32>
    %29 = arith.cmpi eq, %27, %28 : vector<2x8xi32>
    %cst_13 = arith.constant -1.000000e+09 : f32
    %cst_14 = arith.constant 0.000000e+00 : f32
    %30 = vector.broadcast %cst_13 : f32 to vector<2x8xf32>
    %31 = vector.broadcast %cst_14 : f32 to vector<2x8xf32>
    %32 = arith.select %29, %30, %31 : vector<2x8xi1>, vector<2x8xf32>
    %c0_15 = arith.constant 0 : index
    %c0_16 = arith.constant 0 : index
    %33 = vector.load %arg5[%c0_15, %c0_16] : memref<32x32xf32, #tpu.memory_space<vmem>>, vector<32x32xf32>
    %cst_17 = arith.constant dense<0.000000e+00> : vector<16x32xf32>
    %34 = tpu.matmul %26, %33, %cst_17 {dimension_numbers = #tpu.dot_dimension_numbers<[1], [0], [0], [1], [0, 0, 1, 1], [], []>} : vector<16x32xf32>, vector<32x32xf32>, vector<16x32xf32> -> vector<16x32xf32>
    %cst_18 = arith.constant 0.353553385 : f32
    %35 = vector.broadcast %cst_18 : f32 to vector<16x32xf32>
    %36 = arith.mulf %34, %35 : vector<16x32xf32>
    %c0_19 = arith.constant 0 : index
    %c0_20 = arith.constant 0 : index
    %37 = vector.load %arg6[%c0_19, %c0_20] : memref<32x32xf32, #tpu.memory_space<vmem>>, vector<32x32xf32>
    %cst_21 = arith.constant dense<0.000000e+00> : vector<16x32xf32>
    %38 = tpu.matmul %26, %37, %cst_21 {dimension_numbers = #tpu.dot_dimension_numbers<[1], [0], [0], [1], [0, 0, 1, 1], [], []>} : vector<16x32xf32>, vector<32x32xf32>, vector<16x32xf32> -> vector<16x32xf32>
    %c0_22 = arith.constant 0 : index
    %c0_23 = arith.constant 0 : index
    %39 = vector.load %arg7[%c0_22, %c0_23] : memref<32x32xf32, #tpu.memory_space<vmem>>, vector<32x32xf32>
    %cst_24 = arith.constant dense<0.000000e+00> : vector<16x32xf32>
    %40 = tpu.matmul %26, %39, %cst_24 {dimension_numbers = #tpu.dot_dimension_numbers<[1], [0], [0], [1], [0, 0, 1, 1], [], []>} : vector<16x32xf32>, vector<32x32xf32>, vector<16x32xf32> -> vector<16x32xf32>
    %41 = vector.extract_strided_slice %36 {offsets = [0, 0], sizes = [8, 32], strides = [1, 1]} : vector<16x32xf32> to vector<8x32xf32>
    %42 = vector.extract_strided_slice %38 {offsets = [0, 0], sizes = [8, 32], strides = [1, 1]} : vector<16x32xf32> to vector<8x32xf32>
    %43 = vector.extract_strided_slice %40 {offsets = [0, 0], sizes = [8, 32], strides = [1, 1]} : vector<16x32xf32> to vector<8x32xf32>
    %44 = vector.extract_strided_slice %32 {offsets = [0, 0], sizes = [1, 8], strides = [1, 1]} : vector<2x8xf32> to vector<1x8xf32>
    %45 = vector.extract_strided_slice %41 {offsets = [0, 0], sizes = [8, 8], strides = [1, 1]} : vector<8x32xf32> to vector<8x8xf32>
    %46 = vector.extract_strided_slice %42 {offsets = [0, 0], sizes = [8, 8], strides = [1, 1]} : vector<8x32xf32> to vector<8x8xf32>
    %47 = vector.extract_strided_slice %43 {offsets = [0, 0], sizes = [8, 8], strides = [1, 1]} : vector<8x32xf32> to vector<8x8xf32>
    %48 = tpu.transpose %46, [1, 0] : vector<8x8xf32> -> vector<8x8xf32>
    %cst_25 = arith.constant dense<0.000000e+00> : vector<8x8xf32>
    %49 = tpu.matmul %45, %48, %cst_25 {dimension_numbers = #tpu.dot_dimension_numbers<[1], [0], [0], [1], [0, 0, 1, 1], [], []>} : vector<8x8xf32>, vector<8x8xf32>, vector<8x8xf32> -> vector<8x8xf32>
    %50 = vector.broadcast %44 : vector<1x8xf32> to vector<8x8xf32>
    %51 = arith.addf %49, %50 : vector<8x8xf32>
    %cst_26 = arith.constant dense<0xFF800000> : vector<8xf32>
    %52 = vector.multi_reduction <maximumf>, %51, %cst_26 [1] : vector<8x8xf32> to vector<8xf32>
    %53 = vector.shape_cast %52 : vector<8xf32> to vector<8x1xf32>
    %54 = vector.broadcast %53 : vector<8x1xf32> to vector<8x8xf32>
    %55 = arith.subf %51, %54 : vector<8x8xf32>
    %56 = math.exp %55 : vector<8x8xf32>
    %cst_27 = arith.constant dense<0.000000e+00> : vector<8xf32>
    %57 = vector.multi_reduction <add>, %56, %cst_27 [1] : vector<8x8xf32> to vector<8xf32>
    %58 = vector.shape_cast %57 : vector<8xf32> to vector<8x1xf32>
    %59 = tpu.reciprocal %58 {approx = true} : vector<8x1xf32> -> vector<8x1xf32>
    %60 = vector.broadcast %59 : vector<8x1xf32> to vector<8x8xf32>
    %61 = arith.mulf %56, %60 : vector<8x8xf32>
    %cst_28 = arith.constant dense<0.000000e+00> : vector<8x8xf32>
    %62 = tpu.matmul %61, %47, %cst_28 {dimension_numbers = #tpu.dot_dimension_numbers<[1], [0], [0], [1], [0, 0, 1, 1], [], []>} : vector<8x8xf32>, vector<8x8xf32>, vector<8x8xf32> -> vector<8x8xf32>
    %c0_29 = arith.constant 0 : index
    %c0_30 = arith.constant 0 : index
    %63 = vector.load %arg30[%c0_29, %c0_30] : memref<16x32xf32, #tpu.memory_space<vmem>>, vector<8x8xf32>
    tpu.vector_store %arg30[%c0_29, %c0_30], %62 {strides = array<i32>} : memref<16x32xf32, #tpu.memory_space<vmem>>, vector<8x8xf32>,
    %64 = vector.extract_strided_slice %41 {offsets = [0, 8], sizes = [8, 8], strides = [1, 1]} : vector<8x32xf32> to vector<8x8xf32>
    %65 = vector.extract_strided_slice %42 {offsets = [0, 8], sizes = [8, 8], strides = [1, 1]} : vector<8x32xf32> to vector<8x8xf32>
    %66 = vector.extract_strided_slice %43 {offsets = [0, 8], sizes = [8, 8], strides = [1, 1]} : vector<8x32xf32> to vector<8x8xf32>
    %67 = tpu.transpose %65, [1, 0] : vector<8x8xf32> -> vector<8x8xf32>
    %cst_31 = arith.constant dense<0.000000e+00> : vector<8x8xf32>
    %68 = tpu.matmul %64, %67, %cst_31 {dimension_numbers = #tpu.dot_dimension_numbers<[1], [0], [0], [1], [0, 0, 1, 1], [], []>} : vector<8x8xf32>, vector<8x8xf32>, vector<8x8xf32> -> vector<8x8xf32>
    %69 = vector.broadcast %44 : vector<1x8xf32> to vector<8x8xf32>
    %70 = arith.addf %68, %69 : vector<8x8xf32>
    %cst_32 = arith.constant dense<0xFF800000> : vector<8xf32>
    %71 = vector.multi_reduction <maximumf>, %70, %cst_32 [1] : vector<8x8xf32> to vector<8xf32>
    %72 = vector.shape_cast %71 : vector<8xf32> to vector<8x1xf32>
    %73 = vector.broadcast %72 : vector<8x1xf32> to vector<8x8xf32>
    %74 = arith.subf %70, %73 : vector<8x8xf32>
    %75 = math.exp %74 : vector<8x8xf32>
    %cst_33 = arith.constant dense<0.000000e+00> : vector<8xf32>
    %76 = vector.multi_reduction <add>, %75, %cst_33 [1] : vector<8x8xf32> to vector<8xf32>
    %77 = vector.shape_cast %76 : vector<8xf32> to vector<8x1xf32>
    %78 = tpu.reciprocal %77 {approx = true} : vector<8x1xf32> -> vector<8x1xf32>
    %79 = vector.broadcast %78 : vector<8x1xf32> to vector<8x8xf32>
    %80 = arith.mulf %75, %79 : vector<8x8xf32>
    %cst_34 = arith.constant dense<0.000000e+00> : vector<8x8xf32>
    %81 = tpu.matmul %80, %66, %cst_34 {dimension_numbers = #tpu.dot_dimension_numbers<[1], [0], [0], [1], [0, 0, 1, 1], [], []>} : vector<8x8xf32>, vector<8x8xf32>, vector<8x8xf32> -> vector<8x8xf32>
    %c0_35 = arith.constant 0 : index
    %c8 = arith.constant 8 : index
    %82 = vector.load %arg30[%c0_35, %c8] : memref<16x32xf32, #tpu.memory_space<vmem>>, vector<8x8xf32>
    tpu.vector_store %arg30[%c0_35, %c8], %81 {strides = array<i32>} : memref<16x32xf32, #tpu.memory_space<vmem>>, vector<8x8xf32>,
    %83 = vector.extract_strided_slice %41 {offsets = [0, 16], sizes = [8, 8], strides = [1, 1]} : vector<8x32xf32> to vector<8x8xf32>
    %84 = vector.extract_strided_slice %42 {offsets = [0, 16], sizes = [8, 8], strides = [1, 1]} : vector<8x32xf32> to vector<8x8xf32>
    %85 = vector.extract_strided_slice %43 {offsets = [0, 16], sizes = [8, 8], strides = [1, 1]} : vector<8x32xf32> to vector<8x8xf32>
    %86 = tpu.transpose %84, [1, 0] : vector<8x8xf32> -> vector<8x8xf32>
    %cst_36 = arith.constant dense<0.000000e+00> : vector<8x8xf32>
    %87 = tpu.matmul %83, %86, %cst_36 {dimension_numbers = #tpu.dot_dimension_numbers<[1], [0], [0], [1], [0, 0, 1, 1], [], []>} : vector<8x8xf32>, vector<8x8xf32>, vector<8x8xf32> -> vector<8x8xf32>
    %88 = vector.broadcast %44 : vector<1x8xf32> to vector<8x8xf32>
    %89 = arith.addf %87, %88 : vector<8x8xf32>
    %cst_37 = arith.constant dense<0xFF800000> : vector<8xf32>
    %90 = vector.multi_reduction <maximumf>, %89, %cst_37 [1] : vector<8x8xf32> to vector<8xf32>
    %91 = vector.shape_cast %90 : vector<8xf32> to vector<8x1xf32>
    %92 = vector.broadcast %91 : vector<8x1xf32> to vector<8x8xf32>
    %93 = arith.subf %89, %92 : vector<8x8xf32>
    %94 = math.exp %93 : vector<8x8xf32>
    %cst_38 = arith.constant dense<0.000000e+00> : vector<8xf32>
    %95 = vector.multi_reduction <add>, %94, %cst_38 [1] : vector<8x8xf32> to vector<8xf32>
    %96 = vector.shape_cast %95 : vector<8xf32> to vector<8x1xf32>
    %97 = tpu.reciprocal %96 {approx = true} : vector<8x1xf32> -> vector<8x1xf32>
    %98 = vector.broadcast %97 : vector<8x1xf32> to vector<8x8xf32>
    %99 = arith.mulf %94, %98 : vector<8x8xf32>
    %cst_39 = arith.constant dense<0.000000e+00> : vector<8x8xf32>
    %100 = tpu.matmul %99, %85, %cst_39 {dimension_numbers = #tpu.dot_dimension_numbers<[1], [0], [0], [1], [0, 0, 1, 1], [], []>} : vector<8x8xf32>, vector<8x8xf32>, vector<8x8xf32> -> vector<8x8xf32>
    %c0_40 = arith.constant 0 : index
    %c16 = arith.constant 16 : index
    %101 = vector.load %arg30[%c0_40, %c16] : memref<16x32xf32, #tpu.memory_space<vmem>>, vector<8x8xf32>
    tpu.vector_store %arg30[%c0_40, %c16], %100 {strides = array<i32>} : memref<16x32xf32, #tpu.memory_space<vmem>>, vector<8x8xf32>,
    %102 = vector.extract_strided_slice %41 {offsets = [0, 24], sizes = [8, 8], strides = [1, 1]} : vector<8x32xf32> to vector<8x8xf32>
    %103 = vector.extract_strided_slice %42 {offsets = [0, 24], sizes = [8, 8], strides = [1, 1]} : vector<8x32xf32> to vector<8x8xf32>
    %104 = vector.extract_strided_slice %43 {offsets = [0, 24], sizes = [8, 8], strides = [1, 1]} : vector<8x32xf32> to vector<8x8xf32>
    %105 = tpu.transpose %103, [1, 0] : vector<8x8xf32> -> vector<8x8xf32>
    %cst_41 = arith.constant dense<0.000000e+00> : vector<8x8xf32>
    %106 = tpu.matmul %102, %105, %cst_41 {dimension_numbers = #tpu.dot_dimension_numbers<[1], [0], [0], [1], [0, 0, 1, 1], [], []>} : vector<8x8xf32>, vector<8x8xf32>, vector<8x8xf32> -> vector<8x8xf32>
    %107 = vector.broadcast %44 : vector<1x8xf32> to vector<8x8xf32>
    %108 = arith.addf %106, %107 : vector<8x8xf32>
    %cst_42 = arith.constant dense<0xFF800000> : vector<8xf32>
    %109 = vector.multi_reduction <maximumf>, %108, %cst_42 [1] : vector<8x8xf32> to vector<8xf32>
    %110 = vector.shape_cast %109 : vector<8xf32> to vector<8x1xf32>
    %111 = vector.broadcast %110 : vector<8x1xf32> to vector<8x8xf32>
    %112 = arith.subf %108, %111 : vector<8x8xf32>
    %113 = math.exp %112 : vector<8x8xf32>
    %cst_43 = arith.constant dense<0.000000e+00> : vector<8xf32>
    %114 = vector.multi_reduction <add>, %113, %cst_43 [1] : vector<8x8xf32> to vector<8xf32>
    %115 = vector.shape_cast %114 : vector<8xf32> to vector<8x1xf32>
    %116 = tpu.reciprocal %115 {approx = true} : vector<8x1xf32> -> vector<8x1xf32>
    %117 = vector.broadcast %116 : vector<8x1xf32> to vector<8x8xf32>
    %118 = arith.mulf %113, %117 : vector<8x8xf32>
    %cst_44 = arith.constant dense<0.000000e+00> : vector<8x8xf32>
    %119 = tpu.matmul %118, %104, %cst_44 {dimension_numbers = #tpu.dot_dimension_numbers<[1], [0], [0], [1], [0, 0, 1, 1], [], []>} : vector<8x8xf32>, vector<8x8xf32>, vector<8x8xf32> -> vector<8x8xf32>
    %c0_45 = arith.constant 0 : index
    %c24 = arith.constant 24 : index
    %120 = vector.load %arg30[%c0_45, %c24] : memref<16x32xf32, #tpu.memory_space<vmem>>, vector<8x8xf32>
    tpu.vector_store %arg30[%c0_45, %c24], %119 {strides = array<i32>} : memref<16x32xf32, #tpu.memory_space<vmem>>, vector<8x8xf32>,
    %121 = vector.extract_strided_slice %36 {offsets = [8, 0], sizes = [8, 32], strides = [1, 1]} : vector<16x32xf32> to vector<8x32xf32>
    %122 = vector.extract_strided_slice %38 {offsets = [8, 0], sizes = [8, 32], strides = [1, 1]} : vector<16x32xf32> to vector<8x32xf32>
    %123 = vector.extract_strided_slice %40 {offsets = [8, 0], sizes = [8, 32], strides = [1, 1]} : vector<16x32xf32> to vector<8x32xf32>
    %124 = vector.extract_strided_slice %32 {offsets = [1, 0], sizes = [1, 8], strides = [1, 1]} : vector<2x8xf32> to vector<1x8xf32>
    %125 = vector.extract_strided_slice %121 {offsets = [0, 0], sizes = [8, 8], strides = [1, 1]} : vector<8x32xf32> to vector<8x8xf32>
    %126 = vector.extract_strided_slice %122 {offsets = [0, 0], sizes = [8, 8], strides = [1, 1]} : vector<8x32xf32> to vector<8x8xf32>
    %127 = vector.extract_strided_slice %123 {offsets = [0, 0], sizes = [8, 8], strides = [1, 1]} : vector<8x32xf32> to vector<8x8xf32>
    %128 = tpu.transpose %126, [1, 0] : vector<8x8xf32> -> vector<8x8xf32>
    %cst_46 = arith.constant dense<0.000000e+00> : vector<8x8xf32>
    %129 = tpu.matmul %125, %128, %cst_46 {dimension_numbers = #tpu.dot_dimension_numbers<[1], [0], [0], [1], [0, 0, 1, 1], [], []>} : vector<8x8xf32>, vector<8x8xf32>, vector<8x8xf32> -> vector<8x8xf32>
    %130 = vector.broadcast %124 : vector<1x8xf32> to vector<8x8xf32>
    %131 = arith.addf %129, %130 : vector<8x8xf32>
    %cst_47 = arith.constant dense<0xFF800000> : vector<8xf32>
    %132 = vector.multi_reduction <maximumf>, %131, %cst_47 [1] : vector<8x8xf32> to vector<8xf32>
    %133 = vector.shape_cast %132 : vector<8xf32> to vector<8x1xf32>
    %134 = vector.broadcast %133 : vector<8x1xf32> to vector<8x8xf32>
    %135 = arith.subf %131, %134 : vector<8x8xf32>
    %136 = math.exp %135 : vector<8x8xf32>
    %cst_48 = arith.constant dense<0.000000e+00> : vector<8xf32>
    %137 = vector.multi_reduction <add>, %136, %cst_48 [1] : vector<8x8xf32> to vector<8xf32>
    %138 = vector.shape_cast %137 : vector<8xf32> to vector<8x1xf32>
    %139 = tpu.reciprocal %138 {approx = true} : vector<8x1xf32> -> vector<8x1xf32>
    %140 = vector.broadcast %139 : vector<8x1xf32> to vector<8x8xf32>
    %141 = arith.mulf %136, %140 : vector<8x8xf32>
    %cst_49 = arith.constant dense<0.000000e+00> : vector<8x8xf32>
    %142 = tpu.matmul %141, %127, %cst_49 {dimension_numbers = #tpu.dot_dimension_numbers<[1], [0], [0], [1], [0, 0, 1, 1], [], []>} : vector<8x8xf32>, vector<8x8xf32>, vector<8x8xf32> -> vector<8x8xf32>
    %c8_50 = arith.constant 8 : index
    %c0_51 = arith.constant 0 : index
    %143 = vector.load %arg30[%c8_50, %c0_51] : memref<16x32xf32, #tpu.memory_space<vmem>>, vector<8x8xf32>
    tpu.vector_store %arg30[%c8_50, %c0_51], %142 {strides = array<i32>} : memref<16x32xf32, #tpu.memory_space<vmem>>, vector<8x8xf32>,
    %144 = vector.extract_strided_slice %121 {offsets = [0, 8], sizes = [8, 8], strides = [1, 1]} : vector<8x32xf32> to vector<8x8xf32>
    %145 = vector.extract_strided_slice %122 {offsets = [0, 8], sizes = [8, 8], strides = [1, 1]} : vector<8x32xf32> to vector<8x8xf32>
    %146 = vector.extract_strided_slice %123 {offsets = [0, 8], sizes = [8, 8], strides = [1, 1]} : vector<8x32xf32> to vector<8x8xf32>
    %147 = tpu.transpose %145, [1, 0] : vector<8x8xf32> -> vector<8x8xf32>
    %cst_52 = arith.constant dense<0.000000e+00> : vector<8x8xf32>
    %148 = tpu.matmul %144, %147, %cst_52 {dimension_numbers = #tpu.dot_dimension_numbers<[1], [0], [0], [1], [0, 0, 1, 1], [], []>} : vector<8x8xf32>, vector<8x8xf32>, vector<8x8xf32> -> vector<8x8xf32>
    %149 = vector.broadcast %124 : vector<1x8xf32> to vector<8x8xf32>
    %150 = arith.addf %148, %149 : vector<8x8xf32>
    %cst_53 = arith.constant dense<0xFF800000> : vector<8xf32>
    %151 = vector.multi_reduction <maximumf>, %150, %cst_53 [1] : vector<8x8xf32> to vector<8xf32>
    %152 = vector.shape_cast %151 : vector<8xf32> to vector<8x1xf32>
    %153 = vector.broadcast %152 : vector<8x1xf32> to vector<8x8xf32>
    %154 = arith.subf %150, %153 : vector<8x8xf32>
    %155 = math.exp %154 : vector<8x8xf32>
    %cst_54 = arith.constant dense<0.000000e+00> : vector<8xf32>
    %156 = vector.multi_reduction <add>, %155, %cst_54 [1] : vector<8x8xf32> to vector<8xf32>
    %157 = vector.shape_cast %156 : vector<8xf32> to vector<8x1xf32>
    %158 = tpu.reciprocal %157 {approx = true} : vector<8x1xf32> -> vector<8x1xf32>
    %159 = vector.broadcast %158 : vector<8x1xf32> to vector<8x8xf32>
    %160 = arith.mulf %155, %159 : vector<8x8xf32>
    %cst_55 = arith.constant dense<0.000000e+00> : vector<8x8xf32>
    %161 = tpu.matmul %160, %146, %cst_55 {dimension_numbers = #tpu.dot_dimension_numbers<[1], [0], [0], [1], [0, 0, 1, 1], [], []>} : vector<8x8xf32>, vector<8x8xf32>, vector<8x8xf32> -> vector<8x8xf32>
    %c8_56 = arith.constant 8 : index
    %c8_57 = arith.constant 8 : index
    %162 = vector.load %arg30[%c8_56, %c8_57] : memref<16x32xf32, #tpu.memory_space<vmem>>, vector<8x8xf32>
    tpu.vector_store %arg30[%c8_56, %c8_57], %161 {strides = array<i32>} : memref<16x32xf32, #tpu.memory_space<vmem>>, vector<8x8xf32>,
    %163 = vector.extract_strided_slice %121 {offsets = [0, 16], sizes = [8, 8], strides = [1, 1]} : vector<8x32xf32> to vector<8x8xf32>
    %164 = vector.extract_strided_slice %122 {offsets = [0, 16], sizes = [8, 8], strides = [1, 1]} : vector<8x32xf32> to vector<8x8xf32>
    %165 = vector.extract_strided_slice %123 {offsets = [0, 16], sizes = [8, 8], strides = [1, 1]} : vector<8x32xf32> to vector<8x8xf32>
    %166 = tpu.transpose %164, [1, 0] : vector<8x8xf32> -> vector<8x8xf32>
    %cst_58 = arith.constant dense<0.000000e+00> : vector<8x8xf32>
    %167 = tpu.matmul %163, %166, %cst_58 {dimension_numbers = #tpu.dot_dimension_numbers<[1], [0], [0], [1], [0, 0, 1, 1], [], []>} : vector<8x8xf32>, vector<8x8xf32>, vector<8x8xf32> -> vector<8x8xf32>
    %168 = vector.broadcast %124 : vector<1x8xf32> to vector<8x8xf32>
    %169 = arith.addf %167, %168 : vector<8x8xf32>
    %cst_59 = arith.constant dense<0xFF800000> : vector<8xf32>
    %170 = vector.multi_reduction <maximumf>, %169, %cst_59 [1] : vector<8x8xf32> to vector<8xf32>
    %171 = vector.shape_cast %170 : vector<8xf32> to vector<8x1xf32>
    %172 = vector.broadcast %171 : vector<8x1xf32> to vector<8x8xf32>
    %173 = arith.subf %169, %172 : vector<8x8xf32>
    %174 = math.exp %173 : vector<8x8xf32>
    %cst_60 = arith.constant dense<0.000000e+00> : vector<8xf32>
    %175 = vector.multi_reduction <add>, %174, %cst_60 [1] : vector<8x8xf32> to vector<8xf32>
    %176 = vector.shape_cast %175 : vector<8xf32> to vector<8x1xf32>
    %177 = tpu.reciprocal %176 {approx = true} : vector<8x1xf32> -> vector<8x1xf32>
    %178 = vector.broadcast %177 : vector<8x1xf32> to vector<8x8xf32>
    %179 = arith.mulf %174, %178 : vector<8x8xf32>
    %cst_61 = arith.constant dense<0.000000e+00> : vector<8x8xf32>
    %180 = tpu.matmul %179, %165, %cst_61 {dimension_numbers = #tpu.dot_dimension_numbers<[1], [0], [0], [1], [0, 0, 1, 1], [], []>} : vector<8x8xf32>, vector<8x8xf32>, vector<8x8xf32> -> vector<8x8xf32>
    %c8_62 = arith.constant 8 : index
    %c16_63 = arith.constant 16 : index
    %181 = vector.load %arg30[%c8_62, %c16_63] : memref<16x32xf32, #tpu.memory_space<vmem>>, vector<8x8xf32>
    tpu.vector_store %arg30[%c8_62, %c16_63], %180 {strides = array<i32>} : memref<16x32xf32, #tpu.memory_space<vmem>>, vector<8x8xf32>,
    %182 = vector.extract_strided_slice %121 {offsets = [0, 24], sizes = [8, 8], strides = [1, 1]} : vector<8x32xf32> to vector<8x8xf32>
    %183 = vector.extract_strided_slice %122 {offsets = [0, 24], sizes = [8, 8], strides = [1, 1]} : vector<8x32xf32> to vector<8x8xf32>
    %184 = vector.extract_strided_slice %123 {offsets = [0, 24], sizes = [8, 8], strides = [1, 1]} : vector<8x32xf32> to vector<8x8xf32>
    %185 = tpu.transpose %183, [1, 0] : vector<8x8xf32> -> vector<8x8xf32>
    %cst_64 = arith.constant dense<0.000000e+00> : vector<8x8xf32>
    %186 = tpu.matmul %182, %185, %cst_64 {dimension_numbers = #tpu.dot_dimension_numbers<[1], [0], [0], [1], [0, 0, 1, 1], [], []>} : vector<8x8xf32>, vector<8x8xf32>, vector<8x8xf32> -> vector<8x8xf32>
    %187 = vector.broadcast %124 : vector<1x8xf32> to vector<8x8xf32>
    %188 = arith.addf %186, %187 : vector<8x8xf32>
    %cst_65 = arith.constant dense<0xFF800000> : vector<8xf32>
    %189 = vector.multi_reduction <maximumf>, %188, %cst_65 [1] : vector<8x8xf32> to vector<8xf32>
    %190 = vector.shape_cast %189 : vector<8xf32> to vector<8x1xf32>
    %191 = vector.broadcast %190 : vector<8x1xf32> to vector<8x8xf32>
    %192 = arith.subf %188, %191 : vector<8x8xf32>
    %193 = math.exp %192 : vector<8x8xf32>
    %cst_66 = arith.constant dense<0.000000e+00> : vector<8xf32>
    %194 = vector.multi_reduction <add>, %193, %cst_66 [1] : vector<8x8xf32> to vector<8xf32>
    %195 = vector.shape_cast %194 : vector<8xf32> to vector<8x1xf32>
    %196 = tpu.reciprocal %195 {approx = true} : vector<8x1xf32> -> vector<8x1xf32>
    %197 = vector.broadcast %196 : vector<8x1xf32> to vector<8x8xf32>
    %198 = arith.mulf %193, %197 : vector<8x8xf32>
    %cst_67 = arith.constant dense<0.000000e+00> : vector<8x8xf32>
    %199 = tpu.matmul %198, %184, %cst_67 {dimension_numbers = #tpu.dot_dimension_numbers<[1], [0], [0], [1], [0, 0, 1, 1], [], []>} : vector<8x8xf32>, vector<8x8xf32>, vector<8x8xf32> -> vector<8x8xf32>
    %c8_68 = arith.constant 8 : index
    %c24_69 = arith.constant 24 : index
    %200 = vector.load %arg30[%c8_68, %c24_69] : memref<16x32xf32, #tpu.memory_space<vmem>>, vector<8x8xf32>
    tpu.vector_store %arg30[%c8_68, %c24_69], %199 {strides = array<i32>} : memref<16x32xf32, #tpu.memory_space<vmem>>, vector<8x8xf32>,
    %c0_70 = arith.constant 0 : index
    %c0_71 = arith.constant 0 : index
    %201 = vector.load %arg30[%c0_70, %c0_71] : memref<16x32xf32, #tpu.memory_space<vmem>>, vector<16x32xf32>
    %c0_72 = arith.constant 0 : index
    %c0_73 = arith.constant 0 : index
    %202 = vector.load %arg8[%c0_72, %c0_73] : memref<32x32xf32, #tpu.memory_space<vmem>>, vector<32x32xf32>
    %cst_74 = arith.constant dense<0.000000e+00> : vector<16x32xf32>
    %203 = tpu.matmul %201, %202, %cst_74 {dimension_numbers = #tpu.dot_dimension_numbers<[1], [0], [0], [1], [0, 0, 1, 1], [], []>} : vector<16x32xf32>, vector<32x32xf32>, vector<16x32xf32> -> vector<16x32xf32>
    %204 = arith.addf %203, %26 : vector<16x32xf32>
    %c0_75 = arith.constant 0 : index
    %c0_76 = arith.constant 0 : index
    %205 = vector.load %arg9[%c0_75, %c0_76] : memref<1x32xf32, #tpu.memory_space<vmem>>, vector<1x32xf32>
    %c0_77 = arith.constant 0 : index
    %c0_78 = arith.constant 0 : index
    %206 = vector.load %arg10[%c0_77, %c0_78] : memref<1x32xf32, #tpu.memory_space<vmem>>, vector<1x32xf32>
    %cst_79 = arith.constant dense<0.000000e+00> : vector<16xf32>
    %207 = vector.multi_reduction <add>, %204, %cst_79 [1] : vector<16x32xf32> to vector<16xf32>
    %208 = vector.shape_cast %207 : vector<16xf32> to vector<16x1xf32>
    %cst_80 = arith.constant 3.200000e+01 : f32
    %209 = vector.broadcast %cst_80 : f32 to vector<16x1xf32>
    %210 = arith.divf %208, %209 : vector<16x1xf32>
    %211 = vector.broadcast %210 : vector<16x1xf32> to vector<16x32xf32>
    %212 = arith.subf %204, %211 : vector<16x32xf32>
    %213 = arith.mulf %212, %212 : vector<16x32xf32>
    %cst_81 = arith.constant dense<0.000000e+00> : vector<16xf32>
    %214 = vector.multi_reduction <add>, %213, %cst_81 [1] : vector<16x32xf32> to vector<16xf32>
    %215 = vector.shape_cast %214 : vector<16xf32> to vector<16x1xf32>
    %cst_82 = arith.constant 3.200000e+01 : f32
    %216 = vector.broadcast %cst_82 : f32 to vector<16x1xf32>
    %217 = arith.divf %215, %216 : vector<16x1xf32>
    %218 = vector.broadcast %210 : vector<16x1xf32> to vector<16x32xf32>
    %219 = arith.subf %204, %218 : vector<16x32xf32>
    %cst_83 = arith.constant 9.99999997E-7 : f32
    %220 = vector.broadcast %cst_83 : f32 to vector<16x1xf32>
    %221 = arith.addf %217, %220 : vector<16x1xf32>
    %222 = math.rsqrt %221 : vector<16x1xf32>
    %223 = vector.broadcast %222 : vector<16x1xf32> to vector<16x32xf32>
    %224 = arith.mulf %219, %223 : vector<16x32xf32>
    %225 = vector.broadcast %205 : vector<1x32xf32> to vector<16x32xf32>
    %226 = arith.mulf %224, %225 : vector<16x32xf32>
    %227 = vector.broadcast %206 : vector<1x32xf32> to vector<16x32xf32>
    %228 = arith.addf %226, %227 : vector<16x32xf32>
    %c0_84 = arith.constant 0 : index
    %c0_85 = arith.constant 0 : index
    %229 = vector.load %arg11[%c0_84, %c0_85] : memref<32x64xf32, #tpu.memory_space<vmem>>, vector<32x64xf32>
    %cst_86 = arith.constant dense<0.000000e+00> : vector<16x64xf32>
    %230 = tpu.matmul %228, %229, %cst_86 {dimension_numbers = #tpu.dot_dimension_numbers<[1], [0], [0], [1], [0, 0, 1, 1], [], []>} : vector<16x32xf32>, vector<32x64xf32>, vector<16x64xf32> -> vector<16x64xf32>
    %c0_87 = arith.constant 0 : index
    %c0_88 = arith.constant 0 : index
    %231 = vector.load %arg12[%c0_87, %c0_88] : memref<1x64xf32, #tpu.memory_space<vmem>>, vector<1x64xf32>
    %232 = vector.broadcast %231 : vector<1x64xf32> to vector<16x64xf32>
    %233 = arith.addf %230, %232 : vector<16x64xf32>
    %cst_89 = arith.constant 0.000000e+00 : f32
    %234 = vector.broadcast %cst_89 : f32 to vector<16x64xf32>
    %235 = arith.maximumf %233, %234 : vector<16x64xf32>
    %c0_90 = arith.constant 0 : index
    %c0_91 = arith.constant 0 : index
    %236 = vector.load %arg13[%c0_90, %c0_91] : memref<64x32xf32, #tpu.memory_space<vmem>>, vector<64x32xf32>
    %cst_92 = arith.constant dense<0.000000e+00> : vector<16x32xf32>
    %237 = tpu.matmul %235, %236, %cst_92 {dimension_numbers = #tpu.dot_dimension_numbers<[1], [0], [0], [1], [0, 0, 1, 1], [], []>} : vector<16x64xf32>, vector<64x32xf32>, vector<16x32xf32> -> vector<16x32xf32>
    %c0_93 = arith.constant 0 : index
    %c0_94 = arith.constant 0 : index
    %238 = vector.load %arg14[%c0_93, %c0_94] : memref<1x32xf32, #tpu.memory_space<vmem>>, vector<1x32xf32>
    %239 = vector.broadcast %238 : vector<1x32xf32> to vector<16x32xf32>
    %240 = arith.addf %237, %239 : vector<16x32xf32>
    %241 = arith.addf %240, %228 : vector<16x32xf32>
    %c0_95 = arith.constant 0 : index
    %c0_96 = arith.constant 0 : index
    %242 = vector.load %arg15[%c0_95, %c0_96] : memref<1x32xf32, #tpu.memory_space<vmem>>, vector<1x32xf32>
    %c0_97 = arith.constant 0 : index
    %c0_98 = arith.constant 0 : index
    %243 = vector.load %arg16[%c0_97, %c0_98] : memref<1x32xf32, #tpu.memory_space<vmem>>, vector<1x32xf32>
    %cst_99 = arith.constant dense<0.000000e+00> : vector<16xf32>
    %244 = vector.multi_reduction <add>, %241, %cst_99 [1] : vector<16x32xf32> to vector<16xf32>
    %245 = vector.shape_cast %244 : vector<16xf32> to vector<16x1xf32>
    %cst_100 = arith.constant 3.200000e+01 : f32
    %246 = vector.broadcast %cst_100 : f32 to vector<16x1xf32>
    %247 = arith.divf %245, %246 : vector<16x1xf32>
    %248 = vector.broadcast %247 : vector<16x1xf32> to vector<16x32xf32>
    %249 = arith.subf %241, %248 : vector<16x32xf32>
    %250 = arith.mulf %249, %249 : vector<16x32xf32>
    %cst_101 = arith.constant dense<0.000000e+00> : vector<16xf32>
    %251 = vector.multi_reduction <add>, %250, %cst_101 [1] : vector<16x32xf32> to vector<16xf32>
    %252 = vector.shape_cast %251 : vector<16xf32> to vector<16x1xf32>
    %cst_102 = arith.constant 3.200000e+01 : f32
    %253 = vector.broadcast %cst_102 : f32 to vector<16x1xf32>
    %254 = arith.divf %252, %253 : vector<16x1xf32>
    %255 = vector.broadcast %247 : vector<16x1xf32> to vector<16x32xf32>
    %256 = arith.subf %241, %255 : vector<16x32xf32>
    %cst_103 = arith.constant 9.99999997E-7 : f32
    %257 = vector.broadcast %cst_103 : f32 to vector<16x1xf32>
    %258 = arith.addf %254, %257 : vector<16x1xf32>
    %259 = math.rsqrt %258 : vector<16x1xf32>
    %260 = vector.broadcast %259 : vector<16x1xf32> to vector<16x32xf32>
    %261 = arith.mulf %256, %260 : vector<16x32xf32>
    %262 = vector.broadcast %242 : vector<1x32xf32> to vector<16x32xf32>
    %263 = arith.mulf %261, %262 : vector<16x32xf32>
    %264 = vector.broadcast %243 : vector<1x32xf32> to vector<16x32xf32>
    %265 = arith.addf %263, %264 : vector<16x32xf32>
    %c0_104 = arith.constant 0 : index
    %c0_105 = arith.constant 0 : index
    %266 = vector.load %arg17[%c0_104, %c0_105] : memref<32x32xf32, #tpu.memory_space<vmem>>, vector<32x32xf32>
    %cst_106 = arith.constant dense<0.000000e+00> : vector<16x32xf32>
    %267 = tpu.matmul %265, %266, %cst_106 {dimension_numbers = #tpu.dot_dimension_numbers<[1], [0], [0], [1], [0, 0, 1, 1], [], []>} : vector<16x32xf32>, vector<32x32xf32>, vector<16x32xf32> -> vector<16x32xf32>
    %cst_107 = arith.constant 0.353553385 : f32
    %268 = vector.broadcast %cst_107 : f32 to vector<16x32xf32>
    %269 = arith.mulf %267, %268 : vector<16x32xf32>
    %c0_108 = arith.constant 0 : index
    %c0_109 = arith.constant 0 : index
    %270 = vector.load %arg18[%c0_108, %c0_109] : memref<32x32xf32, #tpu.memory_space<vmem>>, vector<32x32xf32>
    %cst_110 = arith.constant dense<0.000000e+00> : vector<16x32xf32>
    %271 = tpu.matmul %265, %270, %cst_110 {dimension_numbers = #tpu.dot_dimension_numbers<[1], [0], [0], [1], [0, 0, 1, 1], [], []>} : vector<16x32xf32>, vector<32x32xf32>, vector<16x32xf32> -> vector<16x32xf32>
    %c0_111 = arith.constant 0 : index
    %c0_112 = arith.constant 0 : index
    %272 = vector.load %arg19[%c0_111, %c0_112] : memref<32x32xf32, #tpu.memory_space<vmem>>, vector<32x32xf32>
    %cst_113 = arith.constant dense<0.000000e+00> : vector<16x32xf32>
    %273 = tpu.matmul %265, %272, %cst_113 {dimension_numbers = #tpu.dot_dimension_numbers<[1], [0], [0], [1], [0, 0, 1, 1], [], []>} : vector<16x32xf32>, vector<32x32xf32>, vector<16x32xf32> -> vector<16x32xf32>
    %274 = vector.extract_strided_slice %269 {offsets = [0, 0], sizes = [8, 32], strides = [1, 1]} : vector<16x32xf32> to vector<8x32xf32>
    %275 = vector.extract_strided_slice %271 {offsets = [0, 0], sizes = [8, 32], strides = [1, 1]} : vector<16x32xf32> to vector<8x32xf32>
    %276 = vector.extract_strided_slice %273 {offsets = [0, 0], sizes = [8, 32], strides = [1, 1]} : vector<16x32xf32> to vector<8x32xf32>
    %277 = vector.extract_strided_slice %32 {offsets = [0, 0], sizes = [1, 8], strides = [1, 1]} : vector<2x8xf32> to vector<1x8xf32>
    %278 = vector.extract_strided_slice %274 {offsets = [0, 0], sizes = [8, 8], strides = [1, 1]} : vector<8x32xf32> to vector<8x8xf32>
    %279 = vector.extract_strided_slice %275 {offsets = [0, 0], sizes = [8, 8], strides = [1, 1]} : vector<8x32xf32> to vector<8x8xf32>
    %280 = vector.extract_strided_slice %276 {offsets = [0, 0], sizes = [8, 8], strides = [1, 1]} : vector<8x32xf32> to vector<8x8xf32>
    %281 = tpu.transpose %279, [1, 0] : vector<8x8xf32> -> vector<8x8xf32>
    %cst_114 = arith.constant dense<0.000000e+00> : vector<8x8xf32>
    %282 = tpu.matmul %278, %281, %cst_114 {dimension_numbers = #tpu.dot_dimension_numbers<[1], [0], [0], [1], [0, 0, 1, 1], [], []>} : vector<8x8xf32>, vector<8x8xf32>, vector<8x8xf32> -> vector<8x8xf32>
    %283 = vector.broadcast %277 : vector<1x8xf32> to vector<8x8xf32>
    %284 = arith.addf %282, %283 : vector<8x8xf32>
    %cst_115 = arith.constant dense<0xFF800000> : vector<8xf32>
    %285 = vector.multi_reduction <maximumf>, %284, %cst_115 [1] : vector<8x8xf32> to vector<8xf32>
    %286 = vector.shape_cast %285 : vector<8xf32> to vector<8x1xf32>
    %287 = vector.broadcast %286 : vector<8x1xf32> to vector<8x8xf32>
    %288 = arith.subf %284, %287 : vector<8x8xf32>
    %289 = math.exp %288 : vector<8x8xf32>
    %cst_116 = arith.constant dense<0.000000e+00> : vector<8xf32>
    %290 = vector.multi_reduction <add>, %289, %cst_116 [1] : vector<8x8xf32> to vector<8xf32>
    %291 = vector.shape_cast %290 : vector<8xf32> to vector<8x1xf32>
    %292 = tpu.reciprocal %291 {approx = true} : vector<8x1xf32> -> vector<8x1xf32>
    %293 = vector.broadcast %292 : vector<8x1xf32> to vector<8x8xf32>
    %294 = arith.mulf %289, %293 : vector<8x8xf32>
    %cst_117 = arith.constant dense<0.000000e+00> : vector<8x8xf32>
    %295 = tpu.matmul %294, %280, %cst_117 {dimension_numbers = #tpu.dot_dimension_numbers<[1], [0], [0], [1], [0, 0, 1, 1], [], []>} : vector<8x8xf32>, vector<8x8xf32>, vector<8x8xf32> -> vector<8x8xf32>
    %c0_118 = arith.constant 0 : index
    %c0_119 = arith.constant 0 : index
    %296 = vector.load %arg30[%c0_118, %c0_119] : memref<16x32xf32, #tpu.memory_space<vmem>>, vector<8x8xf32>
    tpu.vector_store %arg30[%c0_118, %c0_119], %295 {strides = array<i32>} : memref<16x32xf32, #tpu.memory_space<vmem>>, vector<8x8xf32>,
    %297 = vector.extract_strided_slice %274 {offsets = [0, 8], sizes = [8, 8], strides = [1, 1]} : vector<8x32xf32> to vector<8x8xf32>
    %298 = vector.extract_strided_slice %275 {offsets = [0, 8], sizes = [8, 8], strides = [1, 1]} : vector<8x32xf32> to vector<8x8xf32>
    %299 = vector.extract_strided_slice %276 {offsets = [0, 8], sizes = [8, 8], strides = [1, 1]} : vector<8x32xf32> to vector<8x8xf32>
    %300 = tpu.transpose %298, [1, 0] : vector<8x8xf32> -> vector<8x8xf32>
    %cst_120 = arith.constant dense<0.000000e+00> : vector<8x8xf32>
    %301 = tpu.matmul %297, %300, %cst_120 {dimension_numbers = #tpu.dot_dimension_numbers<[1], [0], [0], [1], [0, 0, 1, 1], [], []>} : vector<8x8xf32>, vector<8x8xf32>, vector<8x8xf32> -> vector<8x8xf32>
    %302 = vector.broadcast %277 : vector<1x8xf32> to vector<8x8xf32>
    %303 = arith.addf %301, %302 : vector<8x8xf32>
    %cst_121 = arith.constant dense<0xFF800000> : vector<8xf32>
    %304 = vector.multi_reduction <maximumf>, %303, %cst_121 [1] : vector<8x8xf32> to vector<8xf32>
    %305 = vector.shape_cast %304 : vector<8xf32> to vector<8x1xf32>
    %306 = vector.broadcast %305 : vector<8x1xf32> to vector<8x8xf32>
    %307 = arith.subf %303, %306 : vector<8x8xf32>
    %308 = math.exp %307 : vector<8x8xf32>
    %cst_122 = arith.constant dense<0.000000e+00> : vector<8xf32>
    %309 = vector.multi_reduction <add>, %308, %cst_122 [1] : vector<8x8xf32> to vector<8xf32>
    %310 = vector.shape_cast %309 : vector<8xf32> to vector<8x1xf32>
    %311 = tpu.reciprocal %310 {approx = true} : vector<8x1xf32> -> vector<8x1xf32>
    %312 = vector.broadcast %311 : vector<8x1xf32> to vector<8x8xf32>
    %313 = arith.mulf %308, %312 : vector<8x8xf32>
    %cst_123 = arith.constant dense<0.000000e+00> : vector<8x8xf32>
    %314 = tpu.matmul %313, %299, %cst_123 {dimension_numbers = #tpu.dot_dimension_numbers<[1], [0], [0], [1], [0, 0, 1, 1], [], []>} : vector<8x8xf32>, vector<8x8xf32>, vector<8x8xf32> -> vector<8x8xf32>
    %c0_124 = arith.constant 0 : index
    %c8_125 = arith.constant 8 : index
    %315 = vector.load %arg30[%c0_124, %c8_125] : memref<16x32xf32, #tpu.memory_space<vmem>>, vector<8x8xf32>
    tpu.vector_store %arg30[%c0_124, %c8_125], %314 {strides = array<i32>} : memref<16x32xf32, #tpu.memory_space<vmem>>, vector<8x8xf32>,
    %316 = vector.extract_strided_slice %274 {offsets = [0, 16], sizes = [8, 8], strides = [1, 1]} : vector<8x32xf32> to vector<8x8xf32>
    %317 = vector.extract_strided_slice %275 {offsets = [0, 16], sizes = [8, 8], strides = [1, 1]} : vector<8x32xf32> to vector<8x8xf32>
    %318 = vector.extract_strided_slice %276 {offsets = [0, 16], sizes = [8, 8], strides = [1, 1]} : vector<8x32xf32> to vector<8x8xf32>
    %319 = tpu.transpose %317, [1, 0] : vector<8x8xf32> -> vector<8x8xf32>
    %cst_126 = arith.constant dense<0.000000e+00> : vector<8x8xf32>
    %320 = tpu.matmul %316, %319, %cst_126 {dimension_numbers = #tpu.dot_dimension_numbers<[1], [0], [0], [1], [0, 0, 1, 1], [], []>} : vector<8x8xf32>, vector<8x8xf32>, vector<8x8xf32> -> vector<8x8xf32>
    %321 = vector.broadcast %277 : vector<1x8xf32> to vector<8x8xf32>
    %322 = arith.addf %320, %321 : vector<8x8xf32>
    %cst_127 = arith.constant dense<0xFF800000> : vector<8xf32>
    %323 = vector.multi_reduction <maximumf>, %322, %cst_127 [1] : vector<8x8xf32> to vector<8xf32>
    %324 = vector.shape_cast %323 : vector<8xf32> to vector<8x1xf32>
    %325 = vector.broadcast %324 : vector<8x1xf32> to vector<8x8xf32>
    %326 = arith.subf %322, %325 : vector<8x8xf32>
    %327 = math.exp %326 : vector<8x8xf32>
    %cst_128 = arith.constant dense<0.000000e+00> : vector<8xf32>
    %328 = vector.multi_reduction <add>, %327, %cst_128 [1] : vector<8x8xf32> to vector<8xf32>
    %329 = vector.shape_cast %328 : vector<8xf32> to vector<8x1xf32>
    %330 = tpu.reciprocal %329 {approx = true} : vector<8x1xf32> -> vector<8x1xf32>
    %331 = vector.broadcast %330 : vector<8x1xf32> to vector<8x8xf32>
    %332 = arith.mulf %327, %331 : vector<8x8xf32>
    %cst_129 = arith.constant dense<0.000000e+00> : vector<8x8xf32>
    %333 = tpu.matmul %332, %318, %cst_129 {dimension_numbers = #tpu.dot_dimension_numbers<[1], [0], [0], [1], [0, 0, 1, 1], [], []>} : vector<8x8xf32>, vector<8x8xf32>, vector<8x8xf32> -> vector<8x8xf32>
    %c0_130 = arith.constant 0 : index
    %c16_131 = arith.constant 16 : index
    %334 = vector.load %arg30[%c0_130, %c16_131] : memref<16x32xf32, #tpu.memory_space<vmem>>, vector<8x8xf32>
    tpu.vector_store %arg30[%c0_130, %c16_131], %333 {strides = array<i32>} : memref<16x32xf32, #tpu.memory_space<vmem>>, vector<8x8xf32>,
    %335 = vector.extract_strided_slice %274 {offsets = [0, 24], sizes = [8, 8], strides = [1, 1]} : vector<8x32xf32> to vector<8x8xf32>
    %336 = vector.extract_strided_slice %275 {offsets = [0, 24], sizes = [8, 8], strides = [1, 1]} : vector<8x32xf32> to vector<8x8xf32>
    %337 = vector.extract_strided_slice %276 {offsets = [0, 24], sizes = [8, 8], strides = [1, 1]} : vector<8x32xf32> to vector<8x8xf32>
    %338 = tpu.transpose %336, [1, 0] : vector<8x8xf32> -> vector<8x8xf32>
    %cst_132 = arith.constant dense<0.000000e+00> : vector<8x8xf32>
    %339 = tpu.matmul %335, %338, %cst_132 {dimension_numbers = #tpu.dot_dimension_numbers<[1], [0], [0], [1], [0, 0, 1, 1], [], []>} : vector<8x8xf32>, vector<8x8xf32>, vector<8x8xf32> -> vector<8x8xf32>
    %340 = vector.broadcast %277 : vector<1x8xf32> to vector<8x8xf32>
    %341 = arith.addf %339, %340 : vector<8x8xf32>
    %cst_133 = arith.constant dense<0xFF800000> : vector<8xf32>
    %342 = vector.multi_reduction <maximumf>, %341, %cst_133 [1] : vector<8x8xf32> to vector<8xf32>
    %343 = vector.shape_cast %342 : vector<8xf32> to vector<8x1xf32>
    %344 = vector.broadcast %343 : vector<8x1xf32> to vector<8x8xf32>
    %345 = arith.subf %341, %344 : vector<8x8xf32>
    %346 = math.exp %345 : vector<8x8xf32>
    %cst_134 = arith.constant dense<0.000000e+00> : vector<8xf32>
    %347 = vector.multi_reduction <add>, %346, %cst_134 [1] : vector<8x8xf32> to vector<8xf32>
    %348 = vector.shape_cast %347 : vector<8xf32> to vector<8x1xf32>
    %349 = tpu.reciprocal %348 {approx = true} : vector<8x1xf32> -> vector<8x1xf32>
    %350 = vector.broadcast %349 : vector<8x1xf32> to vector<8x8xf32>
    %351 = arith.mulf %346, %350 : vector<8x8xf32>
    %cst_135 = arith.constant dense<0.000000e+00> : vector<8x8xf32>
    %352 = tpu.matmul %351, %337, %cst_135 {dimension_numbers = #tpu.dot_dimension_numbers<[1], [0], [0], [1], [0, 0, 1, 1], [], []>} : vector<8x8xf32>, vector<8x8xf32>, vector<8x8xf32> -> vector<8x8xf32>
    %c0_136 = arith.constant 0 : index
    %c24_137 = arith.constant 24 : index
    %353 = vector.load %arg30[%c0_136, %c24_137] : memref<16x32xf32, #tpu.memory_space<vmem>>, vector<8x8xf32>
    tpu.vector_store %arg30[%c0_136, %c24_137], %352 {strides = array<i32>} : memref<16x32xf32, #tpu.memory_space<vmem>>, vector<8x8xf32>,
    %354 = vector.extract_strided_slice %269 {offsets = [8, 0], sizes = [8, 32], strides = [1, 1]} : vector<16x32xf32> to vector<8x32xf32>
    %355 = vector.extract_strided_slice %271 {offsets = [8, 0], sizes = [8, 32], strides = [1, 1]} : vector<16x32xf32> to vector<8x32xf32>
    %356 = vector.extract_strided_slice %273 {offsets = [8, 0], sizes = [8, 32], strides = [1, 1]} : vector<16x32xf32> to vector<8x32xf32>
    %357 = vector.extract_strided_slice %32 {offsets = [1, 0], sizes = [1, 8], strides = [1, 1]} : vector<2x8xf32> to vector<1x8xf32>
    %358 = vector.extract_strided_slice %354 {offsets = [0, 0], sizes = [8, 8], strides = [1, 1]} : vector<8x32xf32> to vector<8x8xf32>
    %359 = vector.extract_strided_slice %355 {offsets = [0, 0], sizes = [8, 8], strides = [1, 1]} : vector<8x32xf32> to vector<8x8xf32>
    %360 = vector.extract_strided_slice %356 {offsets = [0, 0], sizes = [8, 8], strides = [1, 1]} : vector<8x32xf32> to vector<8x8xf32>
    %361 = tpu.transpose %359, [1, 0] : vector<8x8xf32> -> vector<8x8xf32>
    %cst_138 = arith.constant dense<0.000000e+00> : vector<8x8xf32>
    %362 = tpu.matmul %358, %361, %cst_138 {dimension_numbers = #tpu.dot_dimension_numbers<[1], [0], [0], [1], [0, 0, 1, 1], [], []>} : vector<8x8xf32>, vector<8x8xf32>, vector<8x8xf32> -> vector<8x8xf32>
    %363 = vector.broadcast %357 : vector<1x8xf32> to vector<8x8xf32>
    %364 = arith.addf %362, %363 : vector<8x8xf32>
    %cst_139 = arith.constant dense<0xFF800000> : vector<8xf32>
    %365 = vector.multi_reduction <maximumf>, %364, %cst_139 [1] : vector<8x8xf32> to vector<8xf32>
    %366 = vector.shape_cast %365 : vector<8xf32> to vector<8x1xf32>
    %367 = vector.broadcast %366 : vector<8x1xf32> to vector<8x8xf32>
    %368 = arith.subf %364, %367 : vector<8x8xf32>
    %369 = math.exp %368 : vector<8x8xf32>
    %cst_140 = arith.constant dense<0.000000e+00> : vector<8xf32>
    %370 = vector.multi_reduction <add>, %369, %cst_140 [1] : vector<8x8xf32> to vector<8xf32>
    %371 = vector.shape_cast %370 : vector<8xf32> to vector<8x1xf32>
    %372 = tpu.reciprocal %371 {approx = true} : vector<8x1xf32> -> vector<8x1xf32>
    %373 = vector.broadcast %372 : vector<8x1xf32> to vector<8x8xf32>
    %374 = arith.mulf %369, %373 : vector<8x8xf32>
    %cst_141 = arith.constant dense<0.000000e+00> : vector<8x8xf32>
    %375 = tpu.matmul %374, %360, %cst_141 {dimension_numbers = #tpu.dot_dimension_numbers<[1], [0], [0], [1], [0, 0, 1, 1], [], []>} : vector<8x8xf32>, vector<8x8xf32>, vector<8x8xf32> -> vector<8x8xf32>
    %c8_142 = arith.constant 8 : index
    %c0_143 = arith.constant 0 : index
    %376 = vector.load %arg30[%c8_142, %c0_143] : memref<16x32xf32, #tpu.memory_space<vmem>>, vector<8x8xf32>
    tpu.vector_store %arg30[%c8_142, %c0_143], %375 {strides = array<i32>} : memref<16x32xf32, #tpu.memory_space<vmem>>, vector<8x8xf32>,
    %377 = vector.extract_strided_slice %354 {offsets = [0, 8], sizes = [8, 8], strides = [1, 1]} : vector<8x32xf32> to vector<8x8xf32>
    %378 = vector.extract_strided_slice %355 {offsets = [0, 8], sizes = [8, 8], strides = [1, 1]} : vector<8x32xf32> to vector<8x8xf32>
    %379 = vector.extract_strided_slice %356 {offsets = [0, 8], sizes = [8, 8], strides = [1, 1]} : vector<8x32xf32> to vector<8x8xf32>
    %380 = tpu.transpose %378, [1, 0] : vector<8x8xf32> -> vector<8x8xf32>
    %cst_144 = arith.constant dense<0.000000e+00> : vector<8x8xf32>
    %381 = tpu.matmul %377, %380, %cst_144 {dimension_numbers = #tpu.dot_dimension_numbers<[1], [0], [0], [1], [0, 0, 1, 1], [], []>} : vector<8x8xf32>, vector<8x8xf32>, vector<8x8xf32> -> vector<8x8xf32>
    %382 = vector.broadcast %357 : vector<1x8xf32> to vector<8x8xf32>
    %383 = arith.addf %381, %382 : vector<8x8xf32>
    %cst_145 = arith.constant dense<0xFF800000> : vector<8xf32>
    %384 = vector.multi_reduction <maximumf>, %383, %cst_145 [1] : vector<8x8xf32> to vector<8xf32>
    %385 = vector.shape_cast %384 : vector<8xf32> to vector<8x1xf32>
    %386 = vector.broadcast %385 : vector<8x1xf32> to vector<8x8xf32>
    %387 = arith.subf %383, %386 : vector<8x8xf32>
    %388 = math.exp %387 : vector<8x8xf32>
    %cst_146 = arith.constant dense<0.000000e+00> : vector<8xf32>
    %389 = vector.multi_reduction <add>, %388, %cst_146 [1] : vector<8x8xf32> to vector<8xf32>
    %390 = vector.shape_cast %389 : vector<8xf32> to vector<8x1xf32>
    %391 = tpu.reciprocal %390 {approx = true} : vector<8x1xf32> -> vector<8x1xf32>
    %392 = vector.broadcast %391 : vector<8x1xf32> to vector<8x8xf32>
    %393 = arith.mulf %388, %392 : vector<8x8xf32>
    %cst_147 = arith.constant dense<0.000000e+00> : vector<8x8xf32>
    %394 = tpu.matmul %393, %379, %cst_147 {dimension_numbers = #tpu.dot_dimension_numbers<[1], [0], [0], [1], [0, 0, 1, 1], [], []>} : vector<8x8xf32>, vector<8x8xf32>, vector<8x8xf32> -> vector<8x8xf32>
    %c8_148 = arith.constant 8 : index
    %c8_149 = arith.constant 8 : index
    %395 = vector.load %arg30[%c8_148, %c8_149] : memref<16x32xf32, #tpu.memory_space<vmem>>, vector<8x8xf32>
    tpu.vector_store %arg30[%c8_148, %c8_149], %394 {strides = array<i32>} : memref<16x32xf32, #tpu.memory_space<vmem>>, vector<8x8xf32>,
    %396 = vector.extract_strided_slice %354 {offsets = [0, 16], sizes = [8, 8], strides = [1, 1]} : vector<8x32xf32> to vector<8x8xf32>
    %397 = vector.extract_strided_slice %355 {offsets = [0, 16], sizes = [8, 8], strides = [1, 1]} : vector<8x32xf32> to vector<8x8xf32>
    %398 = vector.extract_strided_slice %356 {offsets = [0, 16], sizes = [8, 8], strides = [1, 1]} : vector<8x32xf32> to vector<8x8xf32>
    %399 = tpu.transpose %397, [1, 0] : vector<8x8xf32> -> vector<8x8xf32>
    %cst_150 = arith.constant dense<0.000000e+00> : vector<8x8xf32>
    %400 = tpu.matmul %396, %399, %cst_150 {dimension_numbers = #tpu.dot_dimension_numbers<[1], [0], [0], [1], [0, 0, 1, 1], [], []>} : vector<8x8xf32>, vector<8x8xf32>, vector<8x8xf32> -> vector<8x8xf32>
    %401 = vector.broadcast %357 : vector<1x8xf32> to vector<8x8xf32>
    %402 = arith.addf %400, %401 : vector<8x8xf32>
    %cst_151 = arith.constant dense<0xFF800000> : vector<8xf32>
    %403 = vector.multi_reduction <maximumf>, %402, %cst_151 [1] : vector<8x8xf32> to vector<8xf32>
    %404 = vector.shape_cast %403 : vector<8xf32> to vector<8x1xf32>
    %405 = vector.broadcast %404 : vector<8x1xf32> to vector<8x8xf32>
    %406 = arith.subf %402, %405 : vector<8x8xf32>
    %407 = math.exp %406 : vector<8x8xf32>
    %cst_152 = arith.constant dense<0.000000e+00> : vector<8xf32>
    %408 = vector.multi_reduction <add>, %407, %cst_152 [1] : vector<8x8xf32> to vector<8xf32>
    %409 = vector.shape_cast %408 : vector<8xf32> to vector<8x1xf32>
    %410 = tpu.reciprocal %409 {approx = true} : vector<8x1xf32> -> vector<8x1xf32>
    %411 = vector.broadcast %410 : vector<8x1xf32> to vector<8x8xf32>
    %412 = arith.mulf %407, %411 : vector<8x8xf32>
    %cst_153 = arith.constant dense<0.000000e+00> : vector<8x8xf32>
    %413 = tpu.matmul %412, %398, %cst_153 {dimension_numbers = #tpu.dot_dimension_numbers<[1], [0], [0], [1], [0, 0, 1, 1], [], []>} : vector<8x8xf32>, vector<8x8xf32>, vector<8x8xf32> -> vector<8x8xf32>
    %c8_154 = arith.constant 8 : index
    %c16_155 = arith.constant 16 : index
    %414 = vector.load %arg30[%c8_154, %c16_155] : memref<16x32xf32, #tpu.memory_space<vmem>>, vector<8x8xf32>
    tpu.vector_store %arg30[%c8_154, %c16_155], %413 {strides = array<i32>} : memref<16x32xf32, #tpu.memory_space<vmem>>, vector<8x8xf32>,
    %415 = vector.extract_strided_slice %354 {offsets = [0, 24], sizes = [8, 8], strides = [1, 1]} : vector<8x32xf32> to vector<8x8xf32>
    %416 = vector.extract_strided_slice %355 {offsets = [0, 24], sizes = [8, 8], strides = [1, 1]} : vector<8x32xf32> to vector<8x8xf32>
    %417 = vector.extract_strided_slice %356 {offsets = [0, 24], sizes = [8, 8], strides = [1, 1]} : vector<8x32xf32> to vector<8x8xf32>
    %418 = tpu.transpose %416, [1, 0] : vector<8x8xf32> -> vector<8x8xf32>
    %cst_156 = arith.constant dense<0.000000e+00> : vector<8x8xf32>
    %419 = tpu.matmul %415, %418, %cst_156 {dimension_numbers = #tpu.dot_dimension_numbers<[1], [0], [0], [1], [0, 0, 1, 1], [], []>} : vector<8x8xf32>, vector<8x8xf32>, vector<8x8xf32> -> vector<8x8xf32>
    %420 = vector.broadcast %357 : vector<1x8xf32> to vector<8x8xf32>
    %421 = arith.addf %419, %420 : vector<8x8xf32>
    %cst_157 = arith.constant dense<0xFF800000> : vector<8xf32>
    %422 = vector.multi_reduction <maximumf>, %421, %cst_157 [1] : vector<8x8xf32> to vector<8xf32>
    %423 = vector.shape_cast %422 : vector<8xf32> to vector<8x1xf32>
    %424 = vector.broadcast %423 : vector<8x1xf32> to vector<8x8xf32>
    %425 = arith.subf %421, %424 : vector<8x8xf32>
    %426 = math.exp %425 : vector<8x8xf32>
    %cst_158 = arith.constant dense<0.000000e+00> : vector<8xf32>
    %427 = vector.multi_reduction <add>, %426, %cst_158 [1] : vector<8x8xf32> to vector<8xf32>
    %428 = vector.shape_cast %427 : vector<8xf32> to vector<8x1xf32>
    %429 = tpu.reciprocal %428 {approx = true} : vector<8x1xf32> -> vector<8x1xf32>
    %430 = vector.broadcast %429 : vector<8x1xf32> to vector<8x8xf32>
    %431 = arith.mulf %426, %430 : vector<8x8xf32>
    %cst_159 = arith.constant dense<0.000000e+00> : vector<8x8xf32>
    %432 = tpu.matmul %431, %417, %cst_159 {dimension_numbers = #tpu.dot_dimension_numbers<[1], [0], [0], [1], [0, 0, 1, 1], [], []>} : vector<8x8xf32>, vector<8x8xf32>, vector<8x8xf32> -> vector<8x8xf32>
    %c8_160 = arith.constant 8 : index
    %c24_161 = arith.constant 24 : index
    %433 = vector.load %arg30[%c8_160, %c24_161] : memref<16x32xf32, #tpu.memory_space<vmem>>, vector<8x8xf32>
    tpu.vector_store %arg30[%c8_160, %c24_161], %432 {strides = array<i32>} : memref<16x32xf32, #tpu.memory_space<vmem>>, vector<8x8xf32>,
    %c0_162 = arith.constant 0 : index
    %c0_163 = arith.constant 0 : index
    %434 = vector.load %arg30[%c0_162, %c0_163] : memref<16x32xf32, #tpu.memory_space<vmem>>, vector<16x32xf32>
    %c0_164 = arith.constant 0 : index
    %c0_165 = arith.constant 0 : index
    %435 = vector.load %arg20[%c0_164, %c0_165] : memref<32x32xf32, #tpu.memory_space<vmem>>, vector<32x32xf32>
    %cst_166 = arith.constant dense<0.000000e+00> : vector<16x32xf32>
    %436 = tpu.matmul %434, %435, %cst_166 {dimension_numbers = #tpu.dot_dimension_numbers<[1], [0], [0], [1], [0, 0, 1, 1], [], []>} : vector<16x32xf32>, vector<32x32xf32>, vector<16x32xf32> -> vector<16x32xf32>
    %437 = arith.addf %436, %265 : vector<16x32xf32>
    %c0_167 = arith.constant 0 : index
    %c0_168 = arith.constant 0 : index
    %438 = vector.load %arg21[%c0_167, %c0_168] : memref<1x32xf32, #tpu.memory_space<vmem>>, vector<1x32xf32>
    %c0_169 = arith.constant 0 : index
    %c0_170 = arith.constant 0 : index
    %439 = vector.load %arg22[%c0_169, %c0_170] : memref<1x32xf32, #tpu.memory_space<vmem>>, vector<1x32xf32>
    %cst_171 = arith.constant dense<0.000000e+00> : vector<16xf32>
    %440 = vector.multi_reduction <add>, %437, %cst_171 [1] : vector<16x32xf32> to vector<16xf32>
    %441 = vector.shape_cast %440 : vector<16xf32> to vector<16x1xf32>
    %cst_172 = arith.constant 3.200000e+01 : f32
    %442 = vector.broadcast %cst_172 : f32 to vector<16x1xf32>
    %443 = arith.divf %441, %442 : vector<16x1xf32>
    %444 = vector.broadcast %443 : vector<16x1xf32> to vector<16x32xf32>
    %445 = arith.subf %437, %444 : vector<16x32xf32>
    %446 = arith.mulf %445, %445 : vector<16x32xf32>
    %cst_173 = arith.constant dense<0.000000e+00> : vector<16xf32>
    %447 = vector.multi_reduction <add>, %446, %cst_173 [1] : vector<16x32xf32> to vector<16xf32>
    %448 = vector.shape_cast %447 : vector<16xf32> to vector<16x1xf32>
    %cst_174 = arith.constant 3.200000e+01 : f32
    %449 = vector.broadcast %cst_174 : f32 to vector<16x1xf32>
    %450 = arith.divf %448, %449 : vector<16x1xf32>
    %451 = vector.broadcast %443 : vector<16x1xf32> to vector<16x32xf32>
    %452 = arith.subf %437, %451 : vector<16x32xf32>
    %cst_175 = arith.constant 9.99999997E-7 : f32
    %453 = vector.broadcast %cst_175 : f32 to vector<16x1xf32>
    %454 = arith.addf %450, %453 : vector<16x1xf32>
    %455 = math.rsqrt %454 : vector<16x1xf32>
    %456 = vector.broadcast %455 : vector<16x1xf32> to vector<16x32xf32>
    %457 = arith.mulf %452, %456 : vector<16x32xf32>
    %458 = vector.broadcast %438 : vector<1x32xf32> to vector<16x32xf32>
    %459 = arith.mulf %457, %458 : vector<16x32xf32>
    %460 = vector.broadcast %439 : vector<1x32xf32> to vector<16x32xf32>
    %461 = arith.addf %459, %460 : vector<16x32xf32>
    %c0_176 = arith.constant 0 : index
    %c0_177 = arith.constant 0 : index
    %462 = vector.load %arg23[%c0_176, %c0_177] : memref<32x64xf32, #tpu.memory_space<vmem>>, vector<32x64xf32>
    %cst_178 = arith.constant dense<0.000000e+00> : vector<16x64xf32>
    %463 = tpu.matmul %461, %462, %cst_178 {dimension_numbers = #tpu.dot_dimension_numbers<[1], [0], [0], [1], [0, 0, 1, 1], [], []>} : vector<16x32xf32>, vector<32x64xf32>, vector<16x64xf32> -> vector<16x64xf32>
    %c0_179 = arith.constant 0 : index
    %c0_180 = arith.constant 0 : index
    %464 = vector.load %arg24[%c0_179, %c0_180] : memref<1x64xf32, #tpu.memory_space<vmem>>, vector<1x64xf32>
    %465 = vector.broadcast %464 : vector<1x64xf32> to vector<16x64xf32>
    %466 = arith.addf %463, %465 : vector<16x64xf32>
    %cst_181 = arith.constant 0.000000e+00 : f32
    %467 = vector.broadcast %cst_181 : f32 to vector<16x64xf32>
    %468 = arith.maximumf %466, %467 : vector<16x64xf32>
    %c0_182 = arith.constant 0 : index
    %c0_183 = arith.constant 0 : index
    %469 = vector.load %arg25[%c0_182, %c0_183] : memref<64x32xf32, #tpu.memory_space<vmem>>, vector<64x32xf32>
    %cst_184 = arith.constant dense<0.000000e+00> : vector<16x32xf32>
    %470 = tpu.matmul %468, %469, %cst_184 {dimension_numbers = #tpu.dot_dimension_numbers<[1], [0], [0], [1], [0, 0, 1, 1], [], []>} : vector<16x64xf32>, vector<64x32xf32>, vector<16x32xf32> -> vector<16x32xf32>
    %c0_185 = arith.constant 0 : index
    %c0_186 = arith.constant 0 : index
    %471 = vector.load %arg26[%c0_185, %c0_186] : memref<1x32xf32, #tpu.memory_space<vmem>>, vector<1x32xf32>
    %472 = vector.broadcast %471 : vector<1x32xf32> to vector<16x32xf32>
    %473 = arith.addf %470, %472 : vector<16x32xf32>
    %474 = arith.addf %473, %461 : vector<16x32xf32>
    %c0_187 = arith.constant 0 : index
    %c0_188 = arith.constant 0 : index
    %475 = vector.load %arg27[%c0_187, %c0_188] : memref<1x32xf32, #tpu.memory_space<vmem>>, vector<1x32xf32>
    %c0_189 = arith.constant 0 : index
    %c0_190 = arith.constant 0 : index
    %476 = vector.load %arg28[%c0_189, %c0_190] : memref<1x32xf32, #tpu.memory_space<vmem>>, vector<1x32xf32>
    %cst_191 = arith.constant dense<0.000000e+00> : vector<16xf32>
    %477 = vector.multi_reduction <add>, %474, %cst_191 [1] : vector<16x32xf32> to vector<16xf32>
    %478 = vector.shape_cast %477 : vector<16xf32> to vector<16x1xf32>
    %cst_192 = arith.constant 3.200000e+01 : f32
    %479 = vector.broadcast %cst_192 : f32 to vector<16x1xf32>
    %480 = arith.divf %478, %479 : vector<16x1xf32>
    %481 = vector.broadcast %480 : vector<16x1xf32> to vector<16x32xf32>
    %482 = arith.subf %474, %481 : vector<16x32xf32>
    %483 = arith.mulf %482, %482 : vector<16x32xf32>
    %cst_193 = arith.constant dense<0.000000e+00> : vector<16xf32>
    %484 = vector.multi_reduction <add>, %483, %cst_193 [1] : vector<16x32xf32> to vector<16xf32>
    %485 = vector.shape_cast %484 : vector<16xf32> to vector<16x1xf32>
    %cst_194 = arith.constant 3.200000e+01 : f32
    %486 = vector.broadcast %cst_194 : f32 to vector<16x1xf32>
    %487 = arith.divf %485, %486 : vector<16x1xf32>
    %488 = vector.broadcast %480 : vector<16x1xf32> to vector<16x32xf32>
    %489 = arith.subf %474, %488 : vector<16x32xf32>
    %cst_195 = arith.constant 9.99999997E-7 : f32
    %490 = vector.broadcast %cst_195 : f32 to vector<16x1xf32>
    %491 = arith.addf %487, %490 : vector<16x1xf32>
    %492 = math.rsqrt %491 : vector<16x1xf32>
    %493 = vector.broadcast %492 : vector<16x1xf32> to vector<16x32xf32>
    %494 = arith.mulf %489, %493 : vector<16x32xf32>
    %495 = vector.broadcast %475 : vector<1x32xf32> to vector<16x32xf32>
    %496 = arith.mulf %494, %495 : vector<16x32xf32>
    %497 = vector.broadcast %476 : vector<1x32xf32> to vector<16x32xf32>
    %498 = arith.addf %496, %497 : vector<16x32xf32>
    %c0_196 = arith.constant 0 : index
    %c0_197 = arith.constant 0 : index
    %499 = vector.load %arg29[%c0_196, %c0_197] : memref<16x32xf32, #tpu.memory_space<vmem>>, vector<16x32xf32>
    tpu.vector_store %arg29[%c0_196, %c0_197], %498 {strides = array<i32>} : memref<16x32xf32, #tpu.memory_space<vmem>>, vector<16x32xf32>,
    return
  }
}

</mosaic_0001>

<bundles_post_ra>
// kernel: tpu_custom_call.1
= control target key start
LH: loop header
LB: loop body
LE: loop exit
PB: predicated region body
PF: predicated region fallthrough
CT: control target
= control target key end

     0   :  { %s5323_s6 = smov 1   ;;  %s5324_s10 = smov 2   ;;  %s5993_s0 = inlined_call_operand.smem [shape: u32[30], index: -1, kind: input, shape index: {}] }
   0x1   :  { %s5384_s5 = sld [smem:[%s5993_s0]]   ;;  %s5325_s14 = smov 3  }
   0x2   :  { %s5389_s9 = sld [smem:[%s5993_s0 + %s5323_s6]]   ;;  %s5326_s18 = smov 4  }
   0x3   :  { %s5394_s13 = sld [smem:[%s5993_s0 + %s5324_s10]]   ;;  %s5327_s22 = smov 5  }
   0x4   :  { %s5399_s17 = sld [smem:[%s5993_s0 + %s5325_s14]]   ;;  %s5328_s26 = smov 6  }
   0x5   :  { %s5404_s21 = sld [smem:[%s5993_s0 + %s5326_s18]]   ;;  %s5329_s30 = smov 7  }
   0x6   :  { %s5409_s25 = sld [smem:[%s5993_s0 + %s5327_s22]]   ;;  %s5330_s4 = smov 8  }
   0x7   :  { %s5414_s29 = sld [smem:[%s5993_s0 + %s5328_s26]]   ;;  %s5331_s10 = smov 9  }
   0x8   :  { %s5419_s3 = sld [smem:[%s5993_s0 + %s5329_s30]]   ;;  %s5332_s15 = smov 10  }
   0x9   :  { %s5424_s8 = sld [smem:[%s5993_s0 + %s5330_s4]]   ;;  %s5333_s20 = smov 11  }
   0xa   :  { %s5429_s14 = sld [smem:[%s5993_s0 + %s5331_s10]]   ;;  %s5334_s26 = smov 12  }
   0xb   :  { %s5434_s19 = sld [smem:[%s5993_s0 + %s5332_s15]]   ;;  %s5335_s1 = smov 13  }
   0xc   :  { %6003 = sst [smem:[#allocation36_spill]] %s5409_s25  ;;  %s5336_s7 = smov 14  }
   0xd   :  { %6004 = sst [smem:[#allocation37_spill]] %s5414_s29  ;;  %s5337_s15 = smov 15  }
   0xe   :  { %6005 = sst [smem:[#allocation38_spill]] %s5419_s3  ;;  %s5338_s22 = smov 16  }
   0xf   :  { %6006 = sst [smem:[#allocation39_spill]] %s5424_s8  ;;  %s5339_s28 = smov 17  }
  0x10   :  { %s5439_s24 = sld [smem:[%s5993_s0 + %s5333_s20]]  }
  0x11   :  { %s5444_s30 = sld [smem:[%s5993_s0 + %s5334_s26]]  }
  0x12   :  { %s5449_s6 = sld [smem:[%s5993_s0 + %s5335_s1]]  }
  0x13   :  { %s5454_s12 = sld [smem:[%s5993_s0 + %s5336_s7]]   ;;  %s5340_s7 = smov 18  }
  0x14   :  { %s5459_s20 = sld [smem:[%s5993_s0 + %s5337_s15]]   ;;  %s5341_s15 = smov 19  }
  0x15   :  { %s5464_s27 = sld [smem:[%s5993_s0 + %s5338_s22]]   ;;  %s5342_s22 = smov 20  }
  0x16   :  { %6007 = sst [smem:[#allocation40_spill]] %s5439_s24 }
  0x17   :  { %s5469_s4 = sld [smem:[%s5993_s0 + %s5339_s28]]   ;;  %s5343_s28 = smov 21  }
  0x18   :  { %6008 = sst [smem:[#allocation41_spill]] %s5449_s6 }
  0x19   :  { %s5474_s6 = sld [smem:[%s5993_s0 + %s5340_s7]]   ;;  %s5344_s7 = smov 22  }
  0x1a   :  { %s5479_s24 = sld [smem:[%s5993_s0 + %s5341_s15]]   ;;  %s5345_s15 = smov 23  }
  0x1b   :  { %s5484_s8 = sld [smem:[%s5993_s0 + %s5342_s22]]   ;;  %s5346_s22 = smov 24  }
  0x1c   :  { %s5499_s29 = sld [smem:[%s5993_s0 + %s5345_s15]]   ;;  %s5349_s15 = smov 27  }
  0x1d   :  { %6009 = sst [smem:[#allocation42_spill]] %s5469_s4 }
  0x1e   :  { %s5489_s4 = sld [smem:[%s5993_s0 + %s5343_s28]]   ;;  %s5347_s28 = smov 25  }
  0x1f   :  { %6010 = sst [smem:[#allocation43_spill]] %s5474_s6 }
  0x20   :  { %s5494_s6 = sld [smem:[%s5993_s0 + %s5344_s7]]   ;;  %s5348_s7 = smov 26  }
  0x21   :  { %s5504_s3 = sld [smem:[%s5993_s0 + %s5346_s22]]   ;;  %s5350_s22 = smov 28  }
  0x22   :  { %s5519_s25 = sld [smem:[%s5993_s0 + %s5349_s15]]  }
  0x24   :  { %6011 = sst [smem:[#allocation44_spill]] %s5489_s4 }
  0x25   :  { %s5509_s4 = sld [smem:[%s5993_s0 + %s5347_s28]]   ;;  %s5351_s28 = smov 29  }
  0x26   :  { %6012 = sst [smem:[#allocation45_spill]] %s5494_s6 }
  0x27   :  { %6013 = sst [smem:[#allocation46_spill]] %s5504_s3 }
  0x28   :  { %s5514_s6 = sld [smem:[%s5993_s0 + %s5348_s7]]  }
  0x29   :  { %s5524_s3 = sld [smem:[%s5993_s0 + %s5350_s22]]  }
  0x2b   :  { %6014 = sst [smem:[#allocation47_spill]] %s5509_s4 }
  0x2c   :  { %s5529_s4 = sld [smem:[%s5993_s0 + %s5351_s28]]  }
  0x2d   :  { %64 = vsyncpa [#allocation4], 0 }
  0x2e   :  { %65 = vsyncpa [#allocation7], 0 }
  0x2f   :  { %66 = vsyncpa [#allocation10], 0 }
  0x30   :  { %67 = vsyncpa [#allocation13], 0 }
  0x31   :  { %68 = vsyncpa [#allocation16], 0 }
  0x32   :  { %69 = vsyncpa [#allocation19], 0 }
  0x33   :  { %70 = vsyncpa [#allocation22], 0 }
  0x34   :  { %71 = vsyncpa [#allocation25], 0 }
  0x35   :  { %72 = vsyncpa [#allocation5], 0  ;;  %s5352_s7 = smov [#allocation6]   ;;  %s5353_s11 = smov [#allocation9]  }
  0x36   :  { %s91_s10 = sshll.u32 %s5352_s7, 4  ;;  %s113_s15 = sshll.u32 %s5353_s11, 4  ;;  %s92_s10 = int_to_ptr.vmem [resolvable:$true] %s91_s10  ;;  %s114_s15 = int_to_ptr.vmem [resolvable:$true] %s113_s15 }
  0x37   :  { %s5013_s16 = scalar_lea.vmem %s92_s10, 32  ;;  %p5018_p1 = scmp.lt.s32.totalorder %s92_s10, %s92_s10 }
  0x38   :  { %p5014_p0 = scmp.ne.s32.totalorder %s92_s10, %s5013_s16  ;;  %p5019_p2 = scmp.lt.s32.totalorder %s5013_s16, %s5013_s16 }
  0x3a   :  { %p5020_p3 = por %p5019_p2, %p5018_p1 }
  0x3c   :  { %p5021_p4 = pnand %p5020_p3, %p5014_p0 }
  0x3e   :  { %5024 = shalt.err (!%p5021_p4)
}
  0x3f   :  { %94 = dma.hbm_to_vmem [thread:$0]  %s5389_s9, 32, %s92_s10, [#allocation7]  }
  0x40   :  { %s5033_s0 = scalar_lea.vmem %s114_s15, 16  ;;  %s5037_s18 = scalar_lea.vmem %s114_s15, 32 }
  0x41   :  { %p5034_p5 = scmp.ne.s32.totalorder %s114_s15, %s5033_s0  ;;  %p5038_p6 = scmp.lt.s32.totalorder %s114_s15, %s114_s15 }
  0x42   :  { %p5039_p7 = scmp.lt.s32.totalorder %s5037_s18, %s5033_s0 }
  0x44   :  { %p5040_p8 = por %p5039_p7, %p5038_p6 }
  0x46   :  { %p5041_p9 = pnand %p5040_p8, %p5034_p5 }
  0x48   :  { %5044 = shalt.err (!%p5041_p9)
}
  0x49   :  { %116 = dma.hbm_to_vmem [thread:$0]  %s5399_s17, 16, %s114_s15, [#allocation10]  }
  0x4a   :  { %s5354_s22 = smov [#allocation12]   ;;  %s5355_s26 = smov [#allocation15]  }
  0x4b   :  { %s141_s23 = sshll.u32 %s5354_s22, 4  ;;  %s163_s28 = sshll.u32 %s5355_s26, 4  ;;  %s142_s23 = int_to_ptr.vmem [resolvable:$true] %s141_s23  ;;  %s164_s28 = int_to_ptr.vmem [resolvable:$true] %s163_s28 }
  0x4c   :  { %s5053_s1 = scalar_lea.vmem %s142_s23, 16  ;;  %s5057_s2 = scalar_lea.vmem %s142_s23, 32 }
  0x4d   :  { %p5054_p10 = scmp.ne.s32.totalorder %s142_s23, %s5053_s1  ;;  %p5058_p11 = scmp.lt.s32.totalorder %s142_s23, %s142_s23 }
  0x4e   :  { %p5059_p12 = scmp.lt.s32.totalorder %s5057_s2, %s5053_s1 }
  0x50   :  { %p5060_p13 = por %p5059_p12, %p5058_p11 }
  0x52   :  { %p5061_p0 = pnand %p5060_p13, %p5054_p10 }
  0x54   :  { %5064 = shalt.err (!%p5061_p0)
}
  0x55   :  { %144 = dma.hbm_to_vmem [thread:$0]  %s5429_s14, 16, %s142_s23, [#allocation13]  }
  0x56   :  { %s5073_s9 = scalar_lea.vmem %s164_s28, 16  ;;  %s5077_s7 = scalar_lea.vmem %s164_s28, 32 }
  0x57   :  { %p5074_p1 = scmp.ne.s32.totalorder %s164_s28, %s5073_s9  ;;  %p5078_p2 = scmp.lt.s32.totalorder %s164_s28, %s164_s28 }
  0x58   :  { %p5079_p3 = scmp.lt.s32.totalorder %s5077_s7, %s5073_s9 }
  0x5a   :  { %p5080_p4 = por %p5079_p3, %p5078_p2 }
  0x5c   :  { %p5081_p5 = pnand %p5080_p4, %p5074_p1 }
  0x5e   :  { %5084 = shalt.err (!%p5081_p5)
}
  0x5f   :  { %166 = dma.hbm_to_vmem [thread:$0]  %s5444_s30, 16, %s164_s28, [#allocation16]  }
  0x60   :  { %s5356_s17 = smov [#allocation18]  }
  0x61   :  { %s185_s10 = sshll.u32 %s5356_s17, 4  ;;  %s186_s10 = int_to_ptr.vmem [resolvable:$true] %s185_s10 }
  0x62   :  { %s5093_s11 = scalar_lea.vmem %s186_s10, 16  ;;  %s5097_s15 = scalar_lea.vmem %s186_s10, 32 }
  0x63   :  { %p5094_p6 = scmp.ne.s32.totalorder %s186_s10, %s5093_s11  ;;  %p5098_p7 = scmp.lt.s32.totalorder %s186_s10, %s186_s10 }
  0x64   :  { %p5099_p8 = scmp.lt.s32.totalorder %s5097_s15, %s5093_s11 }
  0x66   :  { %p5100_p9 = por %p5099_p8, %p5098_p7 }
  0x68   :  { %p5101_p10 = pnand %p5100_p9, %p5094_p6 }
  0x6a   :  { %5104 = shalt.err (!%p5101_p10)
}
  0x6b   :  { %188 = dma.hbm_to_vmem [thread:$0]  %s5459_s20, 16, %s186_s10, [#allocation19]  }
  0x6c   :  { %s5357_s14 = smov [#allocation21]   ;;  %s5358_s0 = smov [#allocation3]  }
  0x6d   :  { %s208_s16 = sshll.u32 %s5357_s14, 4  ;;  %s78_s18 = sshll.u32 %s5358_s0, 4  ;;  %s209_s16 = int_to_ptr.vmem [resolvable:$true] %s208_s16  ;;  %s79_s18 = int_to_ptr.vmem [resolvable:$true] %s78_s18 }
  0x6e   :  { %s5113_s22 = scalar_lea.vmem %s209_s16, 512  ;;  %p5118_p12 = scmp.lt.s32.totalorder %s209_s16, %s209_s16 }
  0x6f   :  { %p5114_p11 = scmp.ne.s32.totalorder %s209_s16, %s5113_s22  ;;  %p5119_p13 = scmp.lt.s32.totalorder %s5113_s22, %s5113_s22 }
  0x71   :  { %p5120_p0 = por %p5119_p13, %p5118_p12 }
  0x73   :  { %p5121_p1 = pnand %p5120_p0, %p5114_p11 }
  0x75   :  { %5124 = shalt.err (!%p5121_p1)
}
  0x76   :  { %s5359_s30 = smov 128   ;;  %s5360_s23 = smov 8  }
  0x77   :  { %214 = dma.hbm_to_vmem [thread:$0]  %s5479_s24, 512, %s209_s16, [#allocation22], %s5359_s30, %s5359_s30, %s5360_s23  }
  0x78   :  { %s5133_s20 = scalar_lea.vmem %s79_s18, 256  ;;  %p5138_p3 = scmp.lt.s32.totalorder %s79_s18, %s79_s18 }
  0x79   :  { %p5134_p2 = scmp.ne.s32.totalorder %s79_s18, %s5133_s20  ;;  %p5139_p4 = scmp.lt.s32.totalorder %s5133_s20, %s5133_s20 }
  0x7b   :  { %p5140_p5 = por %p5139_p4, %p5138_p3 }
  0x7d   :  { %p5141_p6 = pnand %p5140_p5, %p5134_p2 }
  0x7f   :  { %5144 = shalt.err (!%p5141_p6)
}
  0x80   :  { %84 = dma.hbm_to_vmem [thread:$0]  %s5384_s5, 256, %s79_s18, [#allocation4], %s5359_s30, %s5359_s30, %s5360_s23  }
  0x81   :  { %s5361_s26 = smov [#allocation8]   ;;  %s5362_s1 = smov [#allocation11]  }
  0x82   :  { %s100_s28 = sshll.u32 %s5361_s26, 4  ;;  %s123_s2 = sshll.u32 %s5362_s1, 4  ;;  %s101_s28 = int_to_ptr.vmem [resolvable:$true] %s100_s28  ;;  %s124_s2 = int_to_ptr.vmem [resolvable:$true] %s123_s2 }
  0x83   :  { %s5153_s9 = scalar_lea.vmem %s101_s28, 256  ;;  %p5158_p8 = scmp.lt.s32.totalorder %s101_s28, %s101_s28 }
  0x84   :  { %p5154_p7 = scmp.ne.s32.totalorder %s101_s28, %s5153_s9  ;;  %p5159_p9 = scmp.lt.s32.totalorder %s5153_s9, %s5153_s9 }
  0x86   :  { %p5160_p10 = por %p5159_p9, %p5158_p8 }
  0x88   :  { %p5161_p11 = pnand %p5160_p10, %p5154_p7 }
  0x8a   :  { %5164 = shalt.err (!%p5161_p11)
}
  0x8b   :  { %106 = dma.hbm_to_vmem [thread:$0]  %s5394_s13, 256, %s101_s28, [#allocation7], %s5359_s30, %s5359_s30, %s5360_s23  }
  0x8c   :  { %s5173_s24 = scalar_lea.vmem %s124_s2, 16  ;;  %s5177_s5 = scalar_lea.vmem %s124_s2, 32 }
  0x8d   :  { %p5174_p12 = scmp.ne.s32.totalorder %s124_s2, %s5173_s24  ;;  %p5178_p13 = scmp.lt.s32.totalorder %s124_s2, %s124_s2 }
  0x8e   :  { %p5179_p0 = scmp.lt.s32.totalorder %s5177_s5, %s5173_s24 }
  0x90   :  { %p5180_p1 = por %p5179_p0, %p5178_p13 }
  0x92   :  { %p5181_p2 = pnand %p5180_p1, %p5174_p12 }
  0x94   :  { %5184 = shalt.err (!%p5181_p2)
}
  0x95   :  { %126 = dma.hbm_to_vmem [thread:$0]  %s5404_s21, 16, %s124_s2, [#allocation10]  }
  0x96   :  { %s5363_s7 = smov [#allocation14]   ;;  %s5364_s10 = smov [#allocation17]  }
  0x97   :  { %s151_s17 = sshll.u32 %s5363_s7, 4  ;;  %s175_s11 = sshll.u32 %s5364_s10, 4  ;;  %s152_s17 = int_to_ptr.vmem [resolvable:$true] %s151_s17  ;;  %s176_s11 = int_to_ptr.vmem [resolvable:$true] %s175_s11 }
  0x98   :  { %s5193_s15 = scalar_lea.vmem %s152_s17, 16  ;;  %s5197_s14 = scalar_lea.vmem %s152_s17, 32 }
  0x99   :  { %p5194_p3 = scmp.ne.s32.totalorder %s152_s17, %s5193_s15  ;;  %p5198_p4 = scmp.lt.s32.totalorder %s152_s17, %s152_s17 }
  0x9a   :  { %p5199_p5 = scmp.lt.s32.totalorder %s5197_s14, %s5193_s15 }
  0x9c   :  { %p5200_p6 = por %p5199_p5, %p5198_p4 }
  0x9e   :  { %p5201_p7 = pnand %p5200_p6, %p5194_p3 }
  0xa0   :  { %5204 = shalt.err (!%p5201_p7)
}
  0xa1   :  { %154 = dma.hbm_to_vmem [thread:$0]  %s5434_s19, 16, %s152_s17, [#allocation13]  }
  0xa2   :  { %s5213_s13 = scalar_lea.vmem %s176_s11, 16  ;;  %s5217_s16 = scalar_lea.vmem %s176_s11, 32 }
  0xa3   :  { %p5214_p8 = scmp.ne.s32.totalorder %s176_s11, %s5213_s13  ;;  %p5218_p9 = scmp.lt.s32.totalorder %s176_s11, %s176_s11 }
  0xa4   :  { %p5219_p10 = scmp.lt.s32.totalorder %s5217_s16, %s5213_s13 }
  0xa6   :  { %p5220_p11 = por %p5219_p10, %p5218_p9 }
  0xa8   :  { %p5221_p12 = pnand %p5220_p11, %p5214_p8 }
  0xaa   :  { %5224 = shalt.err (!%p5221_p12)
}
  0xab   :  { %178 = dma.hbm_to_vmem [thread:$0]  %s5454_s12, 16, %s176_s11, [#allocation16]  }
  0xac   :  { %s5365_s21 = smov [#allocation20]   ;;  %s5366_s18 = smov [#allocation23]  }
  0xad   :  { %s195_s0 = sshll.u32 %s5365_s21, 4  ;;  %s220_s22 = sshll.u32 %s5366_s18, 4  ;;  %s196_s0 = int_to_ptr.vmem [resolvable:$true] %s195_s0  ;;  %s221_s22 = int_to_ptr.vmem [resolvable:$true] %s220_s22 }
  0xae   :  { %s5233_s20 = scalar_lea.vmem %s196_s0, 16  ;;  %s5237_s26 = scalar_lea.vmem %s196_s0, 32 }
  0xaf   :  { %p5234_p13 = scmp.ne.s32.totalorder %s196_s0, %s5233_s20  ;;  %p5238_p0 = scmp.lt.s32.totalorder %s196_s0, %s196_s0 }
  0xb0   :  { %p5239_p1 = scmp.lt.s32.totalorder %s5237_s26, %s5233_s20 }
  0xb2   :  { %p5240_p2 = por %p5239_p1, %p5238_p0 }
  0xb4   :  { %p5241_p3 = pnand %p5240_p2, %p5234_p13 }
  0xb6   :  { %5244 = shalt.err (!%p5241_p3)
}
  0xb7   :  { %198 = dma.hbm_to_vmem [thread:$0]  %s5464_s27, 16, %s196_s0, [#allocation19]  }
  0xb8   :  { %s5253_s19 = scalar_lea.vmem %s221_s22, 512  ;;  %p5258_p5 = scmp.lt.s32.totalorder %s221_s22, %s221_s22 }
  0xb9   :  { %p5254_p4 = scmp.ne.s32.totalorder %s221_s22, %s5253_s19  ;;  %p5259_p6 = scmp.lt.s32.totalorder %s5253_s19, %s5253_s19 }
  0xbb   :  { %p5260_p7 = por %p5259_p6, %p5258_p5 }
  0xbd   :  { %p5261_p8 = pnand %p5260_p7, %p5254_p4 }
  0xbf   :  { %5264 = shalt.err (!%p5261_p8)
}
  0xc0   :  { %226 = dma.hbm_to_vmem [thread:$0]  %s5484_s8, 512, %s221_s22, [#allocation22], %s5359_s30, %s5359_s30, %s5360_s23  }
  0xc1   :  { %s5367_s12 = smov [#allocation24]  }
  0xc2   :  { %s236_s28 = sshll.u32 %s5367_s12, 4  ;;  %s237_s28 = int_to_ptr.vmem [resolvable:$true] %s236_s28 }
  0xc3   :  { %s5273_s1 = scalar_lea.vmem %s237_s28, 512  ;;  %p5278_p10 = scmp.lt.s32.totalorder %s237_s28, %s237_s28 }
  0xc4   :  { %p5274_p9 = scmp.ne.s32.totalorder %s237_s28, %s5273_s1  ;;  %p5279_p11 = scmp.lt.s32.totalorder %s5273_s1, %s5273_s1 }
  0xc6   :  { %p5280_p12 = por %p5279_p11, %p5278_p10 }
  0xc8   :  { %p5281_p13 = pnand %p5280_p12, %p5274_p9 }
  0xca   :  { %5284 = shalt.err (!%p5281_p13)
}
  0xcb   :  { %242 = dma.hbm_to_vmem [thread:$0]  %s5499_s29, 512, %s237_s28, [#allocation25], %s5359_s30, %s5359_s30, %s5360_s23  }
  0xcc   :  { %5305 = dma.done.wait [#allocation4], 256  }
  0xcd   :  { %5306 = vsyncadd [#allocation4], 4294967040 }
  0xce   :  { %5307 = dma.done.wait [#allocation7], 288  }
  0xcf   :  { %5308 = vsyncadd [#allocation7], 4294967008 }
  0xd0   :  { %5309 = dma.done.wait [#allocation10], 32  }
  0xd1   :  { %5310 = vsyncadd [#allocation10], 4294967264 }
  0xd2   :  { %5311 = dma.done.wait [#allocation13], 32  }
  0xd3   :  { %5312 = vsyncadd [#allocation13], 4294967264 }
  0xd4   :  { %5313 = dma.done.wait [#allocation16], 32  }
  0xd5   :  { %5314 = vsyncadd [#allocation16], 4294967264 }
  0xd6   :  { %5315 = dma.done.wait [#allocation19], 32  }
  0xd7   :  { %5316 = vsyncadd [#allocation19], 4294967264 }
  0xd8   :  { %5317 = dma.done.wait [#allocation22], 1024  }
  0xd9   :  { %5318 = vsyncadd [#allocation22], 4294966272 }
  0xda   :  { %5319 = dma.done.wait [#allocation25], 512  }
  0xdb   :  { %5320 = vsyncadd [#allocation25], 4294966784  ;;  %v295_v0 = vld [vmem:[#allocation3] sm:$0xff]  ;;  %v297_v1 = vld [vmem:[#allocation8] sm:$0xff]  ;;  %vm303_vm0 = vcmask 261120   ;;  %s6015_s29 = sld [smem:[#allocation36_spill]] }
  0xdc   :  { %v296_v2 = vld [vmem:[#allocation3 + $0x8] sm:$0xff]  ;;  %v299_v3 = vadd.f32 %v297_v1, %v295_v0  ;;  %v298_v4 = vld [vmem:[#allocation8 + $0x8] sm:$0xff]  ;;  %s6016_s8 = sld [smem:[#allocation38_spill]]  ;;  %v4330_v34 = vld [vmem:[#allocation9] ss:$0 sm:$0xff]  ;;  %v5368_v46 = vmov 0.0  }
  0xdd   :  { %v300_v5 = vadd.f32 %v298_v4, %v296_v2  ;;  %s6017_s27 = sld [smem:[#allocation37_spill]]  ;;  %v4331_v36 = vld [vmem:[#allocation11] ss:$0 sm:$0xff]  ;;  %vm5369_vm1 = vmmov 0   ;;  %s5370_s2 = smov 120   ;;  %vm599_vm2 = vcmask 64512  }
  0xde   :  { %v304_v6 = vsel %vm303_vm0, %v299_v3, 0.0  ;;  %s5371_s9 = smov 112   ;;  %s5372_s24 = smov 104   ;;  %v347_v4 = vld [vmem:[#allocation6] sm:$0x3]  ;;  %vm931_vm4 = vcmask 130112  }
  0xdf   :  { %305 = vadd.xlane.f32.xlu0 %v304_v6  ;;  %v307_v7 = vsel %vm303_vm0, %v300_v5, 0.0  ;;  %vm348_vm3 = vcmp.eq.s32.totalorder %v347_v4, 0  ;;  %s6018_s5 = sld [smem:[#allocation39_spill]]  ;;  %s5373_s7 = smov 16   ;;  %vm1102_vm5 = vcmask 195712   ;;  %vm1273_vm6 = vcmask 261312  }
  0xe0   :  { %s5374_s17 = smov 24   ;;  %s6019_s10 = sld [smem:[#allocation40_spill]]  ;;  %vm2191_vm7 = vcmask 523264  }
  0xe1   :  { %v353_v18 = vld [vmem:[%s6015_s29 + $0x18] sm:$0xff]  ;;  %v352_v20 = vld [vmem:[%s6015_s29 + $0x10] sm:$0xff]  ;;  %v351_v22 = vld [vmem:[%s6015_s29 + $0x8] sm:$0xff]  ;;  %s6020_s11 = sld [smem:[#allocation41_spill]] }
  0xe2   :  { %v519_v19 = vld [vmem:[%s6016_s8 + $0x18] sm:$0xff]  ;;  %4560 = vmatprep.subr.mxu1 %v353_v18  ;;  %v518_v21 = vld [vmem:[%s6016_s8 + $0x10] sm:$0xff]  ;;  %v517_v23 = vld [vmem:[%s6016_s8 + $0x8] sm:$0xff]  ;;  %s6021_s15 = sld [smem:[#allocation42_spill]] }
  0xe3   :  { %308 = vadd.xlane.f32.xlu0 %v307_v7  ;;  %4582 = vmatprep.subr.mxu0 %v519_v19  ;;  %v350_v24 = vld [vmem:[%s6015_s29] sm:$0xff]  ;;  %v440_v26 = vld [vmem:[%s6017_s27 + $0x18] sm:$0xff]  ;;  %v439_v43 = vld [vmem:[%s6017_s27 + $0x10] sm:$0xff]  ;;  %v349_v7 = vsel %vm348_vm3, -1e+09, %v5368_v46  ;;  %s6022_s14 = sld [smem:[#allocation43_spill]] }
  0xe4   :  { %4561 = vmatpush3.msra.mxu1 %v353_v18  ;;  %4583 = vmatpush3.msra.mxu0 %v519_v19  ;;  %v516_v25 = vld [vmem:[%s6016_s8] sm:$0xff]  ;;  %v438_v44 = vld [vmem:[%s6017_s27 + $0x8] sm:$0xff]  ;;  %s6023_s13 = sld [smem:[#allocation47_spill]] }
  0xe5   :  { %4562 = vmatprep.subr.mxu1 %v352_v20  ;;  %4584 = vmatprep.subr.mxu0 %v518_v21  ;;  %v437_v45 = vld [vmem:[%s6017_s27] sm:$0xff]  ;;  %s6024_s16 = sld [smem:[#allocation44_spill]] }
  0xe6   :  { %4563 = vmatpush3.msra.mxu1 %v352_v20  ;;  %4585 = vmatpush3.msra.mxu0 %v518_v21  ;;  %s6025_s21 = sld [smem:[#allocation45_spill]] }
  0xe7   :  { %4564 = vmatprep.subr.mxu1 %v351_v22  ;;  %4586 = vmatprep.subr.mxu0 %v517_v23  ;;  %s6026_s0 = sld [smem:[#allocation46_spill]] }
  0xe8   :  { %4565 = vmatpush3.msra.mxu1 %v351_v22  ;;  %4587 = vmatpush3.msra.mxu0 %v517_v23 }
  0xe9   :  { %4566 = vmatprep.subr.mxu1 %v350_v24  ;;  %4588 = vmatprep.subr.mxu0 %v516_v25 }
  0xea   :  { %4567 = vmatpush3.msra.mxu1 %v350_v24  ;;  %4589 = vmatpush3.msra.mxu0 %v516_v25 }
  0xeb   :  { %4571 = vmatprep.subr.mxu1 %v440_v26  ;;  %4603 = vmatprep.subr.mxu0 %v5368_v46 }
 0x168   :  { %v306_v8 = vpop.xlane.xlu0 %305 }
 0x169   :  { %v311_v9 = vmul.f32 0.03125, %v306_v8 }
 0x16b   :  { %v313_v10 = vsub.f32 %v299_v3, %v311_v9  ;;  %v595_v3 = vlaneseq }
 0x16c   :  { %v309_v11 = vpop.xlane.xlu0 %308 }
 0x16d   :  { %v312_v12 = vmul.f32 0.03125, %v309_v11  ;;  %v315_v13 = vmul.f32 %v313_v10, %v313_v10 }
 0x16f   :  { %v314_v14 = vsub.f32 %v300_v5, %v312_v12  ;;  %v317_v15 = vsel %vm303_vm0, %v315_v13, 0.0  ;;  %v596_v5 = vshrl.u32 %v595_v3, 7 }
 0x170   :  { %318 = vadd.xlane.f32.xlu1 %v317_v15 }
 0x171   :  { %v316_v16 = vmul.f32 %v314_v14, %v314_v14  ;;  %v597_v6 = vsub.s32 0, %v596_v5  ;;  %v1277_v19 = vsub.s32 1, %v596_v5 }
 0x173   :  { %v320_v17 = vsel %vm303_vm0, %v316_v16, 0.0  ;;  %v5654_v8 = vrot.slane %v349_v7, %v597_v6  ;;  %v5663_v24 = vrot.slane %v349_v7, %v1277_v19 }
 0x174   :  { %321 = vadd.xlane.f32.xlu1 %v320_v17 }
 0x1f9   :  { %v319_v27 = vpop.xlane.xlu1 %318 }
 0x1fa   :  { %v323_v28 = vmul.f32 0.03125, %v319_v27 }
 0x1fc   :  { %v325_v29 = vadd.f32 1e-06, %v323_v28 }
 0x1fd   :  { %v322_v30 = vpop.xlane.xlu1 %321 }
 0x1fe   :  { %4921 = vrsqrt.f32 %v325_v29  ;;  %v324_v31 = vmul.f32 0.03125, %v322_v30 }
 0x200   :  { %v326_v32 = vadd.f32 1e-06, %v324_v31 }
 0x202   :  { %4923 = vrsqrt.f32 %v326_v32 }
 0x20b   :  { %v4922_v33 = vpop.eup %4921 }
 0x20c   :  { %v329_v35 = vmul.f32 %v4922_v33, %v313_v10 }
 0x20e   :  { %v337_v37 = vmul.f32 %v4330_v34, %v329_v35 }
 0x20f   :  { %v4924_v38 = vpop.eup %4923 }
 0x210   :  { %v5573_v39 = vadd.f32 %v4331_v36, %v337_v37  ;;  %v330_v40 = vmul.f32 %v4924_v38, %v314_v14 }
 0x212   :  { %4568 = vmatprep.mubr.msk.f32.mxu1 %vm303_vm0, %v5573_v39  ;;  %4590 = vmatprep.mubr.msk.f32.mxu0 %vm303_vm0, %v5573_v39  ;;  %v338_v41 = vmul.f32 %v4330_v34, %v330_v40 }
 0x214   :  { %v5579_v42 = vadd.f32 %v4331_v36, %v338_v41 }
 0x216   :  { %4569 = vmatmul.mubr.msk.f32.vlgmr.msra.gmra.mxu1 %vm303_vm0, %v5579_v42  ;;  %4591 = vmatmul.mubr.msk.f32.vlgmr.msra.gmra.mxu0 %vm303_vm0, %v5579_v42 }
 0x217   :  { %4572 = vmatpush3.msra.mxu1 %v440_v26  ;;  %4579 = vmatprep.mubr.msk.f32.mxu1 %vm303_vm0, %v5573_v39 }
 0x218   :  { %4573 = vmatprep.subr.mxu1 %v439_v43  ;;  %4605 = vmatprep.mubr.msk.f32.mxu0 %vm5369_vm1, %v5368_v46 }
 0x219   :  { %4574 = vmatpush3.msra.mxu1 %v439_v43 }
 0x21a   :  { %4575 = vmatprep.subr.mxu1 %v438_v44 }
 0x21b   :  { %4576 = vmatpush3.msra.mxu1 %v438_v44 }
 0x21c   :  { %4577 = vmatprep.subr.mxu1 %v437_v45 }
 0x21d   :  { %4578 = vmatpush3.msra.mxu1 %v437_v45 }
 0x21e   :  { %4580 = vmatmul.mubr.msk.f32.vlgmr.msra.gmra.mxu1 %vm303_vm0, %v5579_v42  ;;  %4593 = vmatprep.subr.mxu1 %v5368_v46 }
 0x21f   :  { %4595 = vmatprep.mubr.msk.f32.mxu1 %vm5369_vm1, %v5368_v46 }
 0x2d6   :  { %v4570_v47 = vpop.f32.mrf.mxu1  ;;  %v5599_v51 = vpop.f32.mrf.mxu0 }
 0x2d7   :  { %v436_v54 = vmul.f32 0.35355338, %v4570_v47 }
 0x2d8   :  { %v426_v48 = vpop.f32.mrf.mxu1  ;;  %v5605_v53 = vpop.f32.mrf.mxu0 }
 0x2d9   :  { %v435_v49 = vmul.f32 0.35355338, %v426_v48 }
 0x2db   :  { %761 = vrot.lane.b32.xlu1 %v435_v49, %s5370_s2 }
 0x2de   :  { %v4581_v50 = vpop.f32.mrf.mxu1 }
 0x2e0   :  { %v507_v52 = vpop.f32.mrf.mxu1 }
 0x2e1   :  { %763 = vrot.lane.b32.xlu0 %v507_v52, %s5370_s2  ;;  %4594 = vmatpush3.xpose.msk.msra.mxu1 %vm599_vm2, %v507_v52 }
 0x2e2   :  { %935 = vrot.lane.b32.xlu1 %v507_v52, %s5371_s9  ;;  %4598 = vmatprep.subr.mxu1 %v5368_v46 }
 0x2e4   :  { %4596 = vmatmul.mubr.msk.f32.vlgmr.msra.gmra.mxu1 %vm599_vm2, %v435_v49 }
 0x2e5   :  { %1106 = vrot.lane.b32.xlu0 %v507_v52, %s5372_s24  ;;  %4599 = vmatpush3.msra.mxu1 %v5605_v53 }
 0x2e6   :  { %933 = vrot.lane.b32.xlu1 %v435_v49, %s5371_s9  ;;  %4600 = vmatprep.mubr.msk.f32.mxu1 %vm5369_vm1, %v5368_v46 }
 0x2e7   :  { %4608 = vmatprep.subr.mxu1 %v5368_v46 }
 0x2e9   :  { %1442 = vrot.lane.b32.xlu0 %v4581_v50, %s5370_s2 }
 0x2ea   :  { %1104 = vrot.lane.b32.xlu1 %v435_v49, %s5372_s24 }
 0x2ed   :  { %1613 = vrot.lane.b32.xlu0 %v4581_v50, %s5371_s9 }
 0x2ee   :  { %1440 = vrot.lane.b32.xlu1 %v436_v54, %s5370_s2 }
 0x2f1   :  { %1783 = vrot.lane.b32.xlu0 %v4581_v50, %s5372_s24 }
 0x2f2   :  { %1611 = vrot.lane.b32.xlu1 %v436_v54, %s5371_s9 }
 0x2f6   :  { %1781 = vrot.lane.b32.xlu1 %v436_v54, %s5372_s24 }
 0x34d   :  { %v762_v55 = vpop.permute.xlu1 %761 }
 0x353   :  { %v764_v56 = vpop.permute.xlu0 %763 }
 0x354   :  { %v936_v57 = vpop.permute.xlu1 %935  ;;  %4604 = vmatpush3.xpose.msk.msra.mxu0 %vm599_vm2, %v764_v56 }
 0x355   :  { %4613 = vmatprep.subr.mxu0 %v5368_v46 }
 0x357   :  { %4606 = vmatmul.mubr.msk.f32.vlgmr.msra.gmra.mxu0 %vm599_vm2, %v762_v55  ;;  %v1107_v59 = vpop.permute.xlu0 %1106 }
 0x358   :  { %v934_v58 = vpop.permute.xlu1 %933  ;;  %4614 = vmatpush3.xpose.msk.msra.mxu0 %vm599_vm2, %v936_v57  ;;  %4615 = vmatprep.mubr.msk.f32.mxu0 %vm5369_vm1, %v5368_v46 }
 0x359   :  { %4623 = vmatprep.subr.mxu0 %v5368_v46 }
 0x35b   :  { %4616 = vmatmul.mubr.msk.f32.vlgmr.msra.gmra.mxu0 %vm599_vm2, %v934_v58  ;;  %v1443_v61 = vpop.permute.xlu0 %1442 }
 0x35c   :  { %v1105_v60 = vpop.permute.xlu1 %1104  ;;  %4624 = vmatpush3.xpose.msk.msra.mxu0 %vm599_vm2, %v1107_v59  ;;  %4625 = vmatprep.mubr.msk.f32.mxu0 %vm5369_vm1, %v5368_v46 }
 0x35d   :  { %4633 = vmatprep.subr.mxu0 %v5368_v46 }
 0x35f   :  { %4626 = vmatmul.mubr.msk.f32.vlgmr.msra.gmra.mxu0 %vm599_vm2, %v1105_v60  ;;  %v1614_v63 = vpop.permute.xlu0 %1613 }
 0x360   :  { %4634 = vmatpush3.xpose.msk.msra.mxu0 %vm599_vm2, %v4581_v50  ;;  %4635 = vmatprep.mubr.msk.f32.mxu0 %vm5369_vm1, %v5368_v46  ;;  %v1441_v62 = vpop.permute.xlu1 %1440 }
 0x361   :  { %4643 = vmatprep.subr.mxu0 %v5368_v46 }
 0x363   :  { %4636 = vmatmul.mubr.msk.f32.vlgmr.msra.gmra.mxu0 %vm599_vm2, %v436_v54  ;;  %v1784_v1 = vpop.permute.xlu0 %1783 }
 0x364   :  { %4644 = vmatpush3.xpose.msk.msra.mxu0 %vm599_vm2, %v1443_v61  ;;  %4645 = vmatprep.mubr.msk.f32.mxu0 %vm5369_vm1, %v5368_v46  ;;  %v1612_v0 = vpop.permute.xlu1 %1611 }
 0x365   :  { %4653 = vmatprep.subr.mxu0 %v5368_v46 }
 0x367   :  { %4646 = vmatmul.mubr.msk.f32.vlgmr.msra.gmra.mxu0 %vm599_vm2, %v1441_v62 }
 0x368   :  { %4654 = vmatpush3.xpose.msk.msra.mxu0 %vm599_vm2, %v1614_v63  ;;  %4655 = vmatprep.mubr.msk.f32.mxu0 %vm5369_vm1, %v5368_v46  ;;  %v1782_v2 = vpop.permute.xlu1 %1781 }
 0x369   :  { %4663 = vmatprep.subr.mxu0 %v5368_v46 }
 0x36b   :  { %4656 = vmatmul.mubr.msk.f32.vlgmr.msra.gmra.mxu0 %vm599_vm2, %v1612_v0 }
 0x36c   :  { %4664 = vmatpush3.xpose.msk.msra.mxu0 %vm599_vm2, %v1784_v1  ;;  %4665 = vmatprep.mubr.msk.f32.mxu0 %vm5369_vm1, %v5368_v46 }
 0x36f   :  { %4666 = vmatmul.mubr.msk.f32.vlgmr.msra.gmra.mxu0 %vm599_vm2, %v1782_v2 }
 0x3a4   :  { %v672_v9 = vpop.f32.mrf.mxu1 }
 0x3a5   :  { %v673_v10 = vadd.f32 %v672_v9, %v5654_v8 }
 0x3a6   :  { %v4597_v11 = vpop.f32.mrf.mxu1 }
 0x3a7   :  { %v676_v12 = vsel %vm599_vm2, %v673_v10, -inf }
 0x3a8   :  { %677 = vmax.xlane.f32.xlu0 %v676_v12 }
 0x417   :  { %v835_v13 = vpop.f32.mrf.mxu0 }
 0x418   :  { %v836_v14 = vadd.f32 %v835_v13, %v5654_v8 }
 0x419   :  { %v4607_v15 = vpop.f32.mrf.mxu0 }
 0x41a   :  { %v839_v16 = vsel %vm599_vm2, %v836_v14, -inf }
 0x41b   :  { %840 = vmax.xlane.f32.xlu1 %v839_v16  ;;  %v1007_v17 = vpop.f32.mrf.mxu0 }
 0x41c   :  { %v1008_v18 = vadd.f32 %v1007_v17, %v5654_v8 }
 0x41d   :  { %v4617_v20 = vpop.f32.mrf.mxu0 }
 0x41e   :  { %v1011_v21 = vsel %vm599_vm2, %v1008_v18, -inf }
 0x41f   :  { %v1178_v22 = vpop.f32.mrf.mxu0  ;;  %1012 = vmax.xlane.f32.xlu0 %v1011_v21 }
 0x420   :  { %v1179_v23 = vadd.f32 %v1178_v22, %v5654_v8 }
 0x421   :  { %v4627_v25 = vpop.f32.mrf.mxu0 }
 0x422   :  { %v1182_v26 = vsel %vm599_vm2, %v1179_v23, -inf }
 0x423   :  { %v1351_v27 = vpop.f32.mrf.mxu0  ;;  %1183 = vmax.xlane.f32.xlu0 %v1182_v26 }
 0x424   :  { %v1352_v28 = vadd.f32 %v1351_v27, %v5663_v24 }
 0x425   :  { %v4637_v29 = vpop.f32.mrf.mxu0 }
 0x426   :  { %v1355_v30 = vsel %vm599_vm2, %v1352_v28, -inf }
 0x427   :  { %v1514_v31 = vpop.f32.mrf.mxu0  ;;  %1356 = vmax.xlane.f32.xlu0 %v1355_v30 }
 0x428   :  { %v1515_v32 = vadd.f32 %v1514_v31, %v5663_v24 }
 0x429   :  { %v4647_v33 = vpop.f32.mrf.mxu0 }
 0x42a   :  { %v1518_v34 = vsel %vm599_vm2, %v1515_v32, -inf }
 0x42b   :  { %1519 = vmax.xlane.f32.xlu1 %v1518_v34  ;;  %v1685_v35 = vpop.f32.mrf.mxu0 }
 0x42c   :  { %v1686_v36 = vadd.f32 %v1685_v35, %v5663_v24 }
 0x42d   :  { %v4657_v37 = vpop.f32.mrf.mxu0 }
 0x42e   :  { %v1689_v38 = vsel %vm599_vm2, %v1686_v36, -inf }
 0x42f   :  { %v1855_v40 = vpop.f32.mrf.mxu0  ;;  %1690 = vmax.xlane.f32.xlu0 %v1689_v38 }
 0x430   :  { %v1856_v41 = vadd.f32 %v1855_v40, %v5663_v24 }
 0x431   :  { %v4667_v43 = vpop.f32.mrf.mxu0  ;;  %v678_v44 = vpop.xlane.xlu0 %677 }
 0x432   :  { %v679_v45 = vsub.f32 %v673_v10, %v678_v44  ;;  %v1859_v47 = vsel %vm599_vm2, %v1856_v41, -inf }
 0x433   :  { %1860 = vmax.xlane.f32.xlu1 %v1859_v47 }
 0x434   :  { %v680_v48 = vmul.f32 1.442695, %v679_v45 }
 0x436   :  { %4925 = vpow2.f32 %v680_v48 }
 0x443   :  { %v4926_v49 = vpop.eup %4925 }
 0x444   :  { %v682_v50 = vsel %vm599_vm2, %v4926_v49, 0.0 }
 0x445   :  { %683 = vadd.xlane.f32.xlu0 %v682_v50 }
 0x4a4   :  { %v841_v52 = vpop.xlane.xlu1 %840 }
 0x4a5   :  { %v842_v54 = vsub.f32 %v836_v14, %v841_v52 }
 0x4a7   :  { %v843_v55 = vmul.f32 1.442695, %v842_v54 }
 0x4a8   :  { %v1013_v56 = vpop.xlane.xlu0 %1012 }
 0x4a9   :  { %4927 = vpow2.f32 %v843_v55  ;;  %v1014_v57 = vsub.f32 %v1008_v18, %v1013_v56 }
 0x4ab   :  { %v1015_v58 = vmul.f32 1.442695, %v1014_v57 }
 0x4ac   :  { %v1184_v63 = vpop.xlane.xlu0 %1183 }
 0x4ad   :  { %4929 = vpow2.f32 %v1015_v58  ;;  %v1185_v4 = vsub.f32 %v1179_v23, %v1184_v63 }
 0x4af   :  { %v1186_v11 = vmul.f32 1.442695, %v1185_v4  ;;  %v1956_v4 = vld [vmem:[%s6018_s5 + $0x18] sm:$0xff] }
 0x4b0   :  { %v1357_v0 = vpop.xlane.xlu0 %1356  ;;  %4673 = vmatprep.subr.mxu0 %v1956_v4 }
 0x4b1   :  { %v1358_v3 = vsub.f32 %v1352_v28, %v1357_v0  ;;  %4674 = vmatpush3.msra.mxu0 %v1956_v4  ;;  %v2177_v4 = vld [vmem:[%s6020_s11 + $0x8] sm:$0xff] }
 0x4b3   :  { %v1359_v6 = vmul.f32 1.442695, %v1358_v3 }
 0x4b4   :  { %v1520_v9 = vpop.xlane.xlu1 %1519 }
 0x4b5   :  { %v1521_v12 = vsub.f32 %v1515_v32, %v1520_v9 }
 0x4b6   :  { %v4928_v59 = vpop.eup %4927 }
 0x4b7   :  { %v845_v60 = vsel %vm599_vm2, %v4928_v59, 0.0  ;;  %v1522_v15 = vmul.f32 1.442695, %v1521_v12 }
 0x4b8   :  { %846 = vadd.xlane.f32.xlu1 %v845_v60  ;;  %v1691_v1 = vpop.xlane.xlu0 %1690 }
 0x4b9   :  { %v1692_v7 = vsub.f32 %v1686_v36, %v1691_v1 }
 0x4ba   :  { %v5676_v61 = vpop.eup %4929 }
 0x4bb   :  { %v1017_v62 = vsel %vm599_vm2, %v5676_v61, 0.0  ;;  %v1693_v13 = vmul.f32 1.442695, %v1692_v7  ;;  %v1954_v7 = vld [vmem:[%s6018_s5 + $0x8] sm:$0xff] }
 0x4bc   :  { %1018 = vadd.xlane.f32.xlu0 %v1017_v62  ;;  %v1861_v14 = vpop.xlane.xlu1 %1860 }
 0x4c9   :  { %1022 = vrot.lane.b32.xlu1 %v5605_v53, %s5371_s9 }
 0x4cd   :  { %1193 = vrot.lane.b32.xlu1 %v5605_v53, %s5372_s24 }
 0x4ce   :  { %v684_v2 = vpop.xlane.xlu0 %683 }
 0x4cf   :  { %4931 = vrcp.f32 %v684_v2 }
 0x4d0   :  { %4933 = vpow2.f32 %v1359_v6 }
 0x4d1   :  { %1530 = vrot.lane.b32.xlu1 %v5599_v51, %s5370_s2  ;;  %4935 = vpow2.f32 %v1186_v11 }
 0x4d2   :  { %851 = vrot.lane.b32.xlu0 %v5605_v53, %s5370_s2  ;;  %4937 = vpow2.f32 %v1693_v13  ;;  %v1862_v53 = vsub.f32 %v1856_v41, %v1861_v14 }
 0x4d3   :  { %4939 = vpow2.f32 %v1522_v15 }
 0x4d4   :  { %v1863_v16 = vmul.f32 1.442695, %v1862_v53 }
 0x4d6   :  { %4941 = vpow2.f32 %v1863_v16 }
 0x4dc   :  { %v4932_v5 = vpop.eup %4931 }
 0x4dd   :  { %v686_v10 = vmul.f32 %v4932_v5, %v4926_v49  ;;  %v4934_v17 = vpop.eup %4933  ;;  %v1955_v5 = vld [vmem:[%s6018_s5 + $0x10] sm:$0xff] }
 0x4de   :  { %v4936_v18 = vpop.eup %4935  ;;  %v1361_v19 = vsel %vm599_vm2, %v4934_v17, 0.0  ;;  %4675 = vmatprep.subr.mxu0 %v1955_v5 }
 0x4df   :  { %4601 = vmatmul.mubr.msk.f32.vlgmr.msra.gmra.mxu1 %vm599_vm2, %v686_v10  ;;  %v5692_v20 = vpop.eup %4937  ;;  %v1188_v21 = vsel %vm599_vm2, %v4936_v18, 0.0  ;;  %4676 = vmatpush3.msra.mxu0 %v1955_v5  ;;  %v1953_v10 = vld [vmem:[%s6018_s5] sm:$0xff] }
 0x4e0   :  { %4610 = vmatprep.mubr.msk.f32.mxu1 %vm5369_vm1, %v5368_v46  ;;  %v1695_v22 = vsel %vm599_vm2, %v5692_v20, 0.0  ;;  %v4940_v23 = vpop.eup %4939  ;;  %4677 = vmatprep.subr.mxu0 %v1954_v7  ;;  %v2176_v5 = vld [vmem:[%s6020_s11] sm:$0xff] }
 0x4e1   :  { %v1524_v25 = vsel %vm599_vm2, %v4940_v23, 0.0  ;;  %4678 = vmatpush3.msra.mxu0 %v1954_v7 }
 0x4e2   :  { %4679 = vmatprep.subr.mxu0 %v1953_v10 }
 0x4e3   :  { %v5698_v26 = vpop.eup %4941  ;;  %4680 = vmatpush3.msra.mxu0 %v1953_v10 }
 0x4e4   :  { %v1865_v27 = vsel %vm599_vm2, %v5698_v26, 0.0 }
 0x4f1   :  { %1362 = vadd.xlane.f32.xlu0 %v1361_v19 }
 0x4f5   :  { %1189 = vadd.xlane.f32.xlu1 %v1188_v21  ;;  %1696 = vadd.xlane.f32.xlu0 %v1695_v22 }
 0x4f9   :  { %1525 = vadd.xlane.f32.xlu1 %v1524_v25 }
 0x4fd   :  { %1866 = vadd.xlane.f32.xlu1 %v1865_v27 }
 0x50b   :  { %1700 = vrot.lane.b32.xlu0 %v5599_v51, %s5371_s9 }
 0x50e   :  { %1870 = vrot.lane.b32.xlu1 %v5599_v51, %s5372_s24 }
 0x541   :  { %v847_v28 = vpop.xlane.xlu1 %846 }
 0x542   :  { %4943 = vrcp.f32 %v847_v28 }
 0x545   :  { %v1019_v29 = vpop.xlane.xlu0 %1018  ;;  %v1023_v32 = vpop.permute.xlu1 %1022 }
 0x546   :  { %4945 = vrcp.f32 %v1019_v29 }
 0x549   :  { %v852_v30 = vpop.permute.xlu0 %851  ;;  %v1194_v36 = vpop.permute.xlu1 %1193 }
 0x54a   :  { %4609 = vmatpush3.msra.mxu1 %v852_v30 }
 0x54b   :  { %4618 = vmatprep.subr.mxu1 %v5368_v46 }
 0x54d   :  { %v1531_v37 = vpop.permute.xlu1 %1530 }
 0x54f   :  { %v4944_v31 = vpop.eup %4943 }
 0x550   :  { %v849_v33 = vmul.f32 %v4944_v31, %v4928_v59 }
 0x552   :  { %4611 = vmatmul.mubr.msk.f32.vlgmr.msra.gmra.mxu1 %vm599_vm2, %v849_v33 }
 0x553   :  { %v4946_v34 = vpop.eup %4945  ;;  %4619 = vmatpush3.msra.mxu1 %v1023_v32  ;;  %4620 = vmatprep.mubr.msk.f32.mxu1 %vm5369_vm1, %v5368_v46 }
 0x554   :  { %4628 = vmatprep.subr.mxu1 %v5368_v46  ;;  %v1021_v35 = vmul.f32 %v4946_v34, %v5676_v61 }
 0x556   :  { %4621 = vmatmul.mubr.msk.f32.vlgmr.msra.gmra.mxu1 %vm599_vm2, %v1021_v35 }
 0x557   :  { %4629 = vmatpush3.msra.mxu1 %v1194_v36  ;;  %4630 = vmatprep.mubr.msk.f32.mxu1 %vm5369_vm1, %v5368_v46 }
 0x558   :  { %4638 = vmatprep.subr.mxu1 %v5368_v46 }
 0x57a   :  { %v1363_v38 = vpop.xlane.xlu0 %1362 }
 0x57e   :  { %v1190_v40 = vpop.xlane.xlu1 %1189  ;;  %v1697_v43 = vpop.xlane.xlu0 %1696 }
 0x57f   :  { %4947 = vrcp.f32 %v1190_v40  ;;  %v2084_v40 = vld [vmem:[%s6019_s10 + $0x10] sm:$0xff] }
 0x580   :  { %4949 = vrcp.f32 %v1363_v38  ;;  %v2085_v38 = vld [vmem:[%s6019_s10 + $0x18] sm:$0xff] }
 0x582   :  { %v1526_v41 = vpop.xlane.xlu1 %1525  ;;  %v1701_v55 = vpop.permute.xlu0 %1700 }
 0x583   :  { %4951 = vrcp.f32 %v1526_v41  ;;  %v2083_v41 = vld [vmem:[%s6019_s10 + $0x8] sm:$0xff] }
 0x584   :  { %4953 = vrcp.f32 %v1697_v43  ;;  %v2082_v43 = vld [vmem:[%s6019_s10] sm:$0xff] }
 0x586   :  { %v1867_v44 = vpop.xlane.xlu1 %1866 }
 0x587   :  { %4955 = vrcp.f32 %v1867_v44  ;;  %v2183_v44 = vld [vmem:[%s6020_s11 + $0x38] sm:$0xff] }
 0x588   :  { %4695 = vmatprep.subr.mxu0 %v2183_v44 }
 0x58a   :  { %v1871_v57 = vpop.permute.xlu1 %1870 }
 0x58c   :  { %v4948_v45 = vpop.eup %4947 }
 0x58d   :  { %v1192_v47 = vmul.f32 %v4948_v45, %v4936_v18  ;;  %v4950_v48 = vpop.eup %4949  ;;  %v2182_v45 = vld [vmem:[%s6020_s11 + $0x30] sm:$0xff] }
 0x58e   :  { %v1365_v49 = vmul.f32 %v4950_v48, %v4934_v17  ;;  %v2180_v48 = vld [vmem:[%s6020_s11 + $0x20] sm:$0xff] }
 0x58f   :  { %4631 = vmatmul.mubr.msk.f32.vlgmr.msra.gmra.mxu1 %vm599_vm2, %v1192_v47  ;;  %v2181_v47 = vld [vmem:[%s6020_s11 + $0x28] sm:$0xff] }
 0x590   :  { %4639 = vmatpush3.msra.mxu1 %v5599_v51  ;;  %4640 = vmatprep.mubr.msk.f32.mxu1 %vm5369_vm1, %v5368_v46  ;;  %v4952_v50 = vpop.eup %4951 }
 0x591   :  { %4648 = vmatprep.subr.mxu1 %v5368_v46  ;;  %v1528_v52 = vmul.f32 %v4952_v50, %v4940_v23  ;;  %v4954_v54 = vpop.eup %4953 }
 0x592   :  { %v1699_v51 = vmul.f32 %v4954_v54, %v5692_v20 }
 0x593   :  { %4641 = vmatmul.mubr.msk.f32.vlgmr.msra.gmra.mxu1 %vm599_vm2, %v1365_v49 }
 0x594   :  { %4649 = vmatpush3.msra.mxu1 %v1531_v37  ;;  %4650 = vmatprep.mubr.msk.f32.mxu1 %vm5369_vm1, %v5368_v46  ;;  %v4956_v56 = vpop.eup %4955 }
 0x595   :  { %4658 = vmatprep.subr.mxu1 %v5368_v46  ;;  %v1869_v58 = vmul.f32 %v4956_v56, %v5698_v26 }
 0x597   :  { %4651 = vmatmul.mubr.msk.f32.vlgmr.msra.gmra.mxu1 %vm599_vm2, %v1528_v52 }
 0x598   :  { %4659 = vmatpush3.msra.mxu1 %v1701_v55  ;;  %4660 = vmatprep.mubr.msk.f32.mxu1 %vm5369_vm1, %v5368_v46 }
 0x599   :  { %4668 = vmatprep.subr.mxu1 %v5368_v46 }
 0x59b   :  { %4661 = vmatmul.mubr.msk.f32.vlgmr.msra.gmra.mxu1 %vm599_vm2, %v1699_v51 }
 0x59c   :  { %4669 = vmatpush3.msra.mxu1 %v1871_v57  ;;  %4670 = vmatprep.mubr.msk.f32.mxu1 %vm5369_vm1, %v5368_v46  ;;  %v4364_v57 = vld [vmem:[#allocation12] ss:$0 sm:$0xff] }
 0x59d   :  { %4684 = vmatprep.subr.mxu1 %v2085_v38 }
 0x59f   :  { %v756_v59 = vpop.f32.mrf.mxu1  ;;  %4671 = vmatmul.mubr.msk.f32.vlgmr.msra.gmra.mxu1 %vm599_vm2, %v1869_v58 }
 0x5a0   :  { %760 = vst.msk [vmem:[#allocation2] sm:$0xff] %vm599_vm2, %v756_v59  ;;  %4685 = vmatpush3.msra.mxu1 %v2085_v38  ;;  %v4365_v59 = vld [vmem:[#allocation14] ss:$0 sm:$0xff]  ;;  %v2485_v38 = vld [vmem:[#allocation21] sm:$0xff] }
 0x5a1   :  { %v4602_v60 = vpop.f32.mrf.mxu1  ;;  %4686 = vmatprep.subr.mxu1 %v2084_v40 }
 0x5a2   :  { %4687 = vmatpush3.msra.mxu1 %v2084_v40  ;;  %v2409_v40 = vld [vmem:[%s6022_s14 + $0x18] sm:$0xff] }
 0x5a3   :  { %4688 = vmatprep.subr.mxu1 %v2083_v41 }
 0x5a4   :  { %4689 = vmatpush3.msra.mxu1 %v2083_v41 }
 0x5a5   :  { %4690 = vmatprep.subr.mxu1 %v2082_v43 }
 0x5a6   :  { %4691 = vmatpush3.msra.mxu1 %v2082_v43 }
 0x612   :  { %v923_v61 = vpop.f32.mrf.mxu1 }
 0x613   :  { %928 = vrot.lane.b32.xlu0 %v923_v61, %s5360_s23 }
 0x614   :  { %v4612_v62 = vpop.f32.mrf.mxu1 }
 0x616   :  { %v1094_v63 = vpop.f32.mrf.mxu1 }
 0x617   :  { %1099 = vrot.lane.b32.xlu1 %v1094_v63, %s5373_s7 }
 0x618   :  { %v4622_v0 = vpop.f32.mrf.mxu1 }
 0x64f   :  { %v1265_v1 = vpop.f32.mrf.mxu1 }
 0x650   :  { %1270 = vrot.lane.b32.xlu1 %v1265_v1, %s5374_s17 }
 0x651   :  { %v4632_v2 = vpop.f32.mrf.mxu1 }
 0x652   :  { %v2179_v2 = vld [vmem:[%s6020_s11 + $0x18] sm:$0xff] }
 0x653   :  { %v1435_v3 = vpop.f32.mrf.mxu1 }
 0x654   :  { %1439 = vst.msk [vmem:[#allocation2 + $0x8] sm:$0xff] %vm599_vm2, %v1435_v3  ;;  %v2178_v3 = vld [vmem:[%s6020_s11 + $0x10] sm:$0xff] }
 0x655   :  { %v4642_v6 = vpop.f32.mrf.mxu1 }
 0x656   :  { %v4366_v6 = vld [vmem:[#allocation15] ss:$0 sm:$0xff] }
 0x657   :  { %v1602_v9 = vpop.f32.mrf.mxu1 }
 0x658   :  { %1607 = vrot.lane.b32.xlu0 %v1602_v9, %s5360_s23 }
 0x659   :  { %v4652_v11 = vpop.f32.mrf.mxu1 }
 0x65b   :  { %v1772_v12 = vpop.f32.mrf.mxu1 }
 0x65c   :  { %1777 = vrot.lane.b32.xlu0 %v1772_v12, %s5373_s7 }
 0x65d   :  { %v4662_v13 = vpop.f32.mrf.mxu1 }
 0x65f   :  { %v1942_v14 = vpop.f32.mrf.mxu1 }
 0x660   :  { %1947 = vrot.lane.b32.xlu1 %v1942_v14, %s5374_s17  ;;  %v4369_v14 = vld [vmem:[#allocation17] ss:$0 sm:$0xff] }
 0x661   :  { %v4672_v15 = vpop.f32.mrf.mxu1 }
 0x685   :  { %v929_v53 = vpop.permute.xlu0 %928 }
 0x686   :  { %932 = vst.msk [vmem:[#allocation2] sm:$0xff] %vm931_vm4, %v929_v53 }
 0x689   :  { %v1100_v16 = vpop.permute.xlu1 %1099 }
 0x68a   :  { %1103 = vst.msk [vmem:[#allocation2] sm:$0xff] %vm1102_vm5, %v1100_v16 }
 0x6c2   :  { %v1271_v17 = vpop.permute.xlu1 %1270 }
 0x6c3   :  { %1274 = vst.msk [vmem:[#allocation2] sm:$0xff] %vm1273_vm6, %v1271_v17 }
 0x6ca   :  { %v1608_v18 = vpop.permute.xlu0 %1607  ;;  %v1951_v19 = vld [vmem:[#allocation2] sm:$0xff] }
 0x6cb   :  { %1610 = vst.msk [vmem:[#allocation2 + $0x8] sm:$0xff] %vm931_vm4, %v1608_v18  ;;  %4681 = vmatprep.mubr.msk.f32.mxu0 %vm303_vm0, %v1951_v19 }
 0x6ce   :  { %v1778_v20 = vpop.permute.xlu0 %1777 }
 0x6cf   :  { %1780 = vst.msk [vmem:[#allocation2 + $0x8] sm:$0xff] %vm1102_vm5, %v1778_v20 }
 0x6d2   :  { %v1948_v21 = vpop.permute.xlu1 %1947 }
 0x6d3   :  { %1950 = vst.msk [vmem:[#allocation2 + $0x8] sm:$0xff] %vm1273_vm6, %v1948_v21 }
 0x6da   :  { %v1952_v22 = vld [vmem:[#allocation2 + $0x8] sm:$0xff] }
 0x6db   :  { %4682 = vmatmul.mubr.msk.f32.vlgmr.msra.gmra.mxu0 %vm303_vm0, %v1952_v22 }
 0x6dc   :  { %4696 = vmatpush3.msra.mxu0 %v2183_v44 }
 0x6dd   :  { %4697 = vmatprep.subr.mxu0 %v2182_v45 }
 0x6de   :  { %4698 = vmatpush3.msra.mxu0 %v2182_v45 }
 0x6df   :  { %4699 = vmatprep.subr.mxu0 %v2181_v47 }
 0x6e0   :  { %4700 = vmatpush3.msra.mxu0 %v2181_v47 }
 0x6e1   :  { %4701 = vmatprep.subr.mxu0 %v2180_v48 }
 0x6e2   :  { %4702 = vmatpush3.msra.mxu0 %v2180_v48 }
 0x6e3   :  { %4703 = vmatprep.subr.mxu0 %v2179_v2 }
 0x6e4   :  { %4704 = vmatpush3.msra.mxu0 %v2179_v2 }
 0x6e5   :  { %4705 = vmatprep.subr.mxu0 %v2178_v3 }
 0x6e6   :  { %4706 = vmatpush3.msra.mxu0 %v2178_v3 }
 0x6e7   :  { %4707 = vmatprep.subr.mxu0 %v2177_v4 }
 0x6e8   :  { %4708 = vmatpush3.msra.mxu0 %v2177_v4 }
 0x6e9   :  { %4709 = vmatprep.subr.mxu0 %v2176_v5 }
 0x6ea   :  { %4710 = vmatpush3.msra.mxu0 %v2176_v5 }
 0x79b   :  { %v4683_v23 = vpop.f32.mrf.mxu0 }
 0x79c   :  { %v2035_v25 = vadd.f32 %v4683_v23, %v5579_v42 }
 0x79d   :  { %v2029_v26 = vpop.f32.mrf.mxu0 }
 0x79e   :  { %v2030_v27 = vadd.f32 %v2029_v26, %v5573_v39  ;;  %v2043_v28 = vsel %vm303_vm0, %v2035_v25, 0.0 }
 0x79f   :  { %2044 = vadd.xlane.f32.xlu1 %v2043_v28 }
 0x7a0   :  { %v2040_v29 = vsel %vm303_vm0, %v2030_v27, 0.0 }
 0x7a1   :  { %2041 = vadd.xlane.f32.xlu0 %v2040_v29 }
 0x828   :  { %v2045_v30 = vpop.xlane.xlu1 %2044 }
 0x829   :  { %v2047_v31 = vmul.f32 0.03125, %v2045_v30 }
 0x82a   :  { %v2042_v32 = vpop.xlane.xlu0 %2041 }
 0x82b   :  { %v2046_v33 = vmul.f32 0.03125, %v2042_v32  ;;  %v2049_v34 = vsub.f32 %v2035_v25, %v2047_v31 }
 0x82d   :  { %v2048_v35 = vsub.f32 %v2030_v27, %v2046_v33  ;;  %v2051_v39 = vmul.f32 %v2049_v34, %v2049_v34  ;;  %v2322_v33 = vld [vmem:[%s6021_s15 + $0x18] sm:$0xff] }
 0x82e   :  { %4714 = vmatprep.subr.mxu1 %v2322_v33 }
 0x82f   :  { %v2050_v42 = vmul.f32 %v2048_v35, %v2048_v35  ;;  %v2055_v37 = vsel %vm303_vm0, %v2051_v39, 0.0  ;;  %v2486_v39 = vld [vmem:[#allocation21 + $0x8] sm:$0xff] }
 0x831   :  { %v2052_v36 = vsel %vm303_vm0, %v2050_v42, 0.0  ;;  %v2487_v42 = vld [vmem:[#allocation21 + $0x10] sm:$0xff] }
 0x832   :  { %2053 = vadd.xlane.f32.xlu0 %v2052_v36  ;;  %v2320_v36 = vld [vmem:[%s6021_s15 + $0x8] sm:$0xff] }
 0x836   :  { %2056 = vadd.xlane.f32.xlu0 %v2055_v37  ;;  %v2319_v37 = vld [vmem:[%s6021_s15] sm:$0xff] }
 0x8bb   :  { %v2054_v49 = vpop.xlane.xlu0 %2053 }
 0x8bc   :  { %v2058_v50 = vmul.f32 0.03125, %v2054_v49 }
 0x8be   :  { %v2060_v52 = vadd.f32 1e-06, %v2058_v50  ;;  %v4372_v50 = vld [vmem:[#allocation18] ss:$0 sm:$0xff] }
 0x8bf   :  { %v2057_v54 = vpop.xlane.xlu0 %2056 }
 0x8c0   :  { %4957 = vrsqrt.f32 %v2060_v52  ;;  %v2059_v55 = vmul.f32 0.03125, %v2057_v54 }
 0x8c2   :  { %v2061_v51 = vadd.f32 1e-06, %v2059_v55 }
 0x8c4   :  { %4959 = vrsqrt.f32 %v2061_v51 }
 0x8cd   :  { %v4958_v56 = vpop.eup %4957 }
 0x8ce   :  { %v2064_v58 = vmul.f32 %v4958_v56, %v2048_v35  ;;  %v2321_v35 = vld [vmem:[%s6021_s15 + $0x10] sm:$0xff]  ;;  %v4373_v56 = vld [vmem:[#allocation20] ss:$0 sm:$0xff] }
 0x8d0   :  { %v2072_v60 = vmul.f32 %v4364_v57, %v2064_v58 }
 0x8d1   :  { %v4960_v61 = vpop.eup %4959 }
 0x8d2   :  { %v2065_v62 = vmul.f32 %v4960_v61, %v2049_v34  ;;  %v2080_v63 = vadd.f32 %v4365_v59, %v2072_v60  ;;  %v2488_v34 = vld [vmem:[#allocation21 + $0x18] sm:$0xff]  ;;  %v2408_v60 = vld [vmem:[%s6022_s14 + $0x10] sm:$0xff]  ;;  %v2407_v61 = vld [vmem:[%s6022_s14 + $0x8] sm:$0xff] }
 0x8d3   :  { %4736 = vmatprep.subr.mxu0 %v2488_v34 }
 0x8d4   :  { %v2073_v0 = vmul.f32 %v4364_v57, %v2065_v62  ;;  %4692 = vmatprep.mubr.msk.f32.mxu1 %vm303_vm0, %v2080_v63  ;;  %v2406_v62 = vld [vmem:[%s6022_s14] sm:$0xff] }
 0x8d6   :  { %v2081_v1 = vadd.f32 %v4365_v59, %v2073_v0 }
 0x8d8   :  { %4693 = vmatmul.mubr.msk.f32.vlgmr.msra.gmra.mxu1 %vm303_vm0, %v2081_v1 }
 0x8d9   :  { %4715 = vmatpush3.msra.mxu1 %v2322_v33 }
 0x8da   :  { %4716 = vmatprep.subr.mxu1 %v2321_v35 }
 0x8db   :  { %4717 = vmatpush3.msra.mxu1 %v2321_v35 }
 0x8dc   :  { %4718 = vmatprep.subr.mxu1 %v2320_v36 }
 0x8dd   :  { %4719 = vmatpush3.msra.mxu1 %v2320_v36 }
 0x8de   :  { %4720 = vmatprep.subr.mxu1 %v2319_v37 }
 0x8df   :  { %4721 = vmatpush3.msra.mxu1 %v2319_v37 }
 0x8e0   :  { %4725 = vmatprep.subr.mxu1 %v2409_v40 }
 0x998   :  { %v4694_v7 = vpop.f32.mrf.mxu1 }
 0x999   :  { %v2171_v9 = vadd.f32 %v4694_v7, %v4366_v6 }
 0x99a   :  { %v2165_v10 = vpop.f32.mrf.mxu1 }
 0x99b   :  { %v2166_v11 = vadd.f32 %v4366_v6, %v2165_v10  ;;  %v2175_v13 = vmax.f32 %v2171_v9, 0.0 }
 0x99d   :  { %v2174_v12 = vmax.f32 %v2166_v11, 0.0 }
 0x99f   :  { %4711 = vmatprep.mubr.msk.f32.mxu0 %vm2191_vm7, %v2174_v12 }
 0x9a0   :  { %4712 = vmatmul.mubr.msk.f32.vlgmr.msra.gmra.mxu0 %vm2191_vm7, %v2175_v13 }
 0x9a1   :  { %4737 = vmatpush3.msra.mxu0 %v2488_v34 }
 0x9a2   :  { %4738 = vmatprep.subr.mxu0 %v2487_v42 }
 0x9a3   :  { %4739 = vmatpush3.msra.mxu0 %v2487_v42 }
 0x9a4   :  { %4740 = vmatprep.subr.mxu0 %v2486_v39 }
 0x9a5   :  { %4741 = vmatpush3.msra.mxu0 %v2486_v39 }
 0x9a6   :  { %4742 = vmatprep.subr.mxu0 %v2485_v38 }
 0x9a7   :  { %4743 = vmatpush3.msra.mxu0 %v2485_v38 }
 0x9a8   :  { %4757 = vmatprep.subr.mxu0 %v5368_v46 }
 0xa60   :  { %v4713_v15 = vpop.f32.mrf.mxu0 }
 0xa61   :  { %v2270_v53 = vadd.f32 %v4713_v15, %v4369_v14 }
 0xa62   :  { %v2264_v16 = vpop.f32.mrf.mxu0 }
 0xa63   :  { %v2265_v17 = vadd.f32 %v4369_v14, %v2264_v16  ;;  %v2274_v18 = vadd.f32 %v2270_v53, %v2081_v1 }
 0xa65   :  { %v2280_v19 = vsel %vm303_vm0, %v2274_v18, 0.0  ;;  %v2273_v20 = vadd.f32 %v2265_v17, %v2080_v63 }
 0xa66   :  { %2281 = vadd.xlane.f32.xlu1 %v2280_v19 }
 0xa67   :  { %v2277_v21 = vsel %vm303_vm0, %v2273_v20, 0.0 }
 0xa68   :  { %2278 = vadd.xlane.f32.xlu0 %v2277_v21 }
 0xaef   :  { %v2282_v22 = vpop.xlane.xlu1 %2281 }
 0xaf0   :  { %v2284_v23 = vmul.f32 0.03125, %v2282_v22 }
 0xaf1   :  { %v2279_v25 = vpop.xlane.xlu0 %2278 }
 0xaf2   :  { %v2286_v26 = vsub.f32 %v2274_v18, %v2284_v23  ;;  %v2283_v27 = vmul.f32 0.03125, %v2279_v25 }
 0xaf4   :  { %v2285_v28 = vsub.f32 %v2273_v20, %v2283_v27  ;;  %v2288_v29 = vmul.f32 %v2286_v26, %v2286_v26 }
 0xaf6   :  { %v2292_v30 = vsel %vm303_vm0, %v2288_v29, 0.0  ;;  %v2287_v31 = vmul.f32 %v2285_v28, %v2285_v28 }
 0xaf7   :  { %2293 = vadd.xlane.f32.xlu1 %v2292_v30 }
 0xaf8   :  { %v2289_v32 = vsel %vm303_vm0, %v2287_v31, 0.0 }
 0xaf9   :  { %2290 = vadd.xlane.f32.xlu0 %v2289_v32 }
 0xb80   :  { %v2294_v41 = vpop.xlane.xlu1 %2293 }
 0xb81   :  { %v2296_v43 = vmul.f32 0.03125, %v2294_v41 }
 0xb82   :  { %v2291_v44 = vpop.xlane.xlu0 %2290 }
 0xb83   :  { %v2298_v45 = vadd.f32 1e-06, %v2296_v43  ;;  %v2295_v47 = vmul.f32 0.03125, %v2291_v44 }
 0xb85   :  { %4961 = vrsqrt.f32 %v2298_v45  ;;  %v2297_v48 = vadd.f32 1e-06, %v2295_v47 }
 0xb87   :  { %4963 = vrsqrt.f32 %v2297_v48 }
 0xb92   :  { %v4962_v49 = vpop.eup %4961 }
 0xb93   :  { %v2302_v52 = vmul.f32 %v4962_v49, %v2286_v26 }
 0xb94   :  { %v4964_v54 = vpop.eup %4963 }
 0xb95   :  { %v2301_v55 = vmul.f32 %v4964_v54, %v2285_v28  ;;  %v2310_v51 = vmul.f32 %v4372_v50, %v2302_v52 }
 0xb97   :  { %v2309_v57 = vmul.f32 %v4372_v50, %v2301_v55  ;;  %v5789_v59 = vadd.f32 %v4373_v56, %v2310_v51 }
 0xb99   :  { %v5787_v58 = vadd.f32 %v4373_v56, %v2309_v57 }
 0xb9b   :  { %4722 = vmatprep.mubr.msk.f32.mxu1 %vm303_vm0, %v5787_v58  ;;  %4744 = vmatprep.mubr.msk.f32.mxu0 %vm303_vm0, %v5787_v58 }
 0xb9c   :  { %4723 = vmatmul.mubr.msk.f32.vlgmr.msra.gmra.mxu1 %vm303_vm0, %v5789_v59  ;;  %4745 = vmatmul.mubr.msk.f32.vlgmr.msra.gmra.mxu0 %vm303_vm0, %v5789_v59 }
 0xb9d   :  { %4726 = vmatpush3.msra.mxu1 %v2409_v40  ;;  %4733 = vmatprep.mubr.msk.f32.mxu1 %vm303_vm0, %v5787_v58 }
 0xb9e   :  { %4727 = vmatprep.subr.mxu1 %v2408_v60  ;;  %4759 = vmatprep.mubr.msk.f32.mxu0 %vm5369_vm1, %v5368_v46 }
 0xb9f   :  { %4728 = vmatpush3.msra.mxu1 %v2408_v60 }
 0xba0   :  { %4729 = vmatprep.subr.mxu1 %v2407_v61 }
 0xba1   :  { %4730 = vmatpush3.msra.mxu1 %v2407_v61 }
 0xba2   :  { %4731 = vmatprep.subr.mxu1 %v2406_v62 }
 0xba3   :  { %4732 = vmatpush3.msra.mxu1 %v2406_v62 }
 0xba4   :  { %4734 = vmatmul.mubr.msk.f32.vlgmr.msra.gmra.mxu1 %vm303_vm0, %v5789_v59  ;;  %4747 = vmatprep.subr.mxu1 %v5368_v46 }
 0xba5   :  { %4749 = vmatprep.mubr.msk.f32.mxu1 %vm5369_vm1, %v5368_v46 }
 0xc5c   :  { %v4724_v63 = vpop.f32.mrf.mxu1  ;;  %v5812_v3 = vpop.f32.mrf.mxu0 }
 0xc5d   :  { %v2405_v6 = vmul.f32 0.35355338, %v4724_v63 }
 0xc5e   :  { %v2395_v0 = vpop.f32.mrf.mxu1  ;;  %v5818_v5 = vpop.f32.mrf.mxu0 }
 0xc5f   :  { %v2404_v1 = vmul.f32 0.35355338, %v2395_v0 }
 0xc61   :  { %2725 = vrot.lane.b32.xlu1 %v2404_v1, %s5370_s2 }
 0xc64   :  { %v4735_v2 = vpop.f32.mrf.mxu1 }
 0xc66   :  { %v2476_v4 = vpop.f32.mrf.mxu1 }
 0xc67   :  { %2727 = vrot.lane.b32.xlu0 %v2476_v4, %s5370_s2  ;;  %4748 = vmatpush3.xpose.msk.msra.mxu1 %vm599_vm2, %v2476_v4 }
 0xc68   :  { %2898 = vrot.lane.b32.xlu1 %v2476_v4, %s5371_s9  ;;  %4752 = vmatprep.subr.mxu1 %v5368_v46 }
 0xc6a   :  { %4750 = vmatmul.mubr.msk.f32.vlgmr.msra.gmra.mxu1 %vm599_vm2, %v2404_v1 }
 0xc6b   :  { %3068 = vrot.lane.b32.xlu0 %v2476_v4, %s5372_s24  ;;  %4753 = vmatpush3.msra.mxu1 %v5818_v5 }
 0xc6c   :  { %2896 = vrot.lane.b32.xlu1 %v2404_v1, %s5371_s9  ;;  %4754 = vmatprep.mubr.msk.f32.mxu1 %vm5369_vm1, %v5368_v46 }
 0xc6d   :  { %4762 = vmatprep.subr.mxu1 %v5368_v46 }
 0xc6f   :  { %3399 = vrot.lane.b32.xlu0 %v4735_v2, %s5370_s2 }
 0xc70   :  { %3066 = vrot.lane.b32.xlu1 %v2404_v1, %s5372_s24 }
 0xc73   :  { %3570 = vrot.lane.b32.xlu0 %v4735_v2, %s5371_s9 }
 0xc74   :  { %3397 = vrot.lane.b32.xlu1 %v2405_v6, %s5370_s2 }
 0xc77   :  { %3740 = vrot.lane.b32.xlu0 %v4735_v2, %s5372_s24 }
 0xc78   :  { %3568 = vrot.lane.b32.xlu1 %v2405_v6, %s5371_s9 }
 0xc7c   :  { %3738 = vrot.lane.b32.xlu1 %v2405_v6, %s5372_s24 }
 0xcd3   :  { %v2726_v7 = vpop.permute.xlu1 %2725 }
 0xcd9   :  { %v2728_v9 = vpop.permute.xlu0 %2727 }
 0xcda   :  { %v2899_v10 = vpop.permute.xlu1 %2898  ;;  %4758 = vmatpush3.xpose.msk.msra.mxu0 %vm599_vm2, %v2728_v9 }
 0xcdb   :  { %4767 = vmatprep.subr.mxu0 %v5368_v46 }
 0xcdd   :  { %4760 = vmatmul.mubr.msk.f32.vlgmr.msra.gmra.mxu0 %vm599_vm2, %v2726_v7  ;;  %v3069_v12 = vpop.permute.xlu0 %3068 }
 0xcde   :  { %v2897_v11 = vpop.permute.xlu1 %2896  ;;  %4768 = vmatpush3.xpose.msk.msra.mxu0 %vm599_vm2, %v2899_v10  ;;  %4769 = vmatprep.mubr.msk.f32.mxu0 %vm5369_vm1, %v5368_v46 }
 0xcdf   :  { %4777 = vmatprep.subr.mxu0 %v5368_v46 }
 0xce1   :  { %4770 = vmatmul.mubr.msk.f32.vlgmr.msra.gmra.mxu0 %vm599_vm2, %v2897_v11  ;;  %v3400_v14 = vpop.permute.xlu0 %3399 }
 0xce2   :  { %v3067_v13 = vpop.permute.xlu1 %3066  ;;  %4778 = vmatpush3.xpose.msk.msra.mxu0 %vm599_vm2, %v3069_v12  ;;  %4779 = vmatprep.mubr.msk.f32.mxu0 %vm5369_vm1, %v5368_v46 }
 0xce3   :  { %4787 = vmatprep.subr.mxu0 %v5368_v46 }
 0xce5   :  { %4780 = vmatmul.mubr.msk.f32.vlgmr.msra.gmra.mxu0 %vm599_vm2, %v3067_v13  ;;  %v3571_v53 = vpop.permute.xlu0 %3570 }
 0xce6   :  { %4788 = vmatpush3.xpose.msk.msra.mxu0 %vm599_vm2, %v4735_v2  ;;  %4789 = vmatprep.mubr.msk.f32.mxu0 %vm5369_vm1, %v5368_v46  ;;  %v3398_v15 = vpop.permute.xlu1 %3397 }
 0xce7   :  { %4797 = vmatprep.subr.mxu0 %v5368_v46 }
 0xce9   :  { %4790 = vmatmul.mubr.msk.f32.vlgmr.msra.gmra.mxu0 %vm599_vm2, %v2405_v6  ;;  %v3741_v17 = vpop.permute.xlu0 %3740 }
 0xcea   :  { %4798 = vmatpush3.xpose.msk.msra.mxu0 %vm599_vm2, %v3400_v14  ;;  %4799 = vmatprep.mubr.msk.f32.mxu0 %vm5369_vm1, %v5368_v46  ;;  %v3569_v16 = vpop.permute.xlu1 %3568 }
 0xceb   :  { %4807 = vmatprep.subr.mxu0 %v5368_v46 }
 0xced   :  { %4800 = vmatmul.mubr.msk.f32.vlgmr.msra.gmra.mxu0 %vm599_vm2, %v3398_v15 }
 0xcee   :  { %4808 = vmatpush3.xpose.msk.msra.mxu0 %vm599_vm2, %v3571_v53  ;;  %4809 = vmatprep.mubr.msk.f32.mxu0 %vm5369_vm1, %v5368_v46  ;;  %v3739_v18 = vpop.permute.xlu1 %3738 }
 0xcef   :  { %4817 = vmatprep.subr.mxu0 %v5368_v46 }
 0xcf1   :  { %4810 = vmatmul.mubr.msk.f32.vlgmr.msra.gmra.mxu0 %vm599_vm2, %v3569_v16 }
 0xcf2   :  { %4818 = vmatpush3.xpose.msk.msra.mxu0 %vm599_vm2, %v3741_v17  ;;  %4819 = vmatprep.mubr.msk.f32.mxu0 %vm5369_vm1, %v5368_v46 }
 0xcf5   :  { %4820 = vmatmul.mubr.msk.f32.vlgmr.msra.gmra.mxu0 %vm599_vm2, %v3739_v18 }
 0xd2a   :  { %v2636_v19 = vpop.f32.mrf.mxu1 }
 0xd2b   :  { %v2637_v20 = vadd.f32 %v2636_v19, %v5654_v8 }
 0xd2c   :  { %v4751_v21 = vpop.f32.mrf.mxu1 }
 0xd2d   :  { %v2640_v22 = vsel %vm599_vm2, %v2637_v20, -inf }
 0xd2e   :  { %2641 = vmax.xlane.f32.xlu0 %v2640_v22 }
 0xd9d   :  { %v2799_v23 = vpop.f32.mrf.mxu0 }
 0xd9e   :  { %v2800_v25 = vadd.f32 %v2799_v23, %v5654_v8 }
 0xd9f   :  { %v4761_v26 = vpop.f32.mrf.mxu0 }
 0xda0   :  { %v2803_v27 = vsel %vm599_vm2, %v2800_v25, -inf }
 0xda1   :  { %2804 = vmax.xlane.f32.xlu1 %v2803_v27  ;;  %v2970_v28 = vpop.f32.mrf.mxu0 }
 0xda2   :  { %v2971_v29 = vadd.f32 %v2970_v28, %v5654_v8 }
 0xda3   :  { %v4771_v30 = vpop.f32.mrf.mxu0 }
 0xda4   :  { %v2974_v31 = vsel %vm599_vm2, %v2971_v29, -inf }
 0xda5   :  { %v3140_v32 = vpop.f32.mrf.mxu0  ;;  %2975 = vmax.xlane.f32.xlu0 %v2974_v31 }
 0xda6   :  { %v3141_v33 = vadd.f32 %v3140_v32, %v5654_v8 }
 0xda7   :  { %v4781_v34 = vpop.f32.mrf.mxu0 }
 0xda8   :  { %v3144_v35 = vsel %vm599_vm2, %v3141_v33, -inf }
 0xda9   :  { %v3308_v42 = vpop.f32.mrf.mxu0  ;;  %3145 = vmax.xlane.f32.xlu0 %v3144_v35 }
 0xdaa   :  { %v3309_v36 = vadd.f32 %v3308_v42, %v5663_v24 }
 0xdab   :  { %v4791_v39 = vpop.f32.mrf.mxu0 }
 0xdac   :  { %v3312_v37 = vsel %vm599_vm2, %v3309_v36, -inf }
 0xdad   :  { %v3471_v38 = vpop.f32.mrf.mxu0  ;;  %3313 = vmax.xlane.f32.xlu0 %v3312_v37 }
 0xdae   :  { %v3472_v40 = vadd.f32 %v3471_v38, %v5663_v24 }
 0xdaf   :  { %v4801_v41 = vpop.f32.mrf.mxu0 }
 0xdb0   :  { %v3475_v43 = vsel %vm599_vm2, %v3472_v40, -inf }
 0xdb1   :  { %3476 = vmax.xlane.f32.xlu1 %v3475_v43  ;;  %v3642_v44 = vpop.f32.mrf.mxu0 }
 0xdb2   :  { %v3643_v8 = vadd.f32 %v3642_v44, %v5663_v24 }
 0xdb3   :  { %v4811_v45 = vpop.f32.mrf.mxu0 }
 0xdb4   :  { %v3646_v47 = vsel %vm599_vm2, %v3643_v8, -inf }
 0xdb5   :  { %v3812_v48 = vpop.f32.mrf.mxu0  ;;  %3647 = vmax.xlane.f32.xlu0 %v3646_v47 }
 0xdb6   :  { %v3813_v49 = vadd.f32 %v3812_v48, %v5663_v24 }
 0xdb7   :  { %v4821_v50 = vpop.f32.mrf.mxu0  ;;  %v2642_v52 = vpop.xlane.xlu0 %2641 }
 0xdb8   :  { %v2643_v54 = vsub.f32 %v2637_v20, %v2642_v52  ;;  %v3816_v55 = vsel %vm599_vm2, %v3813_v49, -inf }
 0xdb9   :  { %3817 = vmax.xlane.f32.xlu1 %v3816_v55 }
 0xdba   :  { %v2644_v51 = vmul.f32 1.442695, %v2643_v54 }
 0xdbc   :  { %4965 = vpow2.f32 %v2644_v51 }
 0xdc9   :  { %v4966_v56 = vpop.eup %4965 }
 0xdca   :  { %v2646_v57 = vsel %vm599_vm2, %v4966_v56, 0.0 }
 0xdcb   :  { %2647 = vadd.xlane.f32.xlu0 %v2646_v57 }
 0xe2a   :  { %v2805_v60 = vpop.xlane.xlu1 %2804 }
 0xe2b   :  { %v2806_v61 = vsub.f32 %v2800_v25, %v2805_v60 }
 0xe2d   :  { %v2807_v62 = vmul.f32 1.442695, %v2806_v61 }
 0xe2e   :  { %v2976_v63 = vpop.xlane.xlu0 %2975 }
 0xe2f   :  { %4967 = vpow2.f32 %v2807_v62  ;;  %v2977_v0 = vsub.f32 %v2971_v29, %v2976_v63 }
 0xe31   :  { %v2978_v1 = vmul.f32 1.442695, %v2977_v0 }
 0xe32   :  { %v3146_v7 = vpop.xlane.xlu0 %3145 }
 0xe33   :  { %4969 = vpow2.f32 %v2978_v1  ;;  %v3147_v13 = vsub.f32 %v3141_v33, %v3146_v7 }
 0xe35   :  { %v3148_v18 = vmul.f32 1.442695, %v3147_v13  ;;  %v3911_v13 = vld [vmem:[#allocation23 + $0x8] sm:$0xff] }
 0xe36   :  { %v3314_v9 = vpop.xlane.xlu0 %3313 }
 0xe37   :  { %v3315_v12 = vsub.f32 %v3309_v36, %v3314_v9 }
 0xe39   :  { %v3316_v15 = vmul.f32 1.442695, %v3315_v12 }
 0xe3a   :  { %v3477_v16 = vpop.xlane.xlu1 %3476 }
 0xe3b   :  { %v3478_v19 = vsub.f32 %v3472_v40, %v3477_v16 }
 0xe3c   :  { %v4968_v24 = vpop.eup %4967 }
 0xe3d   :  { %v2809_v2 = vsel %vm599_vm2, %v4968_v24, 0.0  ;;  %v3479_v22 = vmul.f32 1.442695, %v3478_v19 }
 0xe3e   :  { %2810 = vadd.xlane.f32.xlu1 %v2809_v2  ;;  %v3648_v10 = vpop.xlane.xlu0 %3647 }
 0xe3f   :  { %v3649_v53 = vsub.f32 %v3643_v8, %v3648_v10  ;;  %v3913_v10 = vld [vmem:[#allocation23 + $0x18] sm:$0xff] }
 0xe40   :  { %v5884_v4 = vpop.eup %4969  ;;  %4827 = vmatprep.subr.mxu0 %v3913_v10 }
 0xe41   :  { %v2980_v6 = vsel %vm599_vm2, %v5884_v4, 0.0  ;;  %v3650_v20 = vmul.f32 1.442695, %v3649_v53  ;;  %4828 = vmatpush3.msra.mxu0 %v3913_v10 }
 0xe42   :  { %2981 = vadd.xlane.f32.xlu0 %v2980_v6  ;;  %v3818_v21 = vpop.xlane.xlu1 %3817 }
 0xe4f   :  { %2985 = vrot.lane.b32.xlu1 %v5818_v5, %s5371_s9 }
 0xe53   :  { %3155 = vrot.lane.b32.xlu1 %v5818_v5, %s5372_s24 }
 0xe54   :  { %v2648_v11 = vpop.xlane.xlu0 %2647 }
 0xe55   :  { %4971 = vrcp.f32 %v2648_v11  ;;  %v3912_v11 = vld [vmem:[#allocation23 + $0x10] sm:$0xff] }
 0xe56   :  { %4973 = vpow2.f32 %v3316_v15  ;;  %4829 = vmatprep.subr.mxu0 %v3912_v11  ;;  %v3910_v15 = vld [vmem:[#allocation23] sm:$0xff] }
 0xe57   :  { %3487 = vrot.lane.b32.xlu1 %v5812_v3, %s5370_s2  ;;  %4975 = vpow2.f32 %v3148_v18  ;;  %4830 = vmatpush3.msra.mxu0 %v3912_v11 }
 0xe58   :  { %2815 = vrot.lane.b32.xlu0 %v5818_v5, %s5370_s2  ;;  %4977 = vpow2.f32 %v3650_v20  ;;  %v3819_v5 = vsub.f32 %v3813_v49, %v3818_v21  ;;  %4831 = vmatprep.subr.mxu0 %v3911_v13 }
 0xe59   :  { %4979 = vpow2.f32 %v3479_v22  ;;  %4832 = vmatpush3.msra.mxu0 %v3911_v13 }
 0xe5a   :  { %v3820_v23 = vmul.f32 1.442695, %v3819_v5  ;;  %4833 = vmatprep.subr.mxu0 %v3910_v15 }
 0xe5b   :  { %4834 = vmatpush3.msra.mxu0 %v3910_v15 }
 0xe5c   :  { %4981 = vpow2.f32 %v3820_v23 }
 0xe62   :  { %v4972_v14 = vpop.eup %4971 }
 0xe63   :  { %v2650_v17 = vmul.f32 %v4972_v14, %v4966_v56  ;;  %v4974_v25 = vpop.eup %4973 }
 0xe64   :  { %v4976_v26 = vpop.eup %4975  ;;  %v3318_v27 = vsel %vm599_vm2, %v4974_v25, 0.0 }
 0xe65   :  { %4755 = vmatmul.mubr.msk.f32.vlgmr.msra.gmra.mxu1 %vm599_vm2, %v2650_v17  ;;  %v5900_v28 = vpop.eup %4977  ;;  %v3150_v29 = vsel %vm599_vm2, %v4976_v26, 0.0 }
 0xe66   :  { %4764 = vmatprep.mubr.msk.f32.mxu1 %vm5369_vm1, %v5368_v46  ;;  %v3652_v30 = vsel %vm599_vm2, %v5900_v28, 0.0  ;;  %v4980_v31 = vpop.eup %4979 }
 0xe67   :  { %v3481_v32 = vsel %vm599_vm2, %v4980_v31, 0.0 }
 0xe69   :  { %v5906_v33 = vpop.eup %4981 }
 0xe6a   :  { %v3822_v34 = vsel %vm599_vm2, %v5906_v33, 0.0 }
 0xe77   :  { %3319 = vadd.xlane.f32.xlu0 %v3318_v27 }
 0xe7b   :  { %3151 = vadd.xlane.f32.xlu1 %v3150_v29  ;;  %3653 = vadd.xlane.f32.xlu0 %v3652_v30 }
 0xe7f   :  { %3482 = vadd.xlane.f32.xlu1 %v3481_v32 }
 0xe83   :  { %3823 = vadd.xlane.f32.xlu1 %v3822_v34 }
 0xe91   :  { %3657 = vrot.lane.b32.xlu0 %v5812_v3, %s5371_s9 }
 0xe94   :  { %3827 = vrot.lane.b32.xlu1 %v5812_v3, %s5372_s24 }
 0xec7   :  { %v2811_v35 = vpop.xlane.xlu1 %2810 }
 0xec8   :  { %4983 = vrcp.f32 %v2811_v35 }
 0xecb   :  { %v2982_v42 = vpop.xlane.xlu0 %2981  ;;  %v2986_v37 = vpop.permute.xlu1 %2985 }
 0xecc   :  { %4985 = vrcp.f32 %v2982_v42 }
 0xecf   :  { %v2816_v36 = vpop.permute.xlu0 %2815  ;;  %v3156_v43 = vpop.permute.xlu1 %3155 }
 0xed0   :  { %4763 = vmatpush3.msra.mxu1 %v2816_v36 }
 0xed1   :  { %4772 = vmatprep.subr.mxu1 %v5368_v46 }
 0xed3   :  { %v3488_v44 = vpop.permute.xlu1 %3487 }
 0xed5   :  { %v4984_v39 = vpop.eup %4983 }
 0xed6   :  { %v2813_v38 = vmul.f32 %v4984_v39, %v4968_v24 }
 0xed8   :  { %4765 = vmatmul.mubr.msk.f32.vlgmr.msra.gmra.mxu1 %vm599_vm2, %v2813_v38 }
 0xed9   :  { %v4986_v40 = vpop.eup %4985  ;;  %4773 = vmatpush3.msra.mxu1 %v2986_v37  ;;  %4774 = vmatprep.mubr.msk.f32.mxu1 %vm5369_vm1, %v5368_v46 }
 0xeda   :  { %4782 = vmatprep.subr.mxu1 %v5368_v46  ;;  %v2984_v41 = vmul.f32 %v4986_v40, %v5884_v4 }
 0xedc   :  { %4775 = vmatmul.mubr.msk.f32.vlgmr.msra.gmra.mxu1 %vm599_vm2, %v2984_v41 }
 0xedd   :  { %4783 = vmatpush3.msra.mxu1 %v3156_v43  ;;  %4784 = vmatprep.mubr.msk.f32.mxu1 %vm5369_vm1, %v5368_v46  ;;  %v4041_v43 = vld [vmem:[#allocation24 + $0x10] sm:$0xff] }
 0xede   :  { %4792 = vmatprep.subr.mxu1 %v5368_v46 }
 0xf00   :  { %v3320_v8 = vpop.xlane.xlu0 %3319 }
 0xf04   :  { %v3152_v45 = vpop.xlane.xlu1 %3151  ;;  %v3654_v48 = vpop.xlane.xlu0 %3653 }
 0xf05   :  { %4987 = vrcp.f32 %v3152_v45  ;;  %v4140_v45 = vld [vmem:[%s6023_s13 + $0x38] sm:$0xff] }
 0xf06   :  { %4989 = vrcp.f32 %v3320_v8  ;;  %v4039_v8 = vld [vmem:[#allocation24] sm:$0xff]  ;;  %4849 = vmatprep.subr.mxu0 %v4140_v45 }
 0xf08   :  { %v3483_v47 = vpop.xlane.xlu1 %3482  ;;  %v3658_v60 = vpop.permute.xlu0 %3657 }
 0xf09   :  { %4991 = vrcp.f32 %v3483_v47  ;;  %v4139_v47 = vld [vmem:[%s6023_s13 + $0x30] sm:$0xff] }
 0xf0a   :  { %4993 = vrcp.f32 %v3654_v48  ;;  %v4138_v48 = vld [vmem:[%s6023_s13 + $0x28] sm:$0xff] }
 0xf0c   :  { %v3824_v49 = vpop.xlane.xlu1 %3823 }
 0xf0d   :  { %4995 = vrcp.f32 %v3824_v49  ;;  %v4137_v49 = vld [vmem:[%s6023_s13 + $0x20] sm:$0xff] }
 0xf10   :  { %v3828_v62 = vpop.permute.xlu1 %3827 }
 0xf12   :  { %v4988_v50 = vpop.eup %4987 }
 0xf13   :  { %v3154_v52 = vmul.f32 %v4988_v50, %v4976_v26  ;;  %v4990_v54 = vpop.eup %4989 }
 0xf14   :  { %v3322_v55 = vmul.f32 %v4990_v54, %v4974_v25 }
 0xf15   :  { %4785 = vmatmul.mubr.msk.f32.vlgmr.msra.gmra.mxu1 %vm599_vm2, %v3154_v52 }
 0xf16   :  { %4793 = vmatpush3.msra.mxu1 %v5812_v3  ;;  %4794 = vmatprep.mubr.msk.f32.mxu1 %vm5369_vm1, %v5368_v46  ;;  %v4992_v51 = vpop.eup %4991 }
 0xf17   :  { %4802 = vmatprep.subr.mxu1 %v5368_v46  ;;  %v3485_v56 = vmul.f32 %v4992_v51, %v4980_v31  ;;  %v4994_v57 = vpop.eup %4993 }
 0xf18   :  { %v3656_v3 = vmul.f32 %v4994_v57, %v5900_v28 }
 0xf19   :  { %4795 = vmatmul.mubr.msk.f32.vlgmr.msra.gmra.mxu1 %vm599_vm2, %v3322_v55 }
 0xf1a   :  { %4803 = vmatpush3.msra.mxu1 %v3488_v44  ;;  %4804 = vmatprep.mubr.msk.f32.mxu1 %vm5369_vm1, %v5368_v46  ;;  %v4996_v61 = vpop.eup %4995  ;;  %v4040_v44 = vld [vmem:[#allocation24 + $0x8] sm:$0xff] }
 0xf1b   :  { %4812 = vmatprep.subr.mxu1 %v5368_v46  ;;  %v3826_v63 = vmul.f32 %v4996_v61, %v5906_v33  ;;  %v4407_v61 = vld [vmem:[%s6025_s21] ss:$0 sm:$0xff] }
 0xf1d   :  { %4805 = vmatmul.mubr.msk.f32.vlgmr.msra.gmra.mxu1 %vm599_vm2, %v3485_v56 }
 0xf1e   :  { %4813 = vmatpush3.msra.mxu1 %v3658_v60  ;;  %4814 = vmatprep.mubr.msk.f32.mxu1 %vm5369_vm1, %v5368_v46  ;;  %v4406_v60 = vld [vmem:[%s6024_s16] ss:$0 sm:$0xff] }
 0xf1f   :  { %4822 = vmatprep.subr.mxu1 %v5368_v46 }
 0xf21   :  { %4815 = vmatmul.mubr.msk.f32.vlgmr.msra.gmra.mxu1 %vm599_vm2, %v3656_v3 }
 0xf22   :  { %4823 = vmatpush3.msra.mxu1 %v3828_v62  ;;  %4824 = vmatprep.mubr.msk.f32.mxu1 %vm5369_vm1, %v5368_v46 }
 0xf25   :  { %v2720_v0 = vpop.f32.mrf.mxu1  ;;  %4825 = vmatmul.mubr.msk.f32.vlgmr.msra.gmra.mxu1 %vm599_vm2, %v3826_v63 }
 0xf26   :  { %2724 = vst.msk [vmem:[#allocation2] sm:$0xff] %vm599_vm2, %v2720_v0 }
 0xf27   :  { %v4756_v1 = vpop.f32.mrf.mxu1 }
 0xf98   :  { %v2887_v24 = vpop.f32.mrf.mxu1 }
 0xf99   :  { %2892 = vrot.lane.b32.xlu0 %v2887_v24, %s5360_s23 }
 0xf9a   :  { %v4766_v2 = vpop.f32.mrf.mxu1 }
 0xf9c   :  { %v3057_v4 = vpop.f32.mrf.mxu1 }
 0xf9d   :  { %3062 = vrot.lane.b32.xlu1 %v3057_v4, %s5373_s7  ;;  %v4136_v4 = vld [vmem:[%s6023_s13 + $0x18] sm:$0xff] }
 0xf9e   :  { %v4776_v6 = vpop.f32.mrf.mxu1 }
 0xf9f   :  { %v4135_v6 = vld [vmem:[%s6023_s13 + $0x10] sm:$0xff] }
 0xfd5   :  { %v3227_v7 = vpop.f32.mrf.mxu1 }
 0xfd6   :  { %3232 = vrot.lane.b32.xlu1 %v3227_v7, %s5374_s17  ;;  %v4134_v7 = vld [vmem:[%s6023_s13 + $0x8] sm:$0xff] }
 0xfd7   :  { %v4786_v46 = vpop.f32.mrf.mxu1 }
 0xfd8   :  { %v4133_v46 = vld [vmem:[%s6023_s13] sm:$0xff] }
 0xfd9   :  { %v3392_v9 = vpop.f32.mrf.mxu1 }
 0xfda   :  { %3396 = vst.msk [vmem:[#allocation2 + $0x8] sm:$0xff] %vm599_vm2, %v3392_v9  ;;  %v4408_v9 = vld [vmem:[%s6026_s0] ss:$0 sm:$0xff] }
 0xfdb   :  { %v4796_v12 = vpop.f32.mrf.mxu1 }
 0xfdd   :  { %v3559_v14 = vpop.f32.mrf.mxu1 }
 0xfde   :  { %3564 = vrot.lane.b32.xlu0 %v3559_v14, %s5360_s23 }
 0xfdf   :  { %v4806_v53 = vpop.f32.mrf.mxu1 }
 0xfe0   :  { %v4411_v53 = vld [vmem:[%s5514_s6] ss:$0 sm:$0xff]  ;;  %s5375_s6 = smov [#allocation26]  }
 0xfe1   :  { %v3729_v16 = vpop.f32.mrf.mxu1  ;;  %s4282_s18 = sshll.u32 %s5375_s6, 4  ;;  %s4283_s18 = int_to_ptr.vmem [resolvable:$true] %s4282_s18 }
 0xfe2   :  { %3734 = vrot.lane.b32.xlu0 %v3729_v16, %s5373_s7  ;;  %s5285_s22 = scalar_lea.vmem %s4283_s18, 256  ;;  %p5290_p1 = scmp.lt.s32.totalorder %s4283_s18, %s4283_s18 }
 0xfe3   :  { %v4816_v17 = vpop.f32.mrf.mxu1  ;;  %p5286_p0 = scmp.ne.s32.totalorder %s4283_s18, %s5285_s22  ;;  %p5291_p2 = scmp.lt.s32.totalorder %s5285_s22, %s5285_s22 }
 0xfe5   :  { %v3899_v18 = vpop.f32.mrf.mxu1  ;;  %p5292_p3 = por %p5291_p2, %p5290_p1 }
 0xfe6   :  { %3904 = vrot.lane.b32.xlu1 %v3899_v18, %s5374_s17 }
 0xfe7   :  { %v4826_v19 = vpop.f32.mrf.mxu1  ;;  %p5293_p4 = pnand %p5292_p3, %p5286_p0 }
0x100b   :  { %v2893_v20 = vpop.permute.xlu0 %2892 }
0x100c   :  { %2895 = vst.msk [vmem:[#allocation2] sm:$0xff] %vm931_vm4, %v2893_v20 }
0x100f   :  { %v3063_v21 = vpop.permute.xlu1 %3062 }
0x1010   :  { %3065 = vst.msk [vmem:[#allocation2] sm:$0xff] %vm1102_vm5, %v3063_v21 }
0x1048   :  { %v3233_v22 = vpop.permute.xlu1 %3232 }
0x1049   :  { %3235 = vst.msk [vmem:[#allocation2] sm:$0xff] %vm1273_vm6, %v3233_v22 }
0x1050   :  { %v3565_v5 = vpop.permute.xlu0 %3564  ;;  %v3908_v23 = vld [vmem:[#allocation2] sm:$0xff] }
0x1051   :  { %3567 = vst.msk [vmem:[#allocation2 + $0x8] sm:$0xff] %vm931_vm4, %v3565_v5  ;;  %4835 = vmatprep.mubr.msk.f32.mxu0 %vm303_vm0, %v3908_v23 }
0x1054   :  { %v3735_v25 = vpop.permute.xlu0 %3734 }
0x1055   :  { %3737 = vst.msk [vmem:[#allocation2 + $0x8] sm:$0xff] %vm1102_vm5, %v3735_v25 }
0x1058   :  { %v3905_v26 = vpop.permute.xlu1 %3904 }
0x1059   :  { %3907 = vst.msk [vmem:[#allocation2 + $0x8] sm:$0xff] %vm1273_vm6, %v3905_v26 }
0x1060   :  { %v3909_v27 = vld [vmem:[#allocation2 + $0x8] sm:$0xff] }
0x1061   :  { %4836 = vmatmul.mubr.msk.f32.vlgmr.msra.gmra.mxu0 %vm303_vm0, %v3909_v27 }
0x1062   :  { %4850 = vmatpush3.msra.mxu0 %v4140_v45 }
0x1063   :  { %4851 = vmatprep.subr.mxu0 %v4139_v47 }
0x1064   :  { %4852 = vmatpush3.msra.mxu0 %v4139_v47 }
0x1065   :  { %4853 = vmatprep.subr.mxu0 %v4138_v48 }
0x1066   :  { %4854 = vmatpush3.msra.mxu0 %v4138_v48 }
0x1067   :  { %4855 = vmatprep.subr.mxu0 %v4137_v49 }
0x1068   :  { %4856 = vmatpush3.msra.mxu0 %v4137_v49 }
0x1069   :  { %4857 = vmatprep.subr.mxu0 %v4136_v4 }
0x106a   :  { %4858 = vmatpush3.msra.mxu0 %v4136_v4 }
0x106b   :  { %4859 = vmatprep.subr.mxu0 %v4135_v6 }
0x106c   :  { %4860 = vmatpush3.msra.mxu0 %v4135_v6 }
0x106d   :  { %4861 = vmatprep.subr.mxu0 %v4134_v7 }
0x106e   :  { %4862 = vmatpush3.msra.mxu0 %v4134_v7 }
0x106f   :  { %4863 = vmatprep.subr.mxu0 %v4133_v46 }
0x1070   :  { %4864 = vmatpush3.msra.mxu0 %v4133_v46 }
0x1121   :  { %v4837_v28 = vpop.f32.mrf.mxu0 }
0x1122   :  { %v3992_v29 = vadd.f32 %v4837_v28, %v5789_v59  ;;  %v4042_v59 = vld [vmem:[#allocation24 + $0x18] sm:$0xff] }
0x1123   :  { %v3986_v30 = vpop.f32.mrf.mxu0  ;;  %4838 = vmatprep.subr.mxu1 %v4042_v59 }
0x1124   :  { %v3987_v31 = vadd.f32 %v3986_v30, %v5787_v58  ;;  %v4000_v32 = vsel %vm303_vm0, %v3992_v29, 0.0  ;;  %4839 = vmatpush3.msra.mxu1 %v4042_v59  ;;  %v4415_v59 = vld [vmem:[%s5524_s3] ss:$0 sm:$0xff] }
0x1125   :  { %4001 = vadd.xlane.f32.xlu1 %v4000_v32  ;;  %4840 = vmatprep.subr.mxu1 %v4041_v43 }
0x1126   :  { %v3997_v33 = vsel %vm303_vm0, %v3987_v31, 0.0  ;;  %4841 = vmatpush3.msra.mxu1 %v4041_v43 }
0x1127   :  { %3998 = vadd.xlane.f32.xlu0 %v3997_v33  ;;  %4842 = vmatprep.subr.mxu1 %v4040_v44 }
0x1128   :  { %4843 = vmatpush3.msra.mxu1 %v4040_v44 }
0x1129   :  { %4844 = vmatprep.subr.mxu1 %v4039_v8 }
0x112a   :  { %4845 = vmatpush3.msra.mxu1 %v4039_v8 }
0x11ae   :  { %v4002_v34 = vpop.xlane.xlu1 %4001 }
0x11af   :  { %v4004_v35 = vmul.f32 0.03125, %v4002_v34 }
0x11b0   :  { %v3999_v42 = vpop.xlane.xlu0 %3998 }
0x11b1   :  { %v4003_v36 = vmul.f32 0.03125, %v3999_v42  ;;  %v4006_v39 = vsub.f32 %v3992_v29, %v4004_v35 }
0x11b3   :  { %v4005_v37 = vsub.f32 %v3987_v31, %v4003_v36  ;;  %v4008_v41 = vmul.f32 %v4006_v39, %v4006_v39 }
0x11b5   :  { %v4007_v38 = vmul.f32 %v4005_v37, %v4005_v37  ;;  %v4012_v58 = vsel %vm303_vm0, %v4008_v41, 0.0 }
0x11b7   :  { %v4009_v40 = vsel %vm303_vm0, %v4007_v38, 0.0 }
0x11b8   :  { %4010 = vadd.xlane.f32.xlu0 %v4009_v40  ;;  %v4414_v40 = vld [vmem:[%s5519_s25] ss:$0 sm:$0xff] }
0x11bc   :  { %4013 = vadd.xlane.f32.xlu0 %v4012_v58 }
0x1241   :  { %v4011_v50 = vpop.xlane.xlu0 %4010 }
0x1242   :  { %v4015_v52 = vmul.f32 0.03125, %v4011_v50 }
0x1244   :  { %v4017_v54 = vadd.f32 1e-06, %v4015_v52 }
0x1245   :  { %v4014_v55 = vpop.xlane.xlu0 %4013 }
0x1246   :  { %4997 = vrsqrt.f32 %v4017_v54  ;;  %v4016_v51 = vmul.f32 0.03125, %v4014_v55 }
0x1248   :  { %v4018_v56 = vadd.f32 1e-06, %v4016_v51 }
0x124a   :  { %4999 = vrsqrt.f32 %v4018_v56 }
0x1253   :  { %v4998_v57 = vpop.eup %4997 }
0x1254   :  { %v4021_v3 = vmul.f32 %v4998_v57, %v4005_v37 }
0x1256   :  { %v4029_v62 = vmul.f32 %v4406_v60, %v4021_v3 }
0x1257   :  { %v5000_v63 = vpop.eup %4999 }
0x1258   :  { %v4022_v0 = vmul.f32 %v5000_v63, %v4006_v39  ;;  %v4037_v1 = vadd.f32 %v4407_v61, %v4029_v62 }
0x125a   :  { %v4030_v24 = vmul.f32 %v4406_v60, %v4022_v0  ;;  %4846 = vmatprep.mubr.msk.f32.mxu1 %vm303_vm0, %v4037_v1 }
0x125c   :  { %v4038_v2 = vadd.f32 %v4407_v61, %v4030_v24 }
0x125e   :  { %4847 = vmatmul.mubr.msk.f32.vlgmr.msra.gmra.mxu1 %vm303_vm0, %v4038_v2 }
0x131e   :  { %v4848_v10 = vpop.f32.mrf.mxu1 }
0x131f   :  { %v4128_v11 = vadd.f32 %v4848_v10, %v4408_v9 }
0x1320   :  { %v4122_v12 = vpop.f32.mrf.mxu1 }
0x1321   :  { %v4123_v13 = vadd.f32 %v4408_v9, %v4122_v12  ;;  %v4132_v15 = vmax.f32 %v4128_v11, 0.0 }
0x1323   :  { %v4131_v14 = vmax.f32 %v4123_v13, 0.0 }
0x1325   :  { %4865 = vmatprep.mubr.msk.f32.mxu0 %vm2191_vm7, %v4131_v14 }
0x1326   :  { %4866 = vmatmul.mubr.msk.f32.vlgmr.msra.gmra.mxu0 %vm2191_vm7, %v4132_v15 }
0x13e6   :  { %v4867_v16 = vpop.f32.mrf.mxu0 }
0x13e7   :  { %v4226_v17 = vadd.f32 %v4867_v16, %v4411_v53 }
0x13e8   :  { %v4220_v18 = vpop.f32.mrf.mxu0 }
0x13e9   :  { %v4221_v19 = vadd.f32 %v4411_v53, %v4220_v18  ;;  %v4230_v20 = vadd.f32 %v4226_v17, %v4038_v2 }
0x13eb   :  { %v4236_v21 = vsel %vm303_vm0, %v4230_v20, 0.0  ;;  %v4229_v22 = vadd.f32 %v4221_v19, %v4037_v1 }
0x13ec   :  { %4237 = vadd.xlane.f32.xlu1 %v4236_v21 }
0x13ed   :  { %v4233_v5 = vsel %vm303_vm0, %v4229_v22, 0.0 }
0x13ee   :  { %4234 = vadd.xlane.f32.xlu0 %v4233_v5 }
0x1475   :  { %v4238_v23 = vpop.xlane.xlu1 %4237 }
0x1476   :  { %v4240_v25 = vmul.f32 0.03125, %v4238_v23 }
0x1477   :  { %v4235_v26 = vpop.xlane.xlu0 %4234 }
0x1478   :  { %v4242_v27 = vsub.f32 %v4230_v20, %v4240_v25  ;;  %v4239_v28 = vmul.f32 0.03125, %v4235_v26 }
0x147a   :  { %v4241_v29 = vsub.f32 %v4229_v22, %v4239_v28  ;;  %v4244_v30 = vmul.f32 %v4242_v27, %v4242_v27 }
0x147c   :  { %v4248_v31 = vsel %vm303_vm0, %v4244_v30, 0.0  ;;  %v4243_v32 = vmul.f32 %v4241_v29, %v4241_v29 }
0x147d   :  { %4249 = vadd.xlane.f32.xlu1 %v4248_v31 }
0x147e   :  { %v4245_v33 = vsel %vm303_vm0, %v4243_v32, 0.0 }
0x147f   :  { %4246 = vadd.xlane.f32.xlu0 %v4245_v33 }
0x1506   :  { %v4250_v34 = vpop.xlane.xlu1 %4249 }
0x1507   :  { %v4252_v35 = vmul.f32 0.03125, %v4250_v34 }
0x1508   :  { %v4247_v42 = vpop.xlane.xlu0 %4246 }
0x1509   :  { %v4254_v36 = vadd.f32 1e-06, %v4252_v35  ;;  %v4251_v39 = vmul.f32 0.03125, %v4247_v42 }
0x150b   :  { %5001 = vrsqrt.f32 %v4254_v36  ;;  %v4253_v37 = vadd.f32 1e-06, %v4251_v39 }
0x150d   :  { %5003 = vrsqrt.f32 %v4253_v37 }
0x1518   :  { %v5002_v38 = vpop.eup %5001 }
0x1519   :  { %v4258_v41 = vmul.f32 %v5002_v38, %v4242_v27 }
0x151a   :  { %v5004_v58 = vpop.eup %5003 }
0x151b   :  { %v4257_v43 = vmul.f32 %v5004_v58, %v4241_v29  ;;  %v4266_v44 = vmul.f32 %v4414_v40, %v4258_v41 }
0x151d   :  { %v4265_v8 = vmul.f32 %v4414_v40, %v4257_v43  ;;  %v4274_v45 = vadd.f32 %v4415_v59, %v4266_v44 }
0x151f   :  { %v4273_v47 = vadd.f32 %v4415_v59, %v4265_v8  ;;  %4276 = vst.msk [vmem:[#allocation26 + $0x8] sm:$0xff] %vm303_vm0, %v4274_v45 }
0x1521   :  { %4275 = vst.msk [vmem:[#allocation26] sm:$0xff] %vm303_vm0, %v4273_v47 }
0x1522   :  { %5296 = shalt.err (!%p5293_p4)
}
0x1523   :  { %4288 = dma.vmem_to_hbm [thread:$0]  %s4283_s18, 256, %s5529_s4, [#allocation5], %s5359_s30, %s5359_s30, %s5360_s23  }
0x1524   :  { %5321 = dma.done.wait [#allocation5], 256  }
0x1525   :  { %5322 = vsyncadd [#allocation5], 4294967040 }
0x1526   :  { %4292 = vsyncpa [#allocation4], 1 }
0x1527   :  { %4293 = vsyncpa [#allocation7], 1 }
0x1528   :  { %4294 = vsyncpa [#allocation10], 1 }
0x1529   :  { %4295 = vsyncpa [#allocation13], 1 }
0x152a   :  { %4296 = vsyncpa [#allocation16], 1 }
0x152b   :  { %4297 = vsyncpa [#allocation19], 1 }
0x152c   :  { %4298 = vsyncpa [#allocation22], 1 }
0x152d   :  { %4299 = vsyncpa [#allocation25], 1 }
0x152e   :  { %4300 = vsyncpa [#allocation5], 1 }

</bundles_post_ra>
